<compile_context>
chip_gen: v7x
topology: tpu7x:2x2x1
jax: 0.10.0
libtpu: 0.0.40
codegen_flags: <defaults>
</compile_context>

<pallas_src>
import functools

import jax
import jax.numpy as jnp
import numpy as np
from jax.experimental import pallas as pl
from jax.experimental.pallas import tpu as pltpu

BN_EPS = 1e-5        # nn.BatchNorm1d default eps
NORM_EPS = 1e-12     # F.normalize default eps
DOT_DTYPE = jnp.bfloat16   # MXU operand dtype for the conv stages (f32 accumulate)

H0 = 16              # input spatial size (H = W) == rows per image in the packed layout
CIN = 3
C1, C2, C3 = 32, 64, 128
LANE_IN = 128        # packed input lane width (W0*CIN = 48, zero-padded to 128)


# ----------------------------- fused Pallas kernel -----------------------------

def _fused_kernel(x_ref, band1_ref, band2_ref, band3_ref,
                  b1_ref, b2_ref, b3_ref, sel_ref,
                  wg_ref, bh_ref, w2_ref, b2h_ref,
                  logits_ref, enorm_ref):
    """One slab of B_tile images per grid step.  Activations are (B_tile*16, lanes) f32
    values: row r belongs to image r//16 at within-image row r%16 (valid rows of a stage are
    the multiples of its row stride); lanes pack spatial columns channel-major, and after each
    pool the surviving columns are already densely packed because the producing conv's banded
    weights emit output columns in [evens | odds] order."""
    M = x_ref.shape[0]                    # B_tile * 16

    def shifted_cat(x, s):
        # Lane-concat of [rows shifted by -s | unshifted | rows shifted by +s]; shifts are
        # zero-filled outside each 16-row image slab (masks keyed on r % 16, so wrapped rows
        # from neighbouring images are zeroed).  Matches the host-side kh row-concat of bands.
        k = x.shape[1]
        rmod = jax.lax.broadcasted_iota(jnp.int32, (M, k), 0) % H0
        x_neg = jnp.where(rmod >= s, pltpu.roll(x, shift=s, axis=0), 0.0)        # row h-s
        x_pos = jnp.where(rmod < H0 - s, pltpu.roll(x, shift=M - s, axis=0), 0.0)  # row h+s
        return jnp.concatenate([x_neg, x, x_pos], axis=1)

    def conv(x, band_ref, bias_ref, s):
        # 3x3 SAME conv == ONE MXU dot against the kh-concatenated banded weights.
        xcat = shifted_cat(x, s).astype(DOT_DTYPE)            # single bf16 cast per stage
        acc = jnp.dot(xcat, band_ref[...], preferred_element_type=jnp.float32)
        return jnp.maximum(acc + bias_ref[...], 0.0)          # bias + ReLU in f32

    def pool(a, row_stride):
        # 2x2 max-pool.  Columns: producing conv emitted [even cols | odd cols], so the
        # column max + decimation is max(first half, second half) with survivors densely
        # packed.  Rows: pair row h with row h+row_stride; rows whose pair crosses an image
        # boundary hold garbage but are never read (later stages only read rows that are
        # multiples of their own row stride, which never include those rows).
        half = a.shape[1] // 2
        cmax = jnp.maximum(a[:, :half], a[:, half:])
        return jnp.maximum(cmax, pltpu.roll(cmax, shift=M - row_stride, axis=0))

    x0 = x_ref[...]                        # (M, 128) packed padded input, f32
    a1 = conv(x0, band1_ref, b1_ref, 1)    # (M, 16*32 = 512)
    p1 = pool(a1, 1)                       # (M, 256)   dense 8 cols x 32 ch
    a2 = conv(p1, band2_ref, b2_ref, 2)    # (M, 8*64 = 512)
    p2 = pool(a2, 2)                       # (M, 256)   dense 4 cols x 64 ch
    a3 = conv(p2, band3_ref, b3_ref, 4)    # (M, 4*128 = 512)

    # Global average pool entirely in f32: per-image row selection/sum (rows 0,4,8,12 of each
    # 16-row slab) is a tiny exact f32 selector dot; the column-block sum and the 1/16 factor
    # are folded into wg on the host together with the inference BatchNorm.
    t = jnp.dot(sel_ref[...], a3, preferred_element_type=jnp.float32)     # (B_tile, 512)

    e = jnp.maximum(jnp.dot(t, wg_ref[...], preferred_element_type=jnp.float32)
                    + bh_ref[...], 0.0)                                    # FC1 + folded BN + ReLU

    logits_ref[...] = (jnp.dot(e, w2_ref[...], preferred_element_type=jnp.float32)
                       + b2h_ref[...])                                     # lane-padded to 128
    ss = jnp.sum(e * e, axis=1, keepdims=True)
    enorm_ref[...] = e * jax.lax.rsqrt(jnp.maximum(ss, NORM_EPS * NORM_EPS))  # F.normalize


# ----------------------------- host-side parameter packing -----------------------------

def pack_params(p):
    """Reorganize PyTorch-style params into banded/packed matrices (pure host numpy)."""
    f32 = np.float32

    def band(w, win, k_in, interleave_out):
        # w: (3,3,cin,cout).  Input spatial column c occupies lanes [c*cin,(c+1)*cin) of a
        # k_in-lane dense input (k_in may be zero-padded past win*cin).  Output columns are
        # laid out in `order`; with interleave_out the order is [0,2,.. | 1,3,..] so the next
        # pool's column pairing + stride-2 decimation is max(first half, second half) and the
        # survivors are densely packed (halving the next stage's contraction K).  The three kh
        # taps are concatenated along rows to match the kernel's lane-concat of the three
        # row-shifted activations (one MXU dot per conv stage).
        _, _, cin, cout = w.shape
        order = (list(range(0, win, 2)) + list(range(1, win, 2))) if interleave_out \
            else list(range(win))
        b = np.zeros((3, k_in, win * cout), f32)
        for kh in range(3):
            for pos, j in enumerate(order):
                for kw in range(3):
                    jin = j + kw - 1
                    if 0 <= jin < win:
                        b[kh, jin * cin:(jin + 1) * cin, pos * cout:(pos + 1) * cout] = w[kh, kw]
        return np.concatenate([b[0], b[1], b[2]], axis=0)          # (3*k_in, win*cout)

    wc1 = np.asarray(p['w_c1'], f32)
    wc2 = np.asarray(p['w_c2'], f32)
    wc3 = np.asarray(p['w_c3'], f32)

    band1 = band(wc1, 16, LANE_IN, True)    # (384, 512)
    band2 = band(wc2, 8, 8 * C1, True)      # (768, 512)  dense K=256 per kh tap
    band3 = band(wc3, 4, 4 * C2, False)     # (768, 512)

    b1p = np.tile(np.asarray(p['b_c1'], f32).reshape(1, -1), (1, 16))
    b2p = np.tile(np.asarray(p['b_c2'], f32).reshape(1, -1), (1, 8))
    b3p = np.tile(np.asarray(p['b_c3'], f32).reshape(1, -1), (1, 4))

    # Fold inference BatchNorm1d into FC1, plus the GAP column-block sum and the 1/16 scale.
    scale = np.asarray(p['bn_gamma'], f32) / np.sqrt(np.asarray(p['bn_var'], f32) + BN_EPS)
    w1bn = np.asarray(p['w_fc1'], f32) * scale
    b1bn = (np.asarray(p['b_fc1'], f32) - np.asarray(p['bn_mean'], f32)) * scale \
        + np.asarray(p['bn_beta'], f32)
    wg = np.tile(w1bn, (4, 1)) / 16.0                               # (4*128, E), stays f32

    # Pad the classifier head to a lane-dense 128-wide output (sliced back in the wrapper).
    w_fc2 = np.asarray(p['w_fc2'], f32)
    b_fc2 = np.asarray(p['b_fc2'], f32).reshape(1, -1)
    nc = w_fc2.shape[1]
    ncp = max(128, ((nc + 127) // 128) * 128)
    w2p = np.zeros((w_fc2.shape[0], ncp), f32)
    w2p[:, :nc] = w_fc2
    b2hp = np.zeros((1, ncp), f32)
    b2hp[:, :nc] = b_fc2

    return dict(
        band1=jnp.asarray(band1, DOT_DTYPE),
        band2=jnp.asarray(band2, DOT_DTYPE),
        band3=jnp.asarray(band3, DOT_DTYPE),
        b1p=jnp.asarray(b1p), b2p=jnp.asarray(b2p), b3p=jnp.asarray(b3p),
        wg=jnp.asarray(wg), bh=jnp.asarray(b1bn, jnp.float32),
        w2=jnp.asarray(w2p), b2h=jnp.asarray(b2hp),
    )


# ----------------------------- forward wrapper -----------------------------

def _pack_input(x_nchw, b_padded):
    x = jnp.transpose(x_nchw, (0, 2, 3, 1)).astype(jnp.float32)     # NCHW -> NHWC
    B, H, W, C = x.shape
    xp = x.reshape(B, H, W * C)                                     # lane = w*CIN + c
    xp = jnp.pad(xp, ((0, b_padded - B), (0, 0), (0, LANE_IN - W * C)))
    return xp.reshape(b_padded * H, LANE_IN)                        # 16 rows per image


def _wspec(a):
    return pl.BlockSpec(a.shape, lambda g: (0,) * a.ndim)           # grid-invariant, VMEM-resident


def face_classifier_forward(x_nchw, packed, num_classes, b_tile=None):
    B = x_nchw.shape[0]
    if b_tile is None:                       # M = b_tile*16 rows per MXU dot
        if B >= 32:
            b_tile = 16                      # M=256: full v6e/v7x MXU height, grid >= 2
        elif B >= 16:
            b_tile = 8                       # M=128: full v5e MXU height, grid = 2
        else:
            b_tile = B                       # tiny batches: one step
    grid = (B + b_tile - 1) // b_tile
    b_padded = grid * b_tile
    M = b_tile * H0

    xp = _pack_input(x_nchw, b_padded)       # (b_padded*16, 128)

    # Per-image GAP row selector (exact f32): sel[b, 16*b + {0,4,8,12}] = 1.
    sel = np.zeros((b_tile, M), np.float32)
    for b in range(b_tile):
        sel[b, 16 * b:16 * b + 16:4] = 1.0
    sel = jnp.asarray(sel)

    E = packed['wg'].shape[1]
    NCP = packed['w2'].shape[1]

    logits_p, enorm_p = pl.pallas_call(
        _fused_kernel,
        out_shape=(jax.ShapeDtypeStruct((b_padded, NCP), jnp.float32),
                   jax.ShapeDtypeStruct((b_padded, E), jnp.float32)),
        grid=(grid,),
        in_specs=[
            pl.BlockSpec((M, LANE_IN), lambda g: (g, 0)),
            _wspec(packed['band1']), _wspec(packed['band2']), _wspec(packed['band3']),
            _wspec(packed['b1p']), _wspec(packed['b2p']), _wspec(packed['b3p']),
            _wspec(sel),
            _wspec(packed['wg']), _wspec(packed['bh']),
            _wspec(packed['w2']), _wspec(packed['b2h']),
        ],
        out_specs=(pl.BlockSpec((b_tile, NCP), lambda g: (g, 0)),
                   pl.BlockSpec((b_tile, E), lambda g: (g, 0))),
        compiler_params=pltpu.CompilerParams(dimension_semantics=("parallel",)),
    )(xp, packed['band1'], packed['band2'], packed['band3'],
      packed['b1p'], packed['b2p'], packed['b3p'], sel,
      packed['wg'], packed['bh'], packed['w2'], packed['b2h'])

    return logits_p[:B, :num_classes], enorm_p[:B]


# ----------------------------- params & pure-JAX reference -----------------------------

def init_params(key, num_classes=10, embed_dim=128):
    ks = jax.random.split(key, 14)

    def conv_w(k, cin, cout):   # HWIO (3,3,Cin,Cout)
        return jax.random.normal(k, (3, 3, cin, cout), jnp.float32) * np.sqrt(2.0 / (9 * cin))

    return dict(
        w_c1=conv_w(ks[0], 3, 32),    b_c1=0.01 * jax.random.normal(ks[1], (1, 32)),
        w_c2=conv_w(ks[2], 32, 64),   b_c2=0.01 * jax.random.normal(ks[3], (1, 64)),
        w_c3=conv_w(ks[4], 64, 128),  b_c3=0.01 * jax.random.normal(ks[5], (1, 128)),
        w_fc1=jax.random.normal(ks[6], (128, embed_dim)) * np.sqrt(1.0 / 128),
        b_fc1=0.01 * jax.random.normal(ks[7], (1, embed_dim)),
        bn_gamma=1.0 + 0.1 * jax.random.normal(ks[8], (1, embed_dim)),
        bn_beta=0.1 * jax.random.normal(ks[9], (1, embed_dim)),
        bn_mean=0.1 * jax.random.normal(ks[10], (1, embed_dim)),
        bn_var=0.5 + jnp.abs(jax.random.normal(ks[11], (1, embed_dim))),
        w_fc2=jax.random.normal(ks[12], (embed_dim, num_classes)) * np.sqrt(1.0 / embed_dim),
        b_fc2=0.01 * jax.random.normal(ks[13], (1, num_classes)),
    )


def reference_forward(x_nchw, p):
    """Pure-JAX reference mirroring the PyTorch forward (eval mode)."""
    hp = jax.lax.Precision.HIGHEST
    x = jnp.transpose(x_nchw, (0, 2, 3, 1)).astype(jnp.float32)

    def conv(x, w, b):
        y = jax.lax.conv_general_dilated(
            x, w, (1, 1), 'SAME',
            dimension_numbers=('NHWC', 'HWIO', 'NHWC'), precision=hp)
        return jax.nn.relu(y + b.reshape(1, 1, 1, -1))

    def mp(x):
        return jax.lax.reduce_window(x, -jnp.inf, jax.lax.max,
                                     (1, 2, 2, 1), (1, 2, 2, 1), 'VALID')

    y = mp(conv(x, p['w_c1'], p['b_c1']))
    y = mp(conv(y, p['w_c2'], p['b_c2']))
    y = conv(y, p['w_c3'], p['b_c3'])
    f = jnp.mean(y, axis=(1, 2))
    e = jnp.dot(f, p['w_fc1'], precision=hp) + p['b_fc1']
    e = p['bn_gamma'] * (e - p['bn_mean']) / jnp.sqrt(p['bn_var'] + BN_EPS) + p['bn_beta']
    e = jax.nn.relu(e)
    logits = jnp.dot(e, p['w_fc2'], precision=hp) + p['b_fc2']
    nrm = jnp.sqrt(jnp.sum(e * e, axis=1, keepdims=True))
    return logits, e / jnp.maximum(nrm, NORM_EPS)


# ----------------------------- main -----------------------------

if __name__ == "__main__":
    key = jax.random.PRNGKey(0)
    kx, kp = jax.random.split(key)
    num_classes, embed_dim = 10, 128
    x = jax.random.normal(kx, (2, 3, 16, 16), jnp.float32)   # PyTorch-style NCHW input
    params = init_params(kp, num_classes=num_classes, embed_dim=embed_dim)
    packed = pack_params(params)                             # one-time host-side repack

    fwd = jax.jit(functools.partial(face_classifier_forward, num_classes=num_classes))
    logits, e_norm = jax.block_until_ready(fwd(x, packed))

    ref_logits, ref_e = reference_forward(x, params)
    assert logits.shape == (2, num_classes) and e_norm.shape == (2, embed_dim)
    # Tolerance accounts for bf16 MXU operands on the conv path (the GAP + head run in f32)
    # vs. the HIGHEST-precision f32 reference.
    assert np.allclose(np.asarray(logits), np.asarray(ref_logits), rtol=7.5e-2, atol=7.5e-2)
    assert np.allclose(np.asarray(e_norm), np.asarray(ref_e), rtol=7.5e-2, atol=7.5e-2)

    print("KERNEL_OK")
</pallas_src>

<mosaic_0001>
module attributes {stable_mosaic.version = 11 : i64} {
  func.func @_fused_kernel(%arg0: i32, %arg1: memref<32x128xf32, #tpu.memory_space<vmem>>, %arg2: memref<384x512xbf16, #tpu.memory_space<vmem>>, %arg3: memref<768x512xbf16, #tpu.memory_space<vmem>>, %arg4: memref<768x512xbf16, #tpu.memory_space<vmem>>, %arg5: memref<1x512xf32, #tpu.memory_space<vmem>>, %arg6: memref<1x512xf32, #tpu.memory_space<vmem>>, %arg7: memref<1x512xf32, #tpu.memory_space<vmem>>, %arg8: memref<2x32xf32, #tpu.memory_space<vmem>>, %arg9: memref<512x128xf32, #tpu.memory_space<vmem>>, %arg10: memref<1x128xf32, #tpu.memory_space<vmem>>, %arg11: memref<128x128xf32, #tpu.memory_space<vmem>>, %arg12: memref<1x128xf32, #tpu.memory_space<vmem>>, %arg13: memref<2x128xf32, #tpu.memory_space<vmem>>, %arg14: memref<2x128xf32, #tpu.memory_space<vmem>>) attributes {dimension_semantics = [#tpu.dimension_semantics<parallel>], iteration_bounds = array<i64: 1>, scalar_prefetch = 0 : i64, scratch_operands = 0 : i64, tpu.core_type = #tpu.core_type<tc>, window_params = [{transform_indices = @transform_0, window_bounds = array<i64: 32, 128>}, {pipeline_mode = #tpu.pipeline_mode<synchronous>, transform_indices = @transform_1, window_bounds = array<i64: 384, 512>}, {pipeline_mode = #tpu.pipeline_mode<synchronous>, transform_indices = @transform_2, window_bounds = array<i64: 768, 512>}, {pipeline_mode = #tpu.pipeline_mode<synchronous>, transform_indices = @transform_3, window_bounds = array<i64: 768, 512>}, {pipeline_mode = #tpu.pipeline_mode<synchronous>, transform_indices = @transform_4, window_bounds = array<i64: 1, 512>}, {pipeline_mode = #tpu.pipeline_mode<synchronous>, transform_indices = @transform_5, window_bounds = array<i64: 1, 512>}, {pipeline_mode = #tpu.pipeline_mode<synchronous>, transform_indices = @transform_6, window_bounds = array<i64: 1, 512>}, {pipeline_mode = #tpu.pipeline_mode<synchronous>, transform_indices = @transform_7, window_bounds = array<i64: 2, 32>}, {pipeline_mode = #tpu.pipeline_mode<synchronous>, transform_indices = @transform_8, window_bounds = array<i64: 512, 128>}, {pipeline_mode = #tpu.pipeline_mode<synchronous>, transform_indices = @transform_9, window_bounds = array<i64: 1, 128>}, {pipeline_mode = #tpu.pipeline_mode<synchronous>, transform_indices = @transform_10, window_bounds = array<i64: 128, 128>}, {pipeline_mode = #tpu.pipeline_mode<synchronous>, transform_indices = @transform_11, window_bounds = array<i64: 1, 128>}, {transform_indices = @transform_12, window_bounds = array<i64: 2, 128>}, {transform_indices = @transform_13, window_bounds = array<i64: 2, 128>}]} {
    %c0 = arith.constant 0 : index
    %c0_0 = arith.constant 0 : index
    %0 = vector.load %arg1[%c0, %c0_0] : memref<32x128xf32, #tpu.memory_space<vmem>>, vector<32x128xf32>
    %1 = tpu.iota {dimensions = array<i32: 0>} : vector<32x128xi32>
    %c16_i32 = arith.constant 16 : i32
    %c0_i32 = arith.constant 0 : i32
    %2 = arith.cmpi eq, %c16_i32, %c0_i32 : i32
    %c1_i32 = arith.constant 1 : i32
    %3 = arith.select %2, %c1_i32, %c16_i32 : i32
    %4 = vector.broadcast %3 : i32 to vector<32x128xi32>
    %5 = arith.remsi %1, %4 : vector<32x128xi32>
    %c0_i32_1 = arith.constant 0 : i32
    %6 = vector.broadcast %c0_i32_1 : i32 to vector<32x128xi32>
    %7 = arith.cmpi ne, %5, %6 : vector<32x128xi32>
    %c0_i32_2 = arith.constant 0 : i32
    %8 = vector.broadcast %c0_i32_2 : i32 to vector<32x128xi32>
    %9 = arith.cmpi slt, %5, %8 : vector<32x128xi32>
    %c0_i32_3 = arith.constant 0 : i32
    %10 = arith.cmpi slt, %3, %c0_i32_3 : i32
    %11 = vector.broadcast %10 : i1 to vector<32x128xi1>
    %12 = vector.broadcast %11 : vector<32x128xi1> to vector<32x128xi1>
    %13 = arith.xori %9, %12 : vector<32x128xi1>
    %14 = arith.andi %13, %7 : vector<32x128xi1>
    %15 = vector.broadcast %3 : i32 to vector<32x128xi32>
    %16 = arith.addi %5, %15 : vector<32x128xi32>
    %17 = arith.select %14, %16, %5 : vector<32x128xi1>, vector<32x128xi32>
    %c1_i32_4 = arith.constant 1 : i32
    %18 = vector.broadcast %c1_i32_4 : i32 to vector<32x128xi32>
    %19 = arith.cmpi sge, %17, %18 : vector<32x128xi32>
    %c1_i32_5 = arith.constant 1 : i32
    %20 = tpu.dynamic_rotate %0 by %c1_i32_5 dim 0 : vector<32x128xf32>, i32 -> vector<32x128xf32>
    %cst = arith.constant 0.000000e+00 : f32
    %21 = vector.broadcast %cst : f32 to vector<32x128xf32>
    %22 = arith.select %19, %20, %21 : vector<32x128xi1>, vector<32x128xf32>
    %c15_i32 = arith.constant 15 : i32
    %23 = vector.broadcast %c15_i32 : i32 to vector<32x128xi32>
    %24 = arith.cmpi slt, %17, %23 : vector<32x128xi32>
    %c31_i32 = arith.constant 31 : i32
    %25 = tpu.dynamic_rotate %0 by %c31_i32 dim 0 : vector<32x128xf32>, i32 -> vector<32x128xf32>
    %cst_6 = arith.constant 0.000000e+00 : f32
    %26 = vector.broadcast %cst_6 : f32 to vector<32x128xf32>
    %27 = arith.select %24, %25, %26 : vector<32x128xi1>, vector<32x128xf32>
    %28 = tpu.concatenate %22, %0, %27 in 1 : vector<32x128xf32>, vector<32x128xf32>, vector<32x128xf32> -> vector<32x384xf32>
    %29 = arith.truncf %28 : vector<32x384xf32> to vector<32x384xbf16>
    %c0_7 = arith.constant 0 : index
    %c0_8 = arith.constant 0 : index
    %30 = vector.load %arg2[%c0_7, %c0_8] : memref<384x512xbf16, #tpu.memory_space<vmem>>, vector<384x512xbf16>
    %cst_9 = arith.constant dense<0.000000e+00> : vector<32x512xf32>
    %31 = tpu.matmul %29, %30, %cst_9 {dimension_numbers = #tpu.dot_dimension_numbers<[1], [0], [0], [1], [0, 0, 1, 1], [], []>} : vector<32x384xbf16>, vector<384x512xbf16>, vector<32x512xf32> -> vector<32x512xf32>
    %c0_10 = arith.constant 0 : index
    %c0_11 = arith.constant 0 : index
    %32 = vector.load %arg5[%c0_10, %c0_11] : memref<1x512xf32, #tpu.memory_space<vmem>>, vector<1x512xf32>
    %33 = vector.broadcast %32 : vector<1x512xf32> to vector<32x512xf32>
    %34 = arith.addf %31, %33 : vector<32x512xf32>
    %cst_12 = arith.constant 0.000000e+00 : f32
    %35 = vector.broadcast %cst_12 : f32 to vector<32x512xf32>
    %36 = arith.maximumf %34, %35 : vector<32x512xf32>
    %37 = vector.extract_strided_slice %36 {offsets = [0, 0], sizes = [32, 256], strides = [1, 1]} : vector<32x512xf32> to vector<32x256xf32>
    %38 = vector.extract_strided_slice %36 {offsets = [0, 256], sizes = [32, 256], strides = [1, 1]} : vector<32x512xf32> to vector<32x256xf32>
    %39 = arith.maximumf %37, %38 : vector<32x256xf32>
    %c31_i32_13 = arith.constant 31 : i32
    %40 = tpu.dynamic_rotate %39 by %c31_i32_13 dim 0 : vector<32x256xf32>, i32 -> vector<32x256xf32>
    %41 = arith.maximumf %39, %40 : vector<32x256xf32>
    %42 = tpu.iota {dimensions = array<i32: 0>} : vector<32x256xi32>
    %c16_i32_14 = arith.constant 16 : i32
    %c0_i32_15 = arith.constant 0 : i32
    %43 = arith.cmpi eq, %c16_i32_14, %c0_i32_15 : i32
    %c1_i32_16 = arith.constant 1 : i32
    %44 = arith.select %43, %c1_i32_16, %c16_i32_14 : i32
    %45 = vector.broadcast %44 : i32 to vector<32x256xi32>
    %46 = arith.remsi %42, %45 : vector<32x256xi32>
    %c0_i32_17 = arith.constant 0 : i32
    %47 = vector.broadcast %c0_i32_17 : i32 to vector<32x256xi32>
    %48 = arith.cmpi ne, %46, %47 : vector<32x256xi32>
    %c0_i32_18 = arith.constant 0 : i32
    %49 = vector.broadcast %c0_i32_18 : i32 to vector<32x256xi32>
    %50 = arith.cmpi slt, %46, %49 : vector<32x256xi32>
    %c0_i32_19 = arith.constant 0 : i32
    %51 = arith.cmpi slt, %44, %c0_i32_19 : i32
    %52 = vector.broadcast %51 : i1 to vector<32x256xi1>
    %53 = vector.broadcast %52 : vector<32x256xi1> to vector<32x256xi1>
    %54 = arith.xori %50, %53 : vector<32x256xi1>
    %55 = arith.andi %54, %48 : vector<32x256xi1>
    %56 = vector.broadcast %44 : i32 to vector<32x256xi32>
    %57 = arith.addi %46, %56 : vector<32x256xi32>
    %58 = arith.select %55, %57, %46 : vector<32x256xi1>, vector<32x256xi32>
    %c2_i32 = arith.constant 2 : i32
    %59 = vector.broadcast %c2_i32 : i32 to vector<32x256xi32>
    %60 = arith.cmpi sge, %58, %59 : vector<32x256xi32>
    %c2_i32_20 = arith.constant 2 : i32
    %61 = tpu.dynamic_rotate %41 by %c2_i32_20 dim 0 : vector<32x256xf32>, i32 -> vector<32x256xf32>
    %cst_21 = arith.constant 0.000000e+00 : f32
    %62 = vector.broadcast %cst_21 : f32 to vector<32x256xf32>
    %63 = arith.select %60, %61, %62 : vector<32x256xi1>, vector<32x256xf32>
    %c14_i32 = arith.constant 14 : i32
    %64 = vector.broadcast %c14_i32 : i32 to vector<32x256xi32>
    %65 = arith.cmpi slt, %58, %64 : vector<32x256xi32>
    %c30_i32 = arith.constant 30 : i32
    %66 = tpu.dynamic_rotate %41 by %c30_i32 dim 0 : vector<32x256xf32>, i32 -> vector<32x256xf32>
    %cst_22 = arith.constant 0.000000e+00 : f32
    %67 = vector.broadcast %cst_22 : f32 to vector<32x256xf32>
    %68 = arith.select %65, %66, %67 : vector<32x256xi1>, vector<32x256xf32>
    %69 = tpu.concatenate %63, %41, %68 in 1 : vector<32x256xf32>, vector<32x256xf32>, vector<32x256xf32> -> vector<32x768xf32>
    %70 = arith.truncf %69 : vector<32x768xf32> to vector<32x768xbf16>
    %c0_23 = arith.constant 0 : index
    %c0_24 = arith.constant 0 : index
    %71 = vector.load %arg3[%c0_23, %c0_24] : memref<768x512xbf16, #tpu.memory_space<vmem>>, vector<768x512xbf16>
    %cst_25 = arith.constant dense<0.000000e+00> : vector<32x512xf32>
    %72 = tpu.matmul %70, %71, %cst_25 {dimension_numbers = #tpu.dot_dimension_numbers<[1], [0], [0], [1], [0, 0, 1, 1], [], []>} : vector<32x768xbf16>, vector<768x512xbf16>, vector<32x512xf32> -> vector<32x512xf32>
    %c0_26 = arith.constant 0 : index
    %c0_27 = arith.constant 0 : index
    %73 = vector.load %arg6[%c0_26, %c0_27] : memref<1x512xf32, #tpu.memory_space<vmem>>, vector<1x512xf32>
    %74 = vector.broadcast %73 : vector<1x512xf32> to vector<32x512xf32>
    %75 = arith.addf %72, %74 : vector<32x512xf32>
    %cst_28 = arith.constant 0.000000e+00 : f32
    %76 = vector.broadcast %cst_28 : f32 to vector<32x512xf32>
    %77 = arith.maximumf %75, %76 : vector<32x512xf32>
    %78 = vector.extract_strided_slice %77 {offsets = [0, 0], sizes = [32, 256], strides = [1, 1]} : vector<32x512xf32> to vector<32x256xf32>
    %79 = vector.extract_strided_slice %77 {offsets = [0, 256], sizes = [32, 256], strides = [1, 1]} : vector<32x512xf32> to vector<32x256xf32>
    %80 = arith.maximumf %78, %79 : vector<32x256xf32>
    %c30_i32_29 = arith.constant 30 : i32
    %81 = tpu.dynamic_rotate %80 by %c30_i32_29 dim 0 : vector<32x256xf32>, i32 -> vector<32x256xf32>
    %82 = arith.maximumf %80, %81 : vector<32x256xf32>
    %83 = tpu.iota {dimensions = array<i32: 0>} : vector<32x256xi32>
    %c16_i32_30 = arith.constant 16 : i32
    %c0_i32_31 = arith.constant 0 : i32
    %84 = arith.cmpi eq, %c16_i32_30, %c0_i32_31 : i32
    %c1_i32_32 = arith.constant 1 : i32
    %85 = arith.select %84, %c1_i32_32, %c16_i32_30 : i32
    %86 = vector.broadcast %85 : i32 to vector<32x256xi32>
    %87 = arith.remsi %83, %86 : vector<32x256xi32>
    %c0_i32_33 = arith.constant 0 : i32
    %88 = vector.broadcast %c0_i32_33 : i32 to vector<32x256xi32>
    %89 = arith.cmpi ne, %87, %88 : vector<32x256xi32>
    %c0_i32_34 = arith.constant 0 : i32
    %90 = vector.broadcast %c0_i32_34 : i32 to vector<32x256xi32>
    %91 = arith.cmpi slt, %87, %90 : vector<32x256xi32>
    %c0_i32_35 = arith.constant 0 : i32
    %92 = arith.cmpi slt, %85, %c0_i32_35 : i32
    %93 = vector.broadcast %92 : i1 to vector<32x256xi1>
    %94 = vector.broadcast %93 : vector<32x256xi1> to vector<32x256xi1>
    %95 = arith.xori %91, %94 : vector<32x256xi1>
    %96 = arith.andi %95, %89 : vector<32x256xi1>
    %97 = vector.broadcast %85 : i32 to vector<32x256xi32>
    %98 = arith.addi %87, %97 : vector<32x256xi32>
    %99 = arith.select %96, %98, %87 : vector<32x256xi1>, vector<32x256xi32>
    %c4_i32 = arith.constant 4 : i32
    %100 = vector.broadcast %c4_i32 : i32 to vector<32x256xi32>
    %101 = arith.cmpi sge, %99, %100 : vector<32x256xi32>
    %c4_i32_36 = arith.constant 4 : i32
    %102 = tpu.dynamic_rotate %82 by %c4_i32_36 dim 0 : vector<32x256xf32>, i32 -> vector<32x256xf32>
    %cst_37 = arith.constant 0.000000e+00 : f32
    %103 = vector.broadcast %cst_37 : f32 to vector<32x256xf32>
    %104 = arith.select %101, %102, %103 : vector<32x256xi1>, vector<32x256xf32>
    %c12_i32 = arith.constant 12 : i32
    %105 = vector.broadcast %c12_i32 : i32 to vector<32x256xi32>
    %106 = arith.cmpi slt, %99, %105 : vector<32x256xi32>
    %c28_i32 = arith.constant 28 : i32
    %107 = tpu.dynamic_rotate %82 by %c28_i32 dim 0 : vector<32x256xf32>, i32 -> vector<32x256xf32>
    %cst_38 = arith.constant 0.000000e+00 : f32
    %108 = vector.broadcast %cst_38 : f32 to vector<32x256xf32>
    %109 = arith.select %106, %107, %108 : vector<32x256xi1>, vector<32x256xf32>
    %110 = tpu.concatenate %104, %82, %109 in 1 : vector<32x256xf32>, vector<32x256xf32>, vector<32x256xf32> -> vector<32x768xf32>
    %111 = arith.truncf %110 : vector<32x768xf32> to vector<32x768xbf16>
    %c0_39 = arith.constant 0 : index
    %c0_40 = arith.constant 0 : index
    %112 = vector.load %arg4[%c0_39, %c0_40] : memref<768x512xbf16, #tpu.memory_space<vmem>>, vector<768x512xbf16>
    %cst_41 = arith.constant dense<0.000000e+00> : vector<32x512xf32>
    %113 = tpu.matmul %111, %112, %cst_41 {dimension_numbers = #tpu.dot_dimension_numbers<[1], [0], [0], [1], [0, 0, 1, 1], [], []>} : vector<32x768xbf16>, vector<768x512xbf16>, vector<32x512xf32> -> vector<32x512xf32>
    %c0_42 = arith.constant 0 : index
    %c0_43 = arith.constant 0 : index
    %114 = vector.load %arg7[%c0_42, %c0_43] : memref<1x512xf32, #tpu.memory_space<vmem>>, vector<1x512xf32>
    %115 = vector.broadcast %114 : vector<1x512xf32> to vector<32x512xf32>
    %116 = arith.addf %113, %115 : vector<32x512xf32>
    %cst_44 = arith.constant 0.000000e+00 : f32
    %117 = vector.broadcast %cst_44 : f32 to vector<32x512xf32>
    %118 = arith.maximumf %116, %117 : vector<32x512xf32>
    %c0_45 = arith.constant 0 : index
    %c0_46 = arith.constant 0 : index
    %119 = vector.load %arg8[%c0_45, %c0_46] : memref<2x32xf32, #tpu.memory_space<vmem>>, vector<2x32xf32>
    %cst_47 = arith.constant dense<0.000000e+00> : vector<2x512xf32>
    %120 = tpu.matmul %119, %118, %cst_47 {dimension_numbers = #tpu.dot_dimension_numbers<[1], [0], [0], [1], [0, 0, 1, 1], [], []>} : vector<2x32xf32>, vector<32x512xf32>, vector<2x512xf32> -> vector<2x512xf32>
    %c0_48 = arith.constant 0 : index
    %c0_49 = arith.constant 0 : index
    %121 = vector.load %arg9[%c0_48, %c0_49] : memref<512x128xf32, #tpu.memory_space<vmem>>, vector<512x128xf32>
    %cst_50 = arith.constant dense<0.000000e+00> : vector<2x128xf32>
    %122 = tpu.matmul %120, %121, %cst_50 {dimension_numbers = #tpu.dot_dimension_numbers<[1], [0], [0], [1], [0, 0, 1, 1], [], []>} : vector<2x512xf32>, vector<512x128xf32>, vector<2x128xf32> -> vector<2x128xf32>
    %c0_51 = arith.constant 0 : index
    %c0_52 = arith.constant 0 : index
    %123 = vector.load %arg10[%c0_51, %c0_52] : memref<1x128xf32, #tpu.memory_space<vmem>>, vector<1x128xf32>
    %124 = vector.broadcast %123 : vector<1x128xf32> to vector<2x128xf32>
    %125 = arith.addf %122, %124 : vector<2x128xf32>
    %cst_53 = arith.constant 0.000000e+00 : f32
    %126 = vector.broadcast %cst_53 : f32 to vector<2x128xf32>
    %127 = arith.maximumf %125, %126 : vector<2x128xf32>
    %c0_54 = arith.constant 0 : index
    %c0_55 = arith.constant 0 : index
    %128 = vector.load %arg11[%c0_54, %c0_55] : memref<128x128xf32, #tpu.memory_space<vmem>>, vector<128x128xf32>
    %cst_56 = arith.constant dense<0.000000e+00> : vector<2x128xf32>
    %129 = tpu.matmul %127, %128, %cst_56 {dimension_numbers = #tpu.dot_dimension_numbers<[1], [0], [0], [1], [0, 0, 1, 1], [], []>} : vector<2x128xf32>, vector<128x128xf32>, vector<2x128xf32> -> vector<2x128xf32>
    %c0_57 = arith.constant 0 : index
    %c0_58 = arith.constant 0 : index
    %130 = vector.load %arg12[%c0_57, %c0_58] : memref<1x128xf32, #tpu.memory_space<vmem>>, vector<1x128xf32>
    %131 = vector.broadcast %130 : vector<1x128xf32> to vector<2x128xf32>
    %132 = arith.addf %129, %131 : vector<2x128xf32>
    %c0_59 = arith.constant 0 : index
    %c0_60 = arith.constant 0 : index
    %133 = vector.load %arg13[%c0_59, %c0_60] : memref<2x128xf32, #tpu.memory_space<vmem>>, vector<2x128xf32>
    tpu.vector_store %arg13[%c0_59, %c0_60], %132 {strides = array<i32>} : memref<2x128xf32, #tpu.memory_space<vmem>>, vector<2x128xf32>,
    %134 = arith.mulf %127, %127 : vector<2x128xf32>
    %cst_61 = arith.constant dense<0.000000e+00> : vector<2xf32>
    %135 = vector.multi_reduction <add>, %134, %cst_61 [1] : vector<2x128xf32> to vector<2xf32>
    %136 = vector.shape_cast %135 : vector<2xf32> to vector<2x1xf32>
    %cst_62 = arith.constant 1.000000e-24 : f32
    %137 = vector.broadcast %cst_62 : f32 to vector<2x1xf32>
    %138 = arith.maximumf %136, %137 : vector<2x1xf32>
    %139 = math.rsqrt %138 : vector<2x1xf32>
    %140 = vector.broadcast %139 : vector<2x1xf32> to vector<2x128xf32>
    %141 = arith.mulf %127, %140 : vector<2x128xf32>
    %c0_63 = arith.constant 0 : index
    %c0_64 = arith.constant 0 : index
    %142 = vector.load %arg14[%c0_63, %c0_64] : memref<2x128xf32, #tpu.memory_space<vmem>>, vector<2x128xf32>
    tpu.vector_store %arg14[%c0_63, %c0_64], %141 {strides = array<i32>} : memref<2x128xf32, #tpu.memory_space<vmem>>, vector<2x128xf32>,
    return
  }
  func.func @transform_0(%arg0: i32) -> (i32, i32) {
    %c0_i32 = arith.constant 0 : i32
    %c0_i32_0 = arith.constant 0 : i32
    return %arg0, %c0_i32 : i32, i32
  }
  func.func @transform_1(%arg0: i32) -> (i32, i32) {
    %c0_i32 = arith.constant 0 : i32
    %c0_i32_0 = arith.constant 0 : i32
    %c0_i32_1 = arith.constant 0 : i32
    return %c0_i32, %c0_i32_0 : i32, i32
  }
  func.func @transform_2(%arg0: i32) -> (i32, i32) {
    %c0_i32 = arith.constant 0 : i32
    %c0_i32_0 = arith.constant 0 : i32
    %c0_i32_1 = arith.constant 0 : i32
    return %c0_i32, %c0_i32_0 : i32, i32
  }
  func.func @transform_3(%arg0: i32) -> (i32, i32) {
    %c0_i32 = arith.constant 0 : i32
    %c0_i32_0 = arith.constant 0 : i32
    %c0_i32_1 = arith.constant 0 : i32
    return %c0_i32, %c0_i32_0 : i32, i32
  }
  func.func @transform_4(%arg0: i32) -> (i32, i32) {
    %c0_i32 = arith.constant 0 : i32
    %c0_i32_0 = arith.constant 0 : i32
    %c0_i32_1 = arith.constant 0 : i32
    return %c0_i32, %c0_i32_0 : i32, i32
  }
  func.func @transform_5(%arg0: i32) -> (i32, i32) {
    %c0_i32 = arith.constant 0 : i32
    %c0_i32_0 = arith.constant 0 : i32
    %c0_i32_1 = arith.constant 0 : i32
    return %c0_i32, %c0_i32_0 : i32, i32
  }
  func.func @transform_6(%arg0: i32) -> (i32, i32) {
    %c0_i32 = arith.constant 0 : i32
    %c0_i32_0 = arith.constant 0 : i32
    %c0_i32_1 = arith.constant 0 : i32
    return %c0_i32, %c0_i32_0 : i32, i32
  }
  func.func @transform_7(%arg0: i32) -> (i32, i32) {
    %c0_i32 = arith.constant 0 : i32
    %c0_i32_0 = arith.constant 0 : i32
    %c0_i32_1 = arith.constant 0 : i32
    return %c0_i32, %c0_i32_0 : i32, i32
  }
  func.func @transform_8(%arg0: i32) -> (i32, i32) {
    %c0_i32 = arith.constant 0 : i32
    %c0_i32_0 = arith.constant 0 : i32
    %c0_i32_1 = arith.constant 0 : i32
    return %c0_i32, %c0_i32_0 : i32, i32
  }
  func.func @transform_9(%arg0: i32) -> (i32, i32) {
    %c0_i32 = arith.constant 0 : i32
    %c0_i32_0 = arith.constant 0 : i32
    %c0_i32_1 = arith.constant 0 : i32
    return %c0_i32, %c0_i32_0 : i32, i32
  }
  func.func @transform_10(%arg0: i32) -> (i32, i32) {
    %c0_i32 = arith.constant 0 : i32
    %c0_i32_0 = arith.constant 0 : i32
    %c0_i32_1 = arith.constant 0 : i32
    return %c0_i32, %c0_i32_0 : i32, i32
  }
  func.func @transform_11(%arg0: i32) -> (i32, i32) {
    %c0_i32 = arith.constant 0 : i32
    %c0_i32_0 = arith.constant 0 : i32
    %c0_i32_1 = arith.constant 0 : i32
    return %c0_i32, %c0_i32_0 : i32, i32
  }
  func.func @transform_12(%arg0: i32) -> (i32, i32) {
    %c0_i32 = arith.constant 0 : i32
    %c0_i32_0 = arith.constant 0 : i32
    return %arg0, %c0_i32 : i32, i32
  }
  func.func @transform_13(%arg0: i32) -> (i32, i32) {
    %c0_i32 = arith.constant 0 : i32
    %c0_i32_0 = arith.constant 0 : i32
    return %arg0, %c0_i32 : i32, i32
  }
}

</mosaic_0001>

<bundles_post_ra>
// kernel: face_classifier_forward.1
= control target key start
LH: loop header
LB: loop body
LE: loop exit
PB: predicated region body
PF: predicated region fallthrough
CT: control target
= control target key end

     0   :  { %19 = vsyncpa [#allocation3], 0  ;;  %s7189_s0 = inlined_call_operand.vmem [shape: f32[32,128], index: 0, kind: input, shape index: {}]   ;;  %s7190_s1 = inlined_call_operand.hbm [shape: bf16[384,512], index: 1, kind: input, shape index: {}]   ;;  %s7191_s2 = inlined_call_operand.hbm [shape: bf16[768,512], index: 2, kind: input, shape index: {}]   ;;  %s7192_s3 = inlined_call_operand.hbm [shape: bf16[768,512], index: 3, kind: input, shape index: {}]   ;;  %s7193_s4 = inlined_call_operand.vmem [shape: f32[1,512], index: 4, kind: input, shape index: {}]   ;;  %s7194_s5 = inlined_call_operand.vmem [shape: f32[1,512], index: 5, kind: input, shape index: {}]   ;;  %s7195_s6 = inlined_call_operand.vmem [shape: f32[1,512], index: 6, kind: input, shape index: {}]   ;;  %s7196_s7 = inlined_call_operand.vmem [shape: f32[2,32], index: 7, kind: input, shape index: {}]   ;;  %s7197_s8 = inlined_call_operand.hbm [shape: f32[512,128], index: 8, kind: input, shape index: {}]   ;;  %s7198_s9 = inlined_call_operand.vmem [shape: f32[1,128], index: 9, kind: input, shape index: {}]   ;;  %s7199_s10 = inlined_call_operand.vmem [shape: f32[128,128], index: 10, kind: input, shape index: {}]   ;;  %s7200_s11 = inlined_call_operand.vmem [shape: f32[1,128], index: 11, kind: input, shape index: {}]   ;;  %s7201_s12 = inlined_call_operand.hbm [shape: f32[2,128], index: 12, kind: output, shape index: {0}]   ;;  %s7202_s13 = inlined_call_operand.hbm [shape: f32[2,128], index: 13, kind: output, shape index: {1}]  }
   0x1   :  { %20 = vsyncpa [#allocation6], 0 }
   0x2   :  { %21 = vsyncpa [#allocation9], 0 }
   0x3   :  { %22 = vsyncpa [#allocation4], 0 }
   0x4   :  { %23 = vsyncpa [#allocation12], 0  ;;  %s6557_s25 = smov [#allocation5]   ;;  %s6558_s27 = smov [#allocation2]  }
   0x5   :  { %s43_s26 = sshll.u32 %s6557_s25, 4  ;;  %s31_s28 = sshll.u32 %s6558_s27, 4  ;;  %s44_s26 = int_to_ptr.vmem [resolvable:$true] %s43_s26  ;;  %s6642_s28 = int_to_ptr.vmem [resolvable:$true] %s31_s28 }
   0x6   :  { %s6415_s14 = scalar_lea.hbm %s7191_s2, 24576 }
   0x7   :  { %p6416_p0 = scmp.ne.s32.totalorder %s7191_s2, %s6415_s14  ;;  %p6419_p1 = scmp.lt.u32.totalorder %s6415_s14, %s7191_s2 }
   0x9   :  { %p6421_p2 = pnand %p6419_p1, %p6416_p0 }
   0xb   :  { %6424 = shalt.err (!%p6421_p2)
}
   0xc   :  { %s6425_s19 = scalar_lea.vmem %s44_s26, 24576  ;;  %p6430_p4 = scmp.lt.s32.totalorder %s44_s26, %s44_s26 }
   0xd   :  { %p6426_p3 = scmp.ne.s32.totalorder %s44_s26, %s6425_s19  ;;  %p6431_p5 = scmp.lt.s32.totalorder %s6425_s19, %s6425_s19 }
   0xf   :  { %p6432_p6 = por %p6431_p5, %p6430_p4 }
  0x11   :  { %p6433_p7 = pnand %p6432_p6, %p6426_p3 }
  0x13   :  { %6436 = shalt.err (!%p6433_p7)
}
  0x14   :  { %s6559_s20 = smov 256   ;;  %s6560_s21 = smov 16  }
  0x15   :  { %49 = dma.hbm_to_vmem [thread:$0]  %s7191_s2, 24576, %s44_s26, [#allocation6], %s6559_s20, %s6559_s20, %s6560_s21  }
  0x16   :  { %s6437_s27 = scalar_lea.hbm %s7190_s1, 12288 }
  0x17   :  { %p6438_p8 = scmp.ne.s32.totalorder %s7190_s1, %s6437_s27  ;;  %p6441_p9 = scmp.lt.u32.totalorder %s6437_s27, %s7190_s1 }
  0x19   :  { %p6443_p10 = pnand %p6441_p9, %p6438_p8 }
  0x1b   :  { %6446 = shalt.err (!%p6443_p10)
}
  0x1c   :  { %s6447_s16 = scalar_lea.vmem %s6642_s28, 12288  ;;  %p6452_p12 = scmp.lt.s32.totalorder %s6642_s28, %s6642_s28 }
  0x1d   :  { %p6448_p11 = scmp.ne.s32.totalorder %s6642_s28, %s6447_s16  ;;  %p6453_p13 = scmp.lt.s32.totalorder %s6447_s16, %s6447_s16 }
  0x1f   :  { %p6454_p0 = por %p6453_p13, %p6452_p12 }
  0x21   :  { %p6455_p1 = pnand %p6454_p0, %p6448_p11 }
  0x23   :  { %6458 = shalt.err (!%p6455_p1)
}
  0x24   :  { %37 = dma.hbm_to_vmem [thread:$0]  %s7190_s1, 12288, %s6642_s28, [#allocation3], %s6559_s20, %s6559_s20, %s6560_s21  }
  0x25   :  { %s6561_s17 = smov [#allocation7]   ;;  %s6562_s19 = smov [#allocation8]  }
  0x26   :  { %s55_s18 = sshll.u32 %s6561_s17, 4  ;;  %s75_s22 = sshll.u32 %s6562_s19, 4  ;;  %s56_s18 = int_to_ptr.vmem [resolvable:$true] %s55_s18  ;;  %s6679_s22 = int_to_ptr.vmem [resolvable:$true] %s75_s22 }
  0x27   :  { %s6459_s25 = scalar_lea.hbm %s7192_s3, 24576 }
  0x28   :  { %p6460_p2 = scmp.ne.s32.totalorder %s7192_s3, %s6459_s25  ;;  %p6463_p3 = scmp.lt.u32.totalorder %s6459_s25, %s7192_s3 }
  0x2a   :  { %p6465_p4 = pnand %p6463_p3, %p6460_p2 }
  0x2c   :  { %6468 = shalt.err (!%p6465_p4)
}
  0x2d   :  { %s6469_s1 = scalar_lea.vmem %s56_s18, 24576  ;;  %p6474_p6 = scmp.lt.s32.totalorder %s56_s18, %s56_s18 }
  0x2e   :  { %p6470_p5 = scmp.ne.s32.totalorder %s56_s18, %s6469_s1  ;;  %p6475_p7 = scmp.lt.s32.totalorder %s6469_s1, %s6469_s1 }
  0x30   :  { %p6476_p8 = por %p6475_p7, %p6474_p6 }
  0x32   :  { %p6477_p9 = pnand %p6476_p8, %p6470_p5 }
  0x34   :  { %6480 = shalt.err (!%p6477_p9)
}
  0x35   :  { %61 = dma.hbm_to_vmem [thread:$0]  %s7192_s3, 24576, %s56_s18, [#allocation6], %s6559_s20, %s6559_s20, %s6560_s21  }
  0x36   :  { %s6481_s26 = scalar_lea.hbm %s7197_s8, 8192 }
  0x37   :  { %p6482_p10 = scmp.ne.s32.totalorder %s7197_s8, %s6481_s26  ;;  %p6485_p11 = scmp.lt.u32.totalorder %s6481_s26, %s7197_s8 }
  0x39   :  { %p6487_p12 = pnand %p6485_p11, %p6482_p10 }
  0x3b   :  { %6490 = shalt.err (!%p6487_p12)
}
  0x3c   :  { %s6491_s25 = scalar_lea.vmem %s6679_s22, 8192  ;;  %p6496_p0 = scmp.lt.s32.totalorder %s6679_s22, %s6679_s22 }
  0x3d   :  { %p6492_p13 = scmp.ne.s32.totalorder %s6679_s22, %s6491_s25  ;;  %p6497_p1 = scmp.lt.s32.totalorder %s6491_s25, %s6491_s25 }
  0x3f   :  { %p6498_p2 = por %p6497_p1, %p6496_p0 }
  0x41   :  { %p6499_p3 = pnand %p6498_p2, %p6492_p13 }
  0x43   :  { %6502 = shalt.err (!%p6499_p3)
}
  0x44   :  { %s6563_s3 = smov 128   ;;  %s6564_s20 = smov 8  }
  0x45   :  { %81 = dma.hbm_to_vmem [thread:$0]  %s7197_s8, 8192, %s6679_s22, [#allocation9], %s6563_s3, %s6563_s3, %s6564_s20  }
  0x46   :  { %6547 = dma.done.wait [#allocation3], 12288  }
  0x47   :  { %6548 = vsyncadd [#allocation3], 4294955008 }
  0x48   :  { %6549 = dma.done.wait [#allocation6], 49152  }
  0x49   :  { %6550 = vsyncadd [#allocation6], 4294918144 }
  0x4a   :  { %6551 = dma.done.wait [#allocation9], 8192  }
  0x4b   :  { %6552 = vsyncadd [#allocation9], 4294959104  ;;  %v5693_v0 = vld [vmem:[#allocation2 + $0x4] ss:$16 sps:$4 sm:$0xff]   ;;  %v5695_v1 = vld [vmem:[#allocation2 + $0xc] ss:$16 sps:$4 sm:$0xff]   ;;  %v105_v57 = vlaneseq }
  0x4c   :  { %796 = vmatprep.subr.bf16.mxu0 %v5693_v0  ;;  %v5697_v2 = vld [vmem:[#allocation2] ss:$16 sps:$4 sm:$0xff]   ;;  %v5698_v3 = vld [vmem:[#allocation2 + $0x8] ss:$16 sps:$4 sm:$0xff]   ;;  %902 = vmatprep.subr.bf16.mxu1 %v5695_v1  ;;  %v5699_v4 = vld [vmem:[#allocation2 + $0x24] ss:$16 sps:$4 sm:$0xff]  }
  0x4d   :  { %797 = vmatpush1.bf16.msra.mxu0 %v5697_v2  ;;  %903 = vmatpush1.bf16.msra.mxu1 %v5698_v3  ;;  %v5701_v5 = vld [vmem:[#allocation2 + $0x2c] ss:$16 sps:$4 sm:$0xff]   ;;  %v5703_v6 = vld [vmem:[#allocation2 + $0x20] ss:$16 sps:$4 sm:$0xff]   ;;  %v5704_v7 = vld [vmem:[#allocation2 + $0x28] ss:$16 sps:$4 sm:$0xff]  }
  0x4e   :  { %798 = vmatprep.subr.bf16.mxu0 %v5699_v4  ;;  %904 = vmatprep.subr.bf16.mxu1 %v5701_v5  ;;  %v5705_v8 = vld [vmem:[#allocation2 + $0x44] ss:$16 sps:$4 sm:$0xff]   ;;  %v5707_v9 = vld [vmem:[#allocation2 + $0x4c] ss:$16 sps:$4 sm:$0xff]   ;;  %v5709_v10 = vld [vmem:[#allocation2 + $0x40] ss:$16 sps:$4 sm:$0xff]  }
  0x4f   :  { %v5710_v11 = vld [vmem:[#allocation2 + $0x48] ss:$16 sps:$4 sm:$0xff]   ;;  %v5711_v12 = vld [vmem:[#allocation2 + $0x64] ss:$16 sps:$4 sm:$0xff]   ;;  %v5713_v13 = vld [vmem:[#allocation2 + $0x6c] ss:$16 sps:$4 sm:$0xff]  }
  0x50   :  { %v5715_v14 = vld [vmem:[#allocation2 + $0x60] ss:$16 sps:$4 sm:$0xff]   ;;  %v5716_v15 = vld [vmem:[#allocation2 + $0x68] ss:$16 sps:$4 sm:$0xff]   ;;  %v5717_v16 = vld [vmem:[#allocation2 + $0x84] ss:$16 sps:$4 sm:$0xff]  }
  0x51   :  { %799 = vmatpush1.bf16.msra.mxu0 %v5703_v6  ;;  %905 = vmatpush1.bf16.msra.mxu1 %v5704_v7  ;;  %v5719_v17 = vld [vmem:[#allocation2 + $0x8c] ss:$16 sps:$4 sm:$0xff]   ;;  %v5721_v18 = vld [vmem:[#allocation2 + $0x80] ss:$16 sps:$4 sm:$0xff]   ;;  %v5722_v19 = vld [vmem:[#allocation2 + $0x88] ss:$16 sps:$4 sm:$0xff]  }
  0x52   :  { %800 = vmatprep.subr.bf16.mxu0 %v5705_v8  ;;  %906 = vmatprep.subr.bf16.mxu1 %v5707_v9  ;;  %v5723_v20 = vld [vmem:[#allocation2 + $0xa4] ss:$16 sps:$4 sm:$0xff]   ;;  %v5725_v21 = vld [vmem:[#allocation2 + $0xac] ss:$16 sps:$4 sm:$0xff]   ;;  %v5727_v22 = vld [vmem:[#allocation2 + $0xa0] ss:$16 sps:$4 sm:$0xff]  }
  0x53   :  { %v5728_v23 = vld [vmem:[#allocation2 + $0xa8] ss:$16 sps:$4 sm:$0xff]   ;;  %v5729_v24 = vld [vmem:[#allocation2 + $0xc4] ss:$16 sps:$4 sm:$0xff]   ;;  %v5731_v25 = vld [vmem:[#allocation2 + $0xcc] ss:$16 sps:$4 sm:$0xff]  }
  0x54   :  { %v5733_v26 = vld [vmem:[#allocation2 + $0xc0] ss:$16 sps:$4 sm:$0xff]   ;;  %v5734_v27 = vld [vmem:[#allocation2 + $0xc8] ss:$16 sps:$4 sm:$0xff]   ;;  %v5735_v28 = vld [vmem:[#allocation2 + $0xe4] ss:$16 sps:$4 sm:$0xff]  }
  0x55   :  { %801 = vmatpush1.bf16.msra.mxu0 %v5709_v10  ;;  %907 = vmatpush1.bf16.msra.mxu1 %v5710_v11  ;;  %v5737_v29 = vld [vmem:[#allocation2 + $0xec] ss:$16 sps:$4 sm:$0xff]   ;;  %v5739_v30 = vld [vmem:[#allocation2 + $0xe0] ss:$16 sps:$4 sm:$0xff]   ;;  %v5740_v31 = vld [vmem:[#allocation2 + $0xe8] ss:$16 sps:$4 sm:$0xff]  }
  0x56   :  { %802 = vmatprep.subr.bf16.mxu0 %v5711_v12  ;;  %908 = vmatprep.subr.bf16.mxu1 %v5713_v13  ;;  %v5741_v32 = vld [vmem:[#allocation2 + $0x104] ss:$16 sps:$4 sm:$0xff]   ;;  %v5743_v33 = vld [vmem:[#allocation2 + $0x10c] ss:$16 sps:$4 sm:$0xff]   ;;  %v5745_v34 = vld [vmem:[#allocation2 + $0x100] ss:$16 sps:$4 sm:$0xff]  }
  0x57   :  { %v5746_v35 = vld [vmem:[#allocation2 + $0x108] ss:$16 sps:$4 sm:$0xff]   ;;  %v5747_v36 = vld [vmem:[#allocation2 + $0x124] ss:$16 sps:$4 sm:$0xff]   ;;  %v5749_v37 = vld [vmem:[#allocation2 + $0x12c] ss:$16 sps:$4 sm:$0xff]  }
  0x58   :  { %v5751_v38 = vld [vmem:[#allocation2 + $0x120] ss:$16 sps:$4 sm:$0xff]   ;;  %v5752_v39 = vld [vmem:[#allocation2 + $0x128] ss:$16 sps:$4 sm:$0xff]   ;;  %v5753_v40 = vld [vmem:[#allocation2 + $0x144] ss:$16 sps:$4 sm:$0xff]  }
  0x59   :  { %803 = vmatpush1.bf16.msra.mxu0 %v5715_v14  ;;  %909 = vmatpush1.bf16.msra.mxu1 %v5716_v15  ;;  %v5755_v41 = vld [vmem:[#allocation2 + $0x14c] ss:$16 sps:$4 sm:$0xff]   ;;  %v5757_v42 = vld [vmem:[#allocation2 + $0x140] ss:$16 sps:$4 sm:$0xff]   ;;  %v5758_v43 = vld [vmem:[#allocation2 + $0x148] ss:$16 sps:$4 sm:$0xff]  }
  0x5a   :  { %804 = vmatprep.subr.bf16.mxu0 %v5717_v16  ;;  %910 = vmatprep.subr.bf16.mxu1 %v5719_v17  ;;  %v5759_v44 = vld [vmem:[#allocation2 + $0x164] ss:$16 sps:$4 sm:$0xff]   ;;  %v5761_v45 = vld [vmem:[#allocation2 + $0x16c] ss:$16 sps:$4 sm:$0xff]   ;;  %v5763_v48 = vld [vmem:[#allocation2 + $0x160] ss:$16 sps:$4 sm:$0xff]  }
  0x5b   :  { %v6716_v46 = vld [vmem:[%s7189_s0] sm:$0xff]  ;;  %v6721_v47 = vld [vmem:[%s7189_s0 + $0x8] sm:$0xff]  ;;  %v6725_v62 = vshrl.u32 %v105_v57, 7  ;;  %v6730_v63 = vld [vmem:[%s7189_s0 + $0x18] sm:$0xff]  ;;  %vm6565_vm2 = vmmov 1  }
  0x5c   :  { %v5764_v49 = vld [vmem:[#allocation2 + $0x168] ss:$16 sps:$4 sm:$0xff]   ;;  %v5765_v50 = vld [vmem:[#allocation2 + $0x184] ss:$16 sps:$4 sm:$0xff]   ;;  %v193_v51 = vpack.c.bf16 %v6721_v47, %v6716_v46  ;;  %v5767_v52 = vld [vmem:[#allocation2 + $0x18c] ss:$16 sps:$4 sm:$0xff]  }
  0x5d   :  { %805 = vmatpush1.bf16.msra.mxu0 %v5721_v18  ;;  %911 = vmatpush1.bf16.msra.mxu1 %v5722_v19  ;;  %v5769_v53 = vld [vmem:[#allocation2 + $0x180] ss:$16 sps:$4 sm:$0xff]   ;;  %v5770_v54 = vld [vmem:[#allocation2 + $0x188] ss:$16 sps:$4 sm:$0xff]   ;;  %v5771_v55 = vld [vmem:[#allocation2 + $0x1a4] ss:$16 sps:$4 sm:$0xff]  }
  0x5e   :  { %806 = vmatprep.subr.bf16.mxu0 %v5723_v20  ;;  %912 = vmatprep.subr.bf16.mxu1 %v5725_v21  ;;  %v5773_v56 = vld [vmem:[#allocation2 + $0x1ac] ss:$16 sps:$4 sm:$0xff]   ;;  %v5775_v58 = vld [vmem:[#allocation2 + $0x1a0] ss:$16 sps:$4 sm:$0xff]   ;;  %v5776_v59 = vld [vmem:[#allocation2 + $0x1a8] ss:$16 sps:$4 sm:$0xff]  }
  0x5f   :  { %828 = vmatprep.mubr.bf16.mxu0 %v193_v51  ;;  %934 = vmatprep.mubr.bf16.mxu1 %v193_v51  ;;  %v5777_v60 = vld [vmem:[#allocation2 + $0x1c4] ss:$16 sps:$4 sm:$0xff]   ;;  %v5779_v61 = vld [vmem:[#allocation2 + $0x1cc] ss:$16 sps:$4 sm:$0xff]   ;;  %v5781_v0 = vld [vmem:[#allocation2 + $0x1c0] ss:$16 sps:$4 sm:$0xff]  }
  0x60   :  { %v5782_v1 = vld [vmem:[#allocation2 + $0x1c8] ss:$16 sps:$4 sm:$0xff]   ;;  %v5783_v2 = vld [vmem:[#allocation2 + $0x1e4] ss:$16 sps:$4 sm:$0xff]   ;;  %v162_v3 = vrot.slane %v6716_v46, 7  ;;  %v163_v4 = vrot.slane %v6721_v47, 7 }
  0x61   :  { %807 = vmatpush1.bf16.msra.mxu0 %v5727_v22  ;;  %913 = vmatpush1.bf16.msra.mxu1 %v5728_v23  ;;  %v165_v5 = vrot.slane %v6730_v63, 7  ;;  %v5785_v6 = vld [vmem:[#allocation2 + $0x1ec] ss:$16 sps:$4 sm:$0xff]   ;;  %v6736_v7 = vand.u32 15, %v6725_v62  ;;  %vm166_vm0 = vcmp.lt.s32.totalorder %v6725_v62, 1  ;;  %v6747_v14 = vld [vmem:[%s7189_s0 + $0x10] sm:$0xff] }
  0x62   :  { %808 = vmatprep.subr.bf16.mxu0 %v5729_v24  ;;  %914 = vmatprep.subr.bf16.mxu1 %v5731_v25  ;;  %v5787_v8 = vld [vmem:[#allocation2 + $0x1e0] ss:$16 sps:$4 sm:$0xff]   ;;  %v5788_v9 = vld [vmem:[#allocation2 + $0x1e8] ss:$16 sps:$4 sm:$0xff]   ;;  %v5791_v10 = vld [vmem:[#allocation2 + $0x204] ss:$16 sps:$4 sm:$0xff]   ;;  %v169_v12 = vsel %vm166_vm0, %v162_v3, %v163_v4  ;;  %v196_v23 = vpack.c.bf16 %v6730_v63, %v6747_v14 }
  0x63   :  { %v5794_v11 = vld [vmem:[#allocation2 + $0x20c] ss:$16 sps:$4 sm:$0xff]   ;;  %v170_v13 = vsel %vm166_vm0, %v165_v5, %v162_v3  ;;  %vm158_vm1 = vcmp.ge.s32.totalorder %v6736_v7, 1  ;;  %v108_v15 = vadd.s32 16, %v6725_v62  ;;  %v5789_v16 = vld [vmem:[#allocation2 + $0x200] ss:$16 sps:$4 sm:$0xff]  }
  0x64   :  { %v4817_v17 = vpack.c.bf16 %v169_v12, %v170_v13  ;;  %v5792_v18 = vld [vmem:[#allocation2 + $0x208] ss:$16 sps:$4 sm:$0xff]   ;;  %vm4816_vm3 = vmpackc.low %vm6565_vm2, %vm158_vm1  ;;  %v164_v19 = vrot.slane %v6747_v14, 7  ;;  %v5797_v20 = vld [vmem:[#allocation2 + $0x224] ss:$16 sps:$4 sm:$0xff]   ;;  %v181_v57 = vrot.slane %v6747_v14, 1 }
  0x65   :  { %809 = vmatpush1.bf16.msra.mxu0 %v5733_v26  ;;  %915 = vmatpush1.bf16.msra.mxu1 %v5734_v27  ;;  %v5800_v21 = vld [vmem:[#allocation2 + $0x22c] ss:$16 sps:$4 sm:$0xff]   ;;  %v6752_v22 = vand.u32 15, %v108_v15  ;;  %v5795_v24 = vld [vmem:[#allocation2 + $0x220] ss:$16 sps:$4 sm:$0xff]   ;;  %vm183_vm7 = vcmp.lt.s32.totalorder %v6725_v62, 7 }
  0x66   :  { %810 = vmatprep.subr.bf16.mxu0 %v5735_v28  ;;  %916 = vmatprep.subr.bf16.mxu1 %v5737_v29  ;;  %v5798_v25 = vld [vmem:[#allocation2 + $0x228] ss:$16 sps:$4 sm:$0xff]   ;;  %v5803_v26 = vld [vmem:[#allocation2 + $0x244] ss:$16 sps:$4 sm:$0xff]   ;;  %v167_v27 = vsel %vm166_vm0, %v164_v19, %v165_v5  ;;  %v168_v28 = vsel %vm166_vm0, %v163_v4, %v164_v19  ;;  %v5806_v29 = vld [vmem:[#allocation2 + $0x24c] ss:$16 sps:$4 sm:$0xff]  }
  0x67   :  { %vm160_vm4 = vcmp.ge.s32.totalorder %v6752_v22, 1  ;;  %v5830_v51 = vld [vmem:[#allocation2 + $0x2cc] ss:$16 sps:$4 sm:$0xff]   ;;  %v5837_v5 = vld [vmem:[#allocation5] ss:$16 sps:$4 sm:$0xff]   ;;  %vm1068_vm11 = vcmp.lt.s32.totalorder %v6725_v62, 2 }
  0x68   :  { %vm4819_vm5 = vmpackc.low %vm6565_vm2, %vm160_vm4  ;;  %v5843_v12 = vld [vmem:[#allocation5 + $0x20] ss:$16 sps:$4 sm:$0xff]   ;;  %v5846_v13 = vld [vmem:[#allocation5 + $0x28] ss:$16 sps:$4 sm:$0xff]   ;;  %vm1097_vm12 = vcmp.lt.s32.totalorder %v6725_v62, 6  ;;  %vm1056_vm13 = vcmp.ge.s32.totalorder %v6736_v7, 2 }
  0x69   :  { %811 = vmatpush1.bf16.msra.mxu0 %v5739_v30  ;;  %917 = vmatpush1.bf16.msra.mxu1 %v5740_v31  ;;  %v5801_v30 = vld [vmem:[#allocation2 + $0x240] ss:$16 sps:$4 sm:$0xff]   ;;  %v5804_v31 = vld [vmem:[#allocation2 + $0x248] ss:$16 sps:$4 sm:$0xff]   ;;  %v5851_v15 = vld [vmem:[#allocation5 + $0x44] ss:$16 sps:$4 sm:$0xff]  }
  0x6a   :  { %812 = vmatprep.subr.bf16.mxu0 %v5741_v32  ;;  %918 = vmatprep.subr.bf16.mxu1 %v5743_v33  ;;  %v5809_v32 = vld [vmem:[#allocation2 + $0x264] ss:$16 sps:$4 sm:$0xff]   ;;  %v4820_v33 = vpack.c.bf16 %v167_v27, %v168_v28  ;;  %v5852_v19 = vld [vmem:[#allocation5 + $0x48] ss:$16 sps:$4 sm:$0xff]   ;;  %v5861_v27 = vld [vmem:[#allocation5 + $0x80] ss:$16 sps:$4 sm:$0xff]  }
  0x6b   :  { %v5864_v28 = vld [vmem:[#allocation5 + $0x88] ss:$16 sps:$4 sm:$0xff]   ;;  %vm1058_vm14 = vcmp.ge.s32.totalorder %v6752_v22, 2  ;;  %vm6895_vm15 = vmpackc.low %vm6565_vm2, %vm1056_vm13 }
  0x6c   :  { %vm6922_vm0 = vmpackc.low %vm6565_vm2, %vm1058_vm14 }
  0x6d   :  { %813 = vmatpush1.bf16.msra.mxu0 %v5745_v34  ;;  %919 = vmatpush1.bf16.msra.mxu1 %v5746_v35  ;;  %v5812_v34 = vld [vmem:[#allocation2 + $0x26c] ss:$16 sps:$4 sm:$0xff]   ;;  %v5807_v35 = vld [vmem:[#allocation2 + $0x260] ss:$16 sps:$4 sm:$0xff]  }
  0x6e   :  { %814 = vmatprep.subr.bf16.mxu0 %v5747_v36  ;;  %920 = vmatprep.subr.bf16.mxu1 %v5749_v37  ;;  %v5810_v36 = vld [vmem:[#allocation2 + $0x268] ss:$16 sps:$4 sm:$0xff]   ;;  %v5815_v37 = vld [vmem:[#allocation2 + $0x284] ss:$16 sps:$4 sm:$0xff]  }
  0x71   :  { %815 = vmatpush1.bf16.msra.mxu0 %v5751_v38  ;;  %921 = vmatpush1.bf16.msra.mxu1 %v5752_v39  ;;  %v5818_v38 = vld [vmem:[#allocation2 + $0x28c] ss:$16 sps:$4 sm:$0xff]   ;;  %v6566_v39 = vmov 0  }
  0x72   :  { %816 = vmatprep.subr.bf16.mxu0 %v5753_v40  ;;  %922 = vmatprep.subr.bf16.mxu1 %v5755_v41  ;;  %v107_v40 = vadd.s32 8, %v6725_v62  ;;  %v5813_v41 = vld [vmem:[#allocation2 + $0x280] ss:$16 sps:$4 sm:$0xff]  }
  0x75   :  { %817 = vmatpush1.bf16.msra.mxu0 %v5757_v42  ;;  %923 = vmatpush1.bf16.msra.mxu1 %v5758_v43  ;;  %v5816_v42 = vld [vmem:[#allocation2 + $0x288] ss:$16 sps:$4 sm:$0xff]   ;;  %v5821_v43 = vld [vmem:[#allocation2 + $0x2a4] ss:$16 sps:$4 sm:$0xff]  }
  0x76   :  { %818 = vmatprep.subr.bf16.mxu0 %v5759_v44  ;;  %924 = vmatprep.subr.bf16.mxu1 %v5761_v45  ;;  %v5824_v44 = vld [vmem:[#allocation2 + $0x2ac] ss:$16 sps:$4 sm:$0xff]   ;;  %v6765_v45 = vand.u32 15, %v107_v40  ;;  %v5882_v40 = vld [vmem:[#allocation5 + $0xe8] ss:$16 sps:$4 sm:$0xff]  }
  0x78   :  { %vm176_vm6 = vcmp.lt.s32.totalorder %v6765_v45, 15  ;;  %vm1086_vm1 = vcmp.lt.s32.totalorder %v6765_v45, 14 }
  0x79   :  { %819 = vmatpush1.bf16.msra.mxu0 %v5763_v48  ;;  %925 = vmatpush1.bf16.msra.mxu1 %v5764_v49  ;;  %v5819_v48 = vld [vmem:[#allocation2 + $0x2a0] ss:$16 sps:$4 sm:$0xff]   ;;  %v5822_v49 = vld [vmem:[#allocation2 + $0x2a8] ss:$16 sps:$4 sm:$0xff]   ;;  %vm6778_vm8 = vmpackc.low %vm176_vm6, %vm6565_vm2  ;;  %vm2678_vm6 = vcmp.lt.s32.totalorder %v6725_v62, 4 }
  0x7a   :  { %820 = vmatprep.subr.bf16.mxu0 %v5765_v50  ;;  %926 = vmatprep.subr.bf16.mxu1 %v5767_v52  ;;  %v5827_v50 = vld [vmem:[#allocation2 + $0x2c4] ss:$16 sps:$4 sm:$0xff]   ;;  %v109_v52 = vadd.s32 24, %v6725_v62 }
  0x7d   :  { %821 = vmatpush1.bf16.msra.mxu0 %v5769_v53  ;;  %927 = vmatpush1.bf16.msra.mxu1 %v5770_v54  ;;  %v179_v53 = vrot.slane %v6716_v46, 1  ;;  %v5825_v54 = vld [vmem:[#allocation2 + $0x2c0] ss:$16 sps:$4 sm:$0xff]  }
  0x7e   :  { %822 = vmatprep.subr.bf16.mxu0 %v5771_v55  ;;  %928 = vmatprep.subr.bf16.mxu1 %v5773_v56  ;;  %v5828_v55 = vld [vmem:[#allocation2 + $0x2c8] ss:$16 sps:$4 sm:$0xff]   ;;  %v180_v56 = vrot.slane %v6721_v47, 1  ;;  %v5839_v47 = vld [vmem:[#allocation5 + $0x4] ss:$16 sps:$4 sm:$0xff]  }
  0x7f   :  { %v5909_v46 = vld [vmem:[#allocation5 + $0x180] ss:$16 sps:$4 sm:$0xff]  }
  0x80   :  { %v185_v3 = vsel %vm183_vm7, %v180_v56, %v181_v57 }
  0x81   :  { %823 = vmatpush1.bf16.msra.mxu0 %v5775_v58  ;;  %929 = vmatpush1.bf16.msra.mxu1 %v5776_v59  ;;  %v5833_v58 = vld [vmem:[#allocation2 + $0x2e4] ss:$16 sps:$4 sm:$0xff]   ;;  %v5836_v59 = vld [vmem:[#allocation2 + $0x2ec] ss:$16 sps:$4 sm:$0xff]  }
  0x82   :  { %824 = vmatprep.subr.bf16.mxu0 %v5777_v60  ;;  %930 = vmatprep.subr.bf16.mxu1 %v5779_v61  ;;  %v6773_v60 = vand.u32 15, %v109_v52  ;;  %v5831_v61 = vld [vmem:[#allocation2 + $0x2e0] ss:$16 sps:$4 sm:$0xff]   ;;  %v5899_v52 = vld [vmem:[#allocation5 + $0x144] ss:$16 sps:$4 sm:$0xff]  }
  0x84   :  { %vm178_vm9 = vcmp.lt.s32.totalorder %v6773_v60, 15  ;;  %vm1088_vm4 = vcmp.lt.s32.totalorder %v6773_v60, 14  ;;  %vm2698_vm13 = vcmp.lt.s32.totalorder %v6773_v60, 12  ;;  %v6567_v60 = vmov 0.0  }
  0x85   :  { %825 = vmatpush1.bf16.msra.mxu0 %v5781_v0  ;;  %931 = vmatpush1.bf16.msra.mxu1 %v5782_v1  ;;  %v5834_v0 = vld [vmem:[#allocation2 + $0x2e8] ss:$16 sps:$4 sm:$0xff]   ;;  %v5842_v1 = vld [vmem:[#allocation5 + $0xc] ss:$16 sps:$4 sm:$0xff]   ;;  %vm6789_vm10 = vmpackc.low %vm178_vm9, %vm6565_vm2  ;;  %vm2668_vm9 = vcmp.ge.s32.totalorder %v6752_v22, 4 }
  0x86   :  { %826 = vmatprep.subr.bf16.mxu0 %v5783_v2  ;;  %932 = vmatprep.subr.bf16.mxu1 %v5785_v6  ;;  %v186_v2 = vsel %vm183_vm7, %v179_v53, %v180_v56  ;;  %v5840_v6 = vld [vmem:[#allocation5 + $0x8] ss:$16 sps:$4 sm:$0xff]   ;;  %v5905_v56 = vld [vmem:[#allocation5 + $0x164] ss:$16 sps:$4 sm:$0xff]   ;;  %v6232_v22 = vld [vmem:[#allocation7 + $0x22c] ss:$16 sps:$4 sm:$0xff]  }
  0x87   :  { %v4823_v4 = vpack.c.bf16 %v185_v3, %v186_v2  ;;  %v5920_v2 = vld [vmem:[#allocation5 + $0x1ac] ss:$16 sps:$4 sm:$0xff]   ;;  %v5915_v3 = vld [vmem:[#allocation5 + $0x1a0] ss:$16 sps:$4 sm:$0xff]   ;;  %vm5290_vm14 = vmpackc.low %vm2698_vm13, %vm6565_vm2 }
  0x89   :  { %827 = vmatpush1.bf16.msra.mxu0 %v5787_v8  ;;  %933 = vmatpush1.bf16.msra.mxu1 %v5788_v9  ;;  %v182_v8 = vrot.slane %v6730_v63, 1  ;;  %v5924_v9 = vld [vmem:[#allocation5 + $0x1c8] ss:$16 sps:$4 sm:$0xff]  }
  0x8a   :  { %849 = vmatprep.subr.bf16.mxu0 %v5791_v10  ;;  %955 = vmatprep.subr.bf16.mxu1 %v5794_v11  ;;  %v5845_v10 = vld [vmem:[#allocation5 + $0x24] ss:$16 sps:$4 sm:$0xff]   ;;  %v5848_v11 = vld [vmem:[#allocation5 + $0x2c] ss:$16 sps:$4 sm:$0xff]  }
  0x8b   :  { %v184_v63 = vsel %vm183_vm7, %v181_v57, %v182_v8  ;;  %v187_v14 = vsel %vm183_vm7, %v182_v8, %v179_v53  ;;  %v5902_v53 = vld [vmem:[#allocation5 + $0x14c] ss:$16 sps:$4 sm:$0xff]   ;;  %v5921_v8 = vld [vmem:[#allocation5 + $0x1c0] ss:$16 sps:$4 sm:$0xff]  }
  0x8c   :  { %4818 = vmatmul.mubr.msk.bf16.vlgmr.msra.gmra.mrb[0].mxu0 %vm4816_vm3, %v4817_v17  ;;  %4830 = vmatmul.mubr.msk.bf16.vlgmr.msra.gmra.mrb[0].mxu1 %vm4816_vm3, %v4817_v17  ;;  %v4826_v17 = vpack.c.bf16 %v187_v14, %v184_v63  ;;  %v5908_v57 = vld [vmem:[#allocation5 + $0x16c] ss:$16 sps:$4 sm:$0xff]   ;;  %v5935_v63 = vld [vmem:[#allocation5 + $0x204] ss:$16 sps:$4 sm:$0xff]   ;;  %vm6950_vm3 = vmpackc.low %vm1086_vm1, %vm6565_vm2 }
  0x8d   :  { %850 = vmatpush1.bf16.msra.mxu0 %v5789_v16  ;;  %956 = vmatpush1.bf16.msra.mxu1 %v5792_v18  ;;  %v5854_v16 = vld [vmem:[#allocation5 + $0x4c] ss:$16 sps:$4 sm:$0xff]   ;;  %v5849_v18 = vld [vmem:[#allocation5 + $0x40] ss:$16 sps:$4 sm:$0xff]  }
  0x8e   :  { %851 = vmatprep.subr.bf16.mxu0 %v5797_v20  ;;  %957 = vmatprep.subr.bf16.mxu1 %v5800_v21  ;;  %v5857_v20 = vld [vmem:[#allocation5 + $0x64] ss:$16 sps:$4 sm:$0xff]   ;;  %v5860_v21 = vld [vmem:[#allocation5 + $0x6c] ss:$16 sps:$4 sm:$0xff]  }
  0x8f   :  { %838 = vmatprep.mubr.bf16.mxu0 %v196_v23  ;;  %944 = vmatprep.mubr.bf16.mxu1 %v196_v23  ;;  %v5855_v23 = vld [vmem:[#allocation5 + $0x60] ss:$16 sps:$4 sm:$0xff]   ;;  %v5938_v14 = vld [vmem:[#allocation5 + $0x20c] ss:$16 sps:$4 sm:$0xff]  }
  0x91   :  { %852 = vmatpush1.bf16.msra.mxu0 %v5795_v24  ;;  %958 = vmatpush1.bf16.msra.mxu1 %v5798_v25  ;;  %v5858_v24 = vld [vmem:[#allocation5 + $0x68] ss:$16 sps:$4 sm:$0xff]   ;;  %v5863_v25 = vld [vmem:[#allocation5 + $0x84] ss:$16 sps:$4 sm:$0xff]  }
  0x92   :  { %853 = vmatprep.subr.bf16.mxu0 %v5803_v26  ;;  %959 = vmatprep.subr.bf16.mxu1 %v5806_v29  ;;  %v5866_v26 = vld [vmem:[#allocation5 + $0x8c] ss:$16 sps:$4 sm:$0xff]   ;;  %v5869_v29 = vld [vmem:[#allocation5 + $0xa4] ss:$16 sps:$4 sm:$0xff]  }
  0x94   :  { %4821 = vmatmul.mubr.msk.bf16.gmra.mrb[4].mxu0 %vm4819_vm5, %v4820_v33  ;;  %4833 = vmatmul.mubr.msk.bf16.gmra.mrb[4].mxu1 %vm4819_vm5, %v4820_v33  ;;  %v5875_v33 = vld [vmem:[#allocation5 + $0xc4] ss:$16 sps:$4 sm:$0xff]   ;;  %vm6964_vm5 = vmpackc.low %vm1088_vm4, %vm6565_vm2 }
  0x95   :  { %854 = vmatpush1.bf16.msra.mxu0 %v5801_v30  ;;  %960 = vmatpush1.bf16.msra.mxu1 %v5804_v31  ;;  %v5872_v30 = vld [vmem:[#allocation5 + $0xac] ss:$16 sps:$4 sm:$0xff]   ;;  %v5867_v31 = vld [vmem:[#allocation5 + $0xa0] ss:$16 sps:$4 sm:$0xff]  }
  0x96   :  { %855 = vmatprep.subr.bf16.mxu0 %v5809_v32  ;;  %961 = vmatprep.subr.bf16.mxu1 %v5812_v34  ;;  %v5870_v32 = vld [vmem:[#allocation5 + $0xa8] ss:$16 sps:$4 sm:$0xff]   ;;  %v5878_v34 = vld [vmem:[#allocation5 + $0xcc] ss:$16 sps:$4 sm:$0xff]  }
  0x97   :  { %881 = vmatprep.mubr.bf16.mxu0 %v6566_v39  ;;  %987 = vmatprep.mubr.bf16.mxu1 %v6566_v39 }
  0x99   :  { %856 = vmatpush1.bf16.msra.mxu0 %v5807_v35  ;;  %962 = vmatpush1.bf16.msra.mxu1 %v5810_v36  ;;  %v5873_v35 = vld [vmem:[#allocation5 + $0xc0] ss:$16 sps:$4 sm:$0xff]   ;;  %v5876_v36 = vld [vmem:[#allocation5 + $0xc8] ss:$16 sps:$4 sm:$0xff]  }
  0x9a   :  { %857 = vmatprep.subr.bf16.mxu0 %v5815_v37  ;;  %963 = vmatprep.subr.bf16.mxu1 %v5818_v38  ;;  %v5881_v37 = vld [vmem:[#allocation5 + $0xe4] ss:$16 sps:$4 sm:$0xff]   ;;  %v5884_v38 = vld [vmem:[#allocation5 + $0xec] ss:$16 sps:$4 sm:$0xff]  }
  0x9d   :  { %858 = vmatpush1.bf16.msra.mxu0 %v5813_v41  ;;  %964 = vmatpush1.bf16.msra.mxu1 %v5816_v42  ;;  %v5887_v41 = vld [vmem:[#allocation5 + $0x104] ss:$16 sps:$4 sm:$0xff]   ;;  %v5890_v42 = vld [vmem:[#allocation5 + $0x10c] ss:$16 sps:$4 sm:$0xff]  }
  0x9e   :  { %859 = vmatprep.subr.bf16.mxu0 %v5821_v43  ;;  %965 = vmatprep.subr.bf16.mxu1 %v5824_v44  ;;  %v5885_v43 = vld [vmem:[#allocation5 + $0x100] ss:$16 sps:$4 sm:$0xff]   ;;  %v5888_v44 = vld [vmem:[#allocation5 + $0x108] ss:$16 sps:$4 sm:$0xff]  }
  0xa1   :  { %860 = vmatpush1.bf16.msra.mxu0 %v5819_v48  ;;  %966 = vmatpush1.bf16.msra.mxu1 %v5822_v49  ;;  %v5893_v48 = vld [vmem:[#allocation5 + $0x124] ss:$16 sps:$4 sm:$0xff]   ;;  %v5896_v49 = vld [vmem:[#allocation5 + $0x12c] ss:$16 sps:$4 sm:$0xff]  }
  0xa2   :  { %861 = vmatprep.subr.bf16.mxu0 %v5827_v50  ;;  %967 = vmatprep.subr.bf16.mxu1 %v5830_v51  ;;  %v5891_v50 = vld [vmem:[#allocation5 + $0x120] ss:$16 sps:$4 sm:$0xff]   ;;  %v5894_v51 = vld [vmem:[#allocation5 + $0x128] ss:$16 sps:$4 sm:$0xff]  }
  0xa5   :  { %862 = vmatpush1.bf16.msra.mxu0 %v5825_v54  ;;  %968 = vmatpush1.bf16.msra.mxu1 %v5828_v55  ;;  %v5897_v54 = vld [vmem:[#allocation5 + $0x140] ss:$16 sps:$4 sm:$0xff]   ;;  %v5900_v55 = vld [vmem:[#allocation5 + $0x148] ss:$16 sps:$4 sm:$0xff]  }
  0xa6   :  { %863 = vmatprep.subr.bf16.mxu0 %v5833_v58  ;;  %969 = vmatprep.subr.bf16.mxu1 %v5836_v59  ;;  %v5903_v58 = vld [vmem:[#allocation5 + $0x160] ss:$16 sps:$4 sm:$0xff]   ;;  %v5906_v59 = vld [vmem:[#allocation5 + $0x168] ss:$16 sps:$4 sm:$0xff]  }
  0xa9   :  { %864 = vmatpush1.bf16.msra.mxu0 %v5831_v61  ;;  %970 = vmatpush1.bf16.msra.mxu1 %v5834_v0  ;;  %v5911_v61 = vld [vmem:[#allocation5 + $0x184] ss:$16 sps:$4 sm:$0xff]   ;;  %v5914_v0 = vld [vmem:[#allocation5 + $0x18c] ss:$16 sps:$4 sm:$0xff]  }
  0xaa   :  { %2300 = vmatprep.subr.bf16.mxu0 %v5839_v47  ;;  %2459 = vmatprep.subr.bf16.mxu1 %v5842_v1  ;;  %v5912_v47 = vld [vmem:[#allocation5 + $0x188] ss:$16 sps:$4 sm:$0xff]   ;;  %v5917_v1 = vld [vmem:[#allocation5 + $0x1a4] ss:$16 sps:$4 sm:$0xff]  }
  0xac   :  { %4824 = vmatmul.mubr.msk.bf16.vlgmr.msra.gmra.mrb[0].mxu0 %vm6778_vm8, %v4823_v4  ;;  %4836 = vmatmul.mubr.msk.bf16.vlgmr.msra.gmra.mrb[0].mxu1 %vm6778_vm8, %v4823_v4  ;;  %v5918_v4 = vld [vmem:[#allocation5 + $0x1a8] ss:$16 sps:$4 sm:$0xff]  }
  0xad   :  { %891 = vmatprep.mubr.bf16.mxu0 %v6566_v39  ;;  %997 = vmatprep.mubr.bf16.mxu1 %v6566_v39  ;;  %v5879_v39 = vld [vmem:[#allocation5 + $0xe0] ss:$16 sps:$4 sm:$0xff]  }
  0xae   :  { %2301 = vmatpush1.bf16.msra.mxu0 %v5837_v5  ;;  %2460 = vmatpush1.bf16.msra.mxu1 %v5840_v6  ;;  %v5923_v5 = vld [vmem:[#allocation5 + $0x1c4] ss:$16 sps:$4 sm:$0xff]   ;;  %v5926_v6 = vld [vmem:[#allocation5 + $0x1cc] ss:$16 sps:$4 sm:$0xff]  }
  0xaf   :  { %2302 = vmatprep.subr.bf16.mxu0 %v5845_v10  ;;  %2461 = vmatprep.subr.bf16.mxu1 %v5848_v11  ;;  %v5929_v10 = vld [vmem:[#allocation5 + $0x1e4] ss:$16 sps:$4 sm:$0xff]   ;;  %v5932_v11 = vld [vmem:[#allocation5 + $0x1ec] ss:$16 sps:$4 sm:$0xff]  }
  0xb2   :  { %2303 = vmatpush1.bf16.msra.mxu0 %v5843_v12  ;;  %2462 = vmatpush1.bf16.msra.mxu1 %v5846_v13  ;;  %v5927_v12 = vld [vmem:[#allocation5 + $0x1e0] ss:$16 sps:$4 sm:$0xff]   ;;  %v5930_v13 = vld [vmem:[#allocation5 + $0x1e8] ss:$16 sps:$4 sm:$0xff]  }
  0xb3   :  { %2304 = vmatprep.subr.bf16.mxu0 %v5851_v15  ;;  %2463 = vmatprep.subr.bf16.mxu1 %v5854_v16  ;;  %v6808_v15 = vsub.s32 0, %v6725_v62  ;;  %v6811_v16 = vsub.s32 2, %v6725_v62 }
  0xb4   :  { %4827 = vmatmul.mubr.msk.bf16.gmra.mrb[4].mxu0 %vm6789_vm10, %v4826_v17  ;;  %4839 = vmatmul.mubr.msk.bf16.gmra.mrb[4].mxu1 %vm6789_vm10, %v4826_v17  ;;  %v294_v17 = vld [vmem:[%s7193_s4] sm:$0xf]  ;;  %vm7052_vm10 = vmpackc.low %vm6565_vm2, %vm2668_vm9 }
  0xb6   :  { %2305 = vmatpush1.bf16.msra.mxu0 %v5849_v18  ;;  %2464 = vmatpush1.bf16.msra.mxu1 %v5852_v19  ;;  %v6817_v18 = vsub.s32 1, %v6725_v62  ;;  %v6820_v19 = vsub.s32 3, %v6725_v62  ;;  %v6227_v62 = vld [vmem:[#allocation7 + $0x220] ss:$16 sps:$4 sm:$0xff]  }
  0xb7   :  { %2306 = vmatprep.subr.bf16.mxu0 %v5857_v20  ;;  %2465 = vmatprep.subr.bf16.mxu1 %v5860_v21  ;;  %v299_v20 = vrot.slane %v294_v17, %v6808_v15  ;;  %v307_v21 = vrot.slane %v294_v17, %v6811_v16 }
  0xba   :  { %2307 = vmatpush1.bf16.msra.mxu0 %v5855_v23  ;;  %2466 = vmatpush1.bf16.msra.mxu1 %v5858_v24  ;;  %v303_v23 = vrot.slane %v294_v17, %v6817_v18  ;;  %v311_v24 = vrot.slane %v294_v17, %v6820_v19 }
  0xbb   :  { %2308 = vmatprep.subr.bf16.mxu0 %v5863_v25  ;;  %2467 = vmatprep.subr.bf16.mxu1 %v5866_v26 }
  0xbe   :  { %2309 = vmatpush1.bf16.msra.mxu0 %v5861_v27  ;;  %2468 = vmatpush1.bf16.msra.mxu1 %v5864_v28 }
  0xbf   :  { %2310 = vmatprep.subr.bf16.mxu0 %v5869_v29  ;;  %2469 = vmatprep.subr.bf16.mxu1 %v5872_v30 }
  0xc2   :  { %2311 = vmatpush1.bf16.msra.mxu0 %v5867_v31  ;;  %2470 = vmatpush1.bf16.msra.mxu1 %v5870_v32 }
  0xc3   :  { %2312 = vmatprep.subr.bf16.mxu0 %v5875_v33  ;;  %2471 = vmatprep.subr.bf16.mxu1 %v5878_v34 }
  0xc6   :  { %2313 = vmatpush1.bf16.msra.mxu0 %v5873_v35  ;;  %2472 = vmatpush1.bf16.msra.mxu1 %v5876_v36 }
  0xc7   :  { %2314 = vmatprep.subr.bf16.mxu0 %v5881_v37  ;;  %2473 = vmatprep.subr.bf16.mxu1 %v5884_v38 }
  0xca   :  { %2315 = vmatpush1.bf16.msra.mxu0 %v5879_v39  ;;  %2474 = vmatpush1.bf16.msra.mxu1 %v5882_v40 }
  0xcb   :  { %2316 = vmatprep.subr.bf16.mxu0 %v5887_v41  ;;  %2475 = vmatprep.subr.bf16.mxu1 %v5890_v42 }
  0xce   :  { %2317 = vmatpush1.bf16.msra.mxu0 %v5885_v43  ;;  %2476 = vmatpush1.bf16.msra.mxu1 %v5888_v44 }
  0xcf   :  { %2318 = vmatprep.subr.bf16.mxu0 %v5893_v48  ;;  %2477 = vmatprep.subr.bf16.mxu1 %v5896_v49 }
  0xd2   :  { %2319 = vmatpush1.bf16.msra.mxu0 %v5891_v50  ;;  %2478 = vmatpush1.bf16.msra.mxu1 %v5894_v51 }
  0xd3   :  { %2320 = vmatprep.subr.bf16.mxu0 %v5899_v52  ;;  %2479 = vmatprep.subr.bf16.mxu1 %v5902_v53 }
  0xd6   :  { %2321 = vmatpush1.bf16.msra.mxu0 %v5897_v54  ;;  %2480 = vmatpush1.bf16.msra.mxu1 %v5900_v55 }
  0xd7   :  { %2322 = vmatprep.subr.bf16.mxu0 %v5905_v56  ;;  %2481 = vmatprep.subr.bf16.mxu1 %v5908_v57 }
  0xda   :  { %2323 = vmatpush1.bf16.msra.mxu0 %v5903_v58  ;;  %2482 = vmatpush1.bf16.msra.mxu1 %v5906_v59 }
  0xdb   :  { %2324 = vmatprep.subr.bf16.mxu0 %v5911_v61  ;;  %2483 = vmatprep.subr.bf16.mxu1 %v5914_v0 }
  0xde   :  { %2325 = vmatpush1.bf16.msra.mxu0 %v5909_v46  ;;  %2484 = vmatpush1.bf16.msra.mxu1 %v5912_v47 }
  0xdf   :  { %2326 = vmatprep.subr.bf16.mxu0 %v5917_v1  ;;  %2485 = vmatprep.subr.bf16.mxu1 %v5920_v2 }
  0xe2   :  { %2327 = vmatpush1.bf16.msra.mxu0 %v5915_v3  ;;  %2486 = vmatpush1.bf16.msra.mxu1 %v5918_v4 }
  0xe3   :  { %2328 = vmatprep.subr.bf16.mxu0 %v5923_v5  ;;  %2487 = vmatprep.subr.bf16.mxu1 %v5926_v6 }
  0xe6   :  { %2329 = vmatpush1.bf16.msra.mxu0 %v5921_v8  ;;  %2488 = vmatpush1.bf16.msra.mxu1 %v5924_v9 }
  0xe7   :  { %2330 = vmatprep.subr.bf16.mxu0 %v5929_v10  ;;  %2489 = vmatprep.subr.bf16.mxu1 %v5932_v11 }
  0xea   :  { %2331 = vmatpush1.bf16.msra.mxu0 %v5927_v12  ;;  %2490 = vmatpush1.bf16.msra.mxu1 %v5930_v13 }
  0xeb   :  { %2353 = vmatprep.subr.bf16.mxu0 %v5935_v63  ;;  %2512 = vmatprep.subr.bf16.mxu1 %v5938_v14 }
 0x17f   :  { %v883_v25 = vpop.f32.mrb[0].mxu0  ;;  %v989_v26 = vpop.f32.mrb[0].mxu1 }
 0x180   :  { %v5550_v27 = vadd.f32 %v883_v25, %v299_v20  ;;  %v5558_v28 = vadd.f32 %v989_v26, %v307_v21  ;;  %v885_v29 = vpop.f32.mrb[1].mxu0  ;;  %v991_v30 = vpop.f32.mrb[1].mxu1 }
 0x181   :  { %v5551_v31 = vadd.f32 %v885_v29, %v303_v23  ;;  %v5559_v32 = vadd.f32 %v991_v30, %v311_v24  ;;  %v887_v33 = vpop.f32.mrb[2].mxu0  ;;  %v993_v34 = vpop.f32.mrb[2].mxu1 }
 0x182   :  { %v1008_v35 = vmax.f32 %v5550_v27, 0.0  ;;  %v1010_v36 = vmax.f32 %v5558_v28, 0.0  ;;  %v5552_v37 = vadd.f32 %v887_v33, %v299_v20  ;;  %v5560_v38 = vadd.f32 %v993_v34, %v307_v21  ;;  %v889_v39 = vpop.f32.mrb[3].mxu0  ;;  %v995_v40 = vpop.f32.mrb[3].mxu1 }
 0x183   :  { %v1009_v41 = vmax.f32 %v5551_v31, 0.0  ;;  %v1011_v42 = vmax.f32 %v5559_v32, 0.0  ;;  %v5553_v43 = vadd.f32 %v889_v39, %v303_v23  ;;  %v5561_v44 = vadd.f32 %v995_v40, %v311_v24 }
 0x184   :  { %v6826_v48 = vmax.f32 %v1008_v35, %v1010_v36  ;;  %v1012_v49 = vmax.f32 %v5552_v37, 0.0  ;;  %v1014_v50 = vmax.f32 %v5560_v38, 0.0 }
 0x185   :  { %v6828_v51 = vmax.f32 %v1009_v41, %v1011_v42  ;;  %v1013_v52 = vmax.f32 %v5553_v43, 0.0  ;;  %v1015_v53 = vmax.f32 %v5561_v44, 0.0 }
 0x186   :  { %v1026_v54 = vmax.f32 %v1012_v49, %v1014_v50  ;;  %v1032_v58 = vrot.slane %v6826_v48, 1 }
 0x187   :  { %v1027_v55 = vmax.f32 %v1013_v52, %v1015_v53  ;;  %v893_v56 = vpop.f32.mrb[4].mxu0  ;;  %v999_v57 = vpop.f32.mrb[4].mxu1  ;;  %v1033_v1 = vrot.slane %v6828_v51, 1 }
 0x188   :  { %v1034_v59 = vrot.slane %v1026_v54, 1  ;;  %v5554_v61 = vadd.f32 %v893_v56, %v299_v20  ;;  %v5562_v0 = vadd.f32 %v999_v57, %v307_v21  ;;  %v895_v46 = vpop.f32.mrb[5].mxu0  ;;  %v1001_v47 = vpop.f32.mrb[5].mxu1 }
 0x189   :  { %v1035_v2 = vrot.slane %v1027_v55, 1  ;;  %v5555_v3 = vadd.f32 %v895_v46, %v303_v23  ;;  %v5563_v4 = vadd.f32 %v1001_v47, %v311_v24  ;;  %v897_v5 = vpop.f32.mrb[6].mxu0  ;;  %v1003_v6 = vpop.f32.mrb[6].mxu1 }
 0x18a   :  { %v1044_v8 = vsel %vm183_vm7, %v1032_v58, %v1034_v59  ;;  %v1016_v9 = vmax.f32 %v5554_v61, 0.0  ;;  %v1018_v10 = vmax.f32 %v5562_v0, 0.0  ;;  %v5556_v11 = vadd.f32 %v897_v5, %v299_v20  ;;  %v899_v12 = vpop.f32.mrb[7].mxu0  ;;  %v1005_v13 = vpop.f32.mrb[7].mxu1 }
 0x18b   :  { %v6835_v63 = vmax.f32 %v6826_v48, %v1044_v8  ;;  %v1045_v14 = vsel %vm183_vm7, %v1033_v1, %v1035_v2  ;;  %v1017_v17 = vmax.f32 %v5555_v3, 0.0  ;;  %v1019_v25 = vmax.f32 %v5563_v4, 0.0 }
 0x18c   :  { %v6840_v26 = vmax.f32 %v6828_v51, %v1045_v14  ;;  %v1028_v27 = vmax.f32 %v1016_v9, %v1018_v10  ;;  %v1020_v28 = vmax.f32 %v5556_v11, 0.0  ;;  %v5564_v29 = vadd.f32 %v1003_v6, %v307_v21 }
 0x18d   :  { %v1029_v30 = vmax.f32 %v1017_v17, %v1019_v25  ;;  %v5557_v31 = vadd.f32 %v899_v12, %v303_v23  ;;  %v5565_v33 = vadd.f32 %v1005_v13, %v311_v24  ;;  %v1060_v39 = vrot.slane %v6835_v63, 6 }
 0x18e   :  { %v1036_v32 = vrot.slane %v1028_v27, 1  ;;  %v1022_v20 = vmax.f32 %v5564_v29, 0.0  ;;  %v1089_v21 = vrot.slane %v6835_v63, 2  ;;  %v1061_v43 = vrot.slane %v6840_v26, 6 }
 0x18f   :  { %v1037_v34 = vrot.slane %v1029_v30, 1  ;;  %v1021_v35 = vmax.f32 %v5557_v31, 0.0  ;;  %v1023_v38 = vmax.f32 %v5565_v33, 0.0  ;;  %v1090_v50 = vrot.slane %v6840_v26, 2 }
 0x190   :  { %v1042_v36 = vsel %vm183_vm7, %v1034_v59, %v1036_v32  ;;  %v1030_v37 = vmax.f32 %v1020_v28, %v1022_v20 }
 0x191   :  { %v1050_v40 = vmax.f32 %v1026_v54, %v1042_v36  ;;  %v1043_v23 = vsel %vm183_vm7, %v1035_v2, %v1037_v34  ;;  %v1031_v42 = vmax.f32 %v1021_v35, %v1023_v38  ;;  %v5936_v35 = vld [vmem:[#allocation5 + $0x208] ss:$16 sps:$4 sm:$0xff]  }
 0x192   :  { %v1051_v24 = vmax.f32 %v1027_v55, %v1043_v23  ;;  %v1038_v41 = vrot.slane %v1030_v37, 1 }
 0x193   :  { %v1062_v44 = vrot.slane %v1050_v40, 6  ;;  %v1091_v48 = vrot.slane %v1050_v40, 2  ;;  %v6853_v49 = vpack.c.bf16 %v1050_v40, %v6835_v63  ;;  %v1039_v53 = vrot.slane %v1031_v42, 1 }
 0x194   :  { %v1040_v51 = vsel %vm183_vm7, %v1036_v32, %v1038_v41  ;;  %v1046_v52 = vsel %vm183_vm7, %v1038_v41, %v1032_v58  ;;  %v1063_v54 = vrot.slane %v1051_v24, 6  ;;  %v6864_v59 = vpack.c.bf16 %v1051_v24, %v6840_v26  ;;  %v6008_v41 = vld [vmem:[#allocation5 + $0x388] ss:$16 sps:$4 sm:$0xff]  }
 0x195   :  { %v1052_v55 = vmax.f32 %v1028_v27, %v1040_v51  ;;  %v1054_v56 = vmax.f32 %v1030_v37, %v1046_v52  ;;  %v1073_v57 = vsel %vm1068_vm11, %v1060_v39, %v1062_v44  ;;  %v1041_v61 = vsel %vm183_vm7, %v1037_v34, %v1039_v53  ;;  %v5933_v34 = vld [vmem:[#allocation5 + $0x200] ss:$16 sps:$4 sm:$0xff]   ;;  %v5947_v51 = vld [vmem:[#allocation5 + $0x244] ss:$16 sps:$4 sm:$0xff]   ;;  %v5950_v52 = vld [vmem:[#allocation5 + $0x24c] ss:$16 sps:$4 sm:$0xff]  }
 0x196   :  { %v1047_v0 = vsel %vm183_vm7, %v1039_v53, %v1033_v1  ;;  %v1074_v58 = vsel %vm1068_vm11, %v1061_v43, %v1063_v54  ;;  %v1092_v46 = vrot.slane %v1051_v24, 2  ;;  %v1053_v4 = vmax.f32 %v1029_v30, %v1041_v61  ;;  %v5945_v53 = vld [vmem:[#allocation5 + $0x240] ss:$16 sps:$4 sm:$0xff]   ;;  %v5954_v61 = vld [vmem:[#allocation5 + $0x268] ss:$16 sps:$4 sm:$0xff]  }
 0x197   :  { %v1066_v47 = vrot.slane %v1054_v56, 6  ;;  %v1093_v2 = vrot.slane %v1052_v55, 2  ;;  %v1095_v3 = vrot.slane %v1054_v56, 2  ;;  %v1055_v5 = vmax.f32 %v1031_v42, %v1047_v0  ;;  %v5941_v42 = vld [vmem:[#allocation5 + $0x224] ss:$16 sps:$4 sm:$0xff]  }
 0x198   :  { %v1064_v6 = vrot.slane %v1052_v55, 6  ;;  %v6872_v8 = vpack.c.bf16 %v1054_v56, %v1052_v55  ;;  %v1103_v9 = vsel %vm1097_vm12, %v1090_v50, %v1092_v46  ;;  %v1065_v11 = vrot.slane %v1053_v4, 6  ;;  %v5953_v55 = vld [vmem:[#allocation5 + $0x264] ss:$16 sps:$4 sm:$0xff]   ;;  %v5956_v56 = vld [vmem:[#allocation5 + $0x26c] ss:$16 sps:$4 sm:$0xff]  }
 0x199   :  { %v1075_v10 = vsel %vm1068_vm11, %v1066_v47, %v1060_v39  ;;  %v1094_v1 = vrot.slane %v1053_v4, 2  ;;  %v1100_v12 = vsel %vm1097_vm12, %v1091_v48, %v1093_v2  ;;  %v1067_v63 = vrot.slane %v1055_v5, 6  ;;  %v5959_v0 = vld [vmem:[#allocation5 + $0x284] ss:$16 sps:$4 sm:$0xff]   ;;  %v5990_v30 = vld [vmem:[#allocation5 + $0x328] ss:$16 sps:$4 sm:$0xff]  }
 0x19a   :  { %v5036_v13 = vpack.c.bf16 %v1073_v57, %v1075_v10  ;;  %v1096_v14 = vrot.slane %v1055_v5, 2  ;;  %v1069_v17 = vsel %vm1068_vm11, %v1064_v6, %v1066_v47  ;;  %v1072_v25 = vsel %vm1068_vm11, %v1063_v54, %v1065_v11  ;;  %v5948_v54 = vld [vmem:[#allocation5 + $0x248] ss:$16 sps:$4 sm:$0xff]   ;;  %v5951_v57 = vld [vmem:[#allocation5 + $0x260] ss:$16 sps:$4 sm:$0xff]  }
 0x19b   :  { %v1071_v26 = vsel %vm1068_vm11, %v1062_v44, %v1064_v6  ;;  %v6886_v27 = vpack.c.bf16 %v1055_v5, %v1053_v4  ;;  %v1101_v28 = vsel %vm1097_vm12, %v1092_v46, %v1094_v1  ;;  %v1076_v29 = vsel %vm1068_vm11, %v1067_v63, %v1061_v43  ;;  %v5944_v43 = vld [vmem:[#allocation5 + $0x22c] ss:$16 sps:$4 sm:$0xff]   ;;  %v5957_v46 = vld [vmem:[#allocation5 + $0x280] ss:$16 sps:$4 sm:$0xff]   ;;  %v5960_v47 = vld [vmem:[#allocation5 + $0x288] ss:$16 sps:$4 sm:$0xff]  }
 0x19c   :  { %v1070_v31 = vsel %vm1068_vm11, %v1065_v11, %v1067_v63  ;;  %v5042_v32 = vpack.c.bf16 %v1069_v17, %v1071_v26  ;;  %v6901_v20 = vpack.c.bf16 %v1101_v28, %v1103_v9  ;;  %v5033_v33 = vpack.c.bf16 %v1074_v58, %v1076_v29  ;;  %v5962_v58 = vld [vmem:[#allocation5 + $0x28c] ss:$16 sps:$4 sm:$0xff]   ;;  %v5963_v4 = vld [vmem:[#allocation5 + $0x2a0] ss:$16 sps:$4 sm:$0xff]   ;;  %v5966_v5 = vld [vmem:[#allocation5 + $0x2a8] ss:$16 sps:$4 sm:$0xff]  }
 0x19d   :  { %v5039_v36 = vpack.c.bf16 %v1070_v31, %v1072_v25  ;;  %v1102_v37 = vsel %vm1097_vm12, %v1089_v21, %v1091_v48  ;;  %v1099_v38 = vsel %vm1097_vm12, %v1094_v1, %v1096_v14  ;;  %v1105_v40 = vsel %vm1097_vm12, %v1096_v14, %v1090_v50  ;;  %v5942_v50 = vld [vmem:[#allocation5 + $0x228] ss:$16 sps:$4 sm:$0xff]   ;;  %v5971_v6 = vld [vmem:[#allocation5 + $0x2c4] ss:$16 sps:$4 sm:$0xff]   ;;  %v5969_v9 = vld [vmem:[#allocation5 + $0x2c0] ss:$16 sps:$4 sm:$0xff]  }
 0x19e   :  { %v6907_v39 = vpack.c.bf16 %v1100_v12, %v1102_v37  ;;  %v1098_v23 = vsel %vm1097_vm12, %v1093_v2, %v1095_v3  ;;  %v1104_v24 = vsel %vm1097_vm12, %v1095_v3, %v1089_v21  ;;  %5034 = vmatprep.mubr.msk.bf16.mxu0 %vm6895_vm15, %v5033_v33  ;;  %5058 = vmatprep.mubr.msk.bf16.mxu1 %vm6895_vm15, %v5033_v33  ;;  %v5939_v21 = vld [vmem:[#allocation5 + $0x220] ss:$16 sps:$4 sm:$0xff]   ;;  %v5965_v2 = vld [vmem:[#allocation5 + $0x2a4] ss:$16 sps:$4 sm:$0xff]   ;;  %v5968_v3 = vld [vmem:[#allocation5 + $0x2ac] ss:$16 sps:$4 sm:$0xff]  }
 0x19f   :  { %v6926_v44 = vpack.c.bf16 %v1105_v40, %v1099_v38  ;;  %v6928_v48 = vpack.c.bf16 %v1104_v24, %v1098_v23  ;;  %5037 = vmatmul.mubr.msk.bf16.vlgmr.msra.gmra.mrb[8].mxu0 %vm6895_vm15, %v5036_v13  ;;  %5061 = vmatmul.mubr.msk.bf16.vlgmr.msra.gmra.mrb[8].mxu1 %vm6895_vm15, %v5036_v13  ;;  %v5972_v10 = vld [vmem:[#allocation5 + $0x2c8] ss:$16 sps:$4 sm:$0xff]   ;;  %v5977_v11 = vld [vmem:[#allocation5 + $0x2e4] ss:$16 sps:$4 sm:$0xff]   ;;  %v5980_v1 = vld [vmem:[#allocation5 + $0x2ec] ss:$16 sps:$4 sm:$0xff]  }
 0x1a0   :  { %2354 = vmatpush1.bf16.msra.mxu0 %v5933_v34  ;;  %2513 = vmatpush1.bf16.msra.mxu1 %v5936_v35  ;;  %v5975_v12 = vld [vmem:[#allocation5 + $0x2e0] ss:$16 sps:$4 sm:$0xff]   ;;  %v5978_v13 = vld [vmem:[#allocation5 + $0x2e8] ss:$16 sps:$4 sm:$0xff]   ;;  %v5983_v63 = vld [vmem:[#allocation5 + $0x304] ss:$16 sps:$4 sm:$0xff]  }
 0x1a1   :  { %5040 = vmatprep.mubr.msk.bf16.mxu0 %vm6922_vm0, %v5039_v36  ;;  %5064 = vmatprep.mubr.msk.bf16.mxu1 %vm6922_vm0, %v5039_v36  ;;  %v5986_v14 = vld [vmem:[#allocation5 + $0x30c] ss:$16 sps:$4 sm:$0xff]   ;;  %v5981_v17 = vld [vmem:[#allocation5 + $0x300] ss:$16 sps:$4 sm:$0xff]   ;;  %v5984_v25 = vld [vmem:[#allocation5 + $0x308] ss:$16 sps:$4 sm:$0xff]  }
 0x1a2   :  { %2355 = vmatprep.subr.bf16.mxu0 %v5941_v42  ;;  %2514 = vmatprep.subr.bf16.mxu1 %v5944_v43  ;;  %v5989_v26 = vld [vmem:[#allocation5 + $0x324] ss:$16 sps:$4 sm:$0xff]   ;;  %v5992_v28 = vld [vmem:[#allocation5 + $0x32c] ss:$16 sps:$4 sm:$0xff]   ;;  %v5987_v29 = vld [vmem:[#allocation5 + $0x320] ss:$16 sps:$4 sm:$0xff]  }
 0x1a3   :  { %v5995_v31 = vld [vmem:[#allocation5 + $0x344] ss:$16 sps:$4 sm:$0xff]   ;;  %v5993_v33 = vld [vmem:[#allocation5 + $0x340] ss:$16 sps:$4 sm:$0xff]   ;;  %v5996_v34 = vld [vmem:[#allocation5 + $0x348] ss:$16 sps:$4 sm:$0xff]  }
 0x1a4   :  { %2356 = vmatpush1.bf16.msra.mxu0 %v5939_v21  ;;  %2515 = vmatpush1.bf16.msra.mxu1 %v5942_v50  ;;  %v6001_v35 = vld [vmem:[#allocation5 + $0x364] ss:$16 sps:$4 sm:$0xff]   ;;  %v6004_v36 = vld [vmem:[#allocation5 + $0x36c] ss:$16 sps:$4 sm:$0xff]   ;;  %v5999_v37 = vld [vmem:[#allocation5 + $0x360] ss:$16 sps:$4 sm:$0xff]  }
 0x1a5   :  { %2357 = vmatprep.subr.bf16.mxu0 %v5947_v51  ;;  %2516 = vmatprep.subr.bf16.mxu1 %v5950_v52  ;;  %v6002_v38 = vld [vmem:[#allocation5 + $0x368] ss:$16 sps:$4 sm:$0xff]   ;;  %v6007_v40 = vld [vmem:[#allocation5 + $0x384] ss:$16 sps:$4 sm:$0xff]   ;;  %v6010_v23 = vld [vmem:[#allocation5 + $0x38c] ss:$16 sps:$4 sm:$0xff]  }
 0x1a6   :  { %v6005_v24 = vld [vmem:[#allocation5 + $0x380] ss:$16 sps:$4 sm:$0xff]   ;;  %v6013_v42 = vld [vmem:[#allocation5 + $0x3a4] ss:$16 sps:$4 sm:$0xff]   ;;  %v6016_v43 = vld [vmem:[#allocation5 + $0x3ac] ss:$16 sps:$4 sm:$0xff]  }
 0x1a7   :  { %5043 = vmatmul.mubr.msk.bf16.gmra.mrb[12].mxu0 %vm6922_vm0, %v5042_v32  ;;  %5067 = vmatmul.mubr.msk.bf16.gmra.mrb[12].mxu1 %vm6922_vm0, %v5042_v32  ;;  %v5998_v32 = vld [vmem:[#allocation5 + $0x34c] ss:$16 sps:$4 sm:$0xff]   ;;  %v6011_v21 = vld [vmem:[#allocation5 + $0x3a0] ss:$16 sps:$4 sm:$0xff]   ;;  %v6014_v50 = vld [vmem:[#allocation5 + $0x3a8] ss:$16 sps:$4 sm:$0xff]  }
 0x1a8   :  { %2358 = vmatpush1.bf16.msra.mxu0 %v5945_v53  ;;  %2517 = vmatpush1.bf16.msra.mxu1 %v5948_v54  ;;  %v6019_v51 = vld [vmem:[#allocation5 + $0x3c4] ss:$16 sps:$4 sm:$0xff]   ;;  %v6022_v52 = vld [vmem:[#allocation5 + $0x3cc] ss:$16 sps:$4 sm:$0xff]   ;;  %v6017_v53 = vld [vmem:[#allocation5 + $0x3c0] ss:$16 sps:$4 sm:$0xff]  }
 0x1a9   :  { %2385 = vmatprep.mubr.bf16.mxu0 %v6864_v59  ;;  %2544 = vmatprep.mubr.bf16.mxu1 %v6864_v59  ;;  %v5974_v59 = vld [vmem:[#allocation5 + $0x2cc] ss:$16 sps:$4 sm:$0xff]   ;;  %v6020_v54 = vld [vmem:[#allocation5 + $0x3c8] ss:$16 sps:$4 sm:$0xff]   ;;  %vm2666_vm7 = vcmp.ge.s32.totalorder %v6736_v7, 4  ;;  %vm2696_vm11 = vcmp.lt.s32.totalorder %v6765_v45, 12 }
 0x1aa   :  { %2359 = vmatprep.subr.bf16.mxu0 %v5953_v55  ;;  %2518 = vmatprep.subr.bf16.mxu1 %v5956_v56  ;;  %v6025_v55 = vld [vmem:[#allocation5 + $0x3e4] ss:$16 sps:$4 sm:$0xff]   ;;  %v6028_v56 = vld [vmem:[#allocation5 + $0x3ec] ss:$16 sps:$4 sm:$0xff]   ;;  %vm5272_vm8 = vmpackc.low %vm6565_vm2, %vm2666_vm7  ;;  %vm6569_vm15 = vmmov 0   ;;  %vm4681_vm0 = vcmask 1041408  }
 0x1ab   :  { %v6299_v7 = vld [vmem:[#allocation7 + $0x3a0] ss:$16 sps:$4 sm:$0xff]  }
 0x1ac   :  { %2360 = vmatpush1.bf16.msra.mxu0 %v5951_v57  ;;  %2519 = vmatpush1.bf16.msra.mxu1 %v5954_v61  ;;  %v6023_v57 = vld [vmem:[#allocation5 + $0x3e0] ss:$16 sps:$4 sm:$0xff]   ;;  %v6026_v61 = vld [vmem:[#allocation5 + $0x3e8] ss:$16 sps:$4 sm:$0xff]  }
 0x1ad   :  { %2361 = vmatprep.subr.bf16.mxu0 %v5959_v0  ;;  %2520 = vmatprep.subr.bf16.mxu1 %v5962_v58  ;;  %v6031_v0 = vld [vmem:[#allocation5 + $0x404] ss:$16 sps:$4 sm:$0xff]   ;;  %v6034_v58 = vld [vmem:[#allocation5 + $0x40c] ss:$16 sps:$4 sm:$0xff]   ;;  %v6335_v45 = vld [vmem:[#allocation7 + $0x460] ss:$16 sps:$4 sm:$0xff]  }
 0x1b0   :  { %2362 = vmatpush1.bf16.msra.mxu0 %v5957_v46  ;;  %2521 = vmatpush1.bf16.msra.mxu1 %v5960_v47  ;;  %v6029_v46 = vld [vmem:[#allocation5 + $0x400] ss:$16 sps:$4 sm:$0xff]   ;;  %v6032_v47 = vld [vmem:[#allocation5 + $0x408] ss:$16 sps:$4 sm:$0xff]  }
 0x1b1   :  { %2363 = vmatprep.subr.bf16.mxu0 %v5965_v2  ;;  %2522 = vmatprep.subr.bf16.mxu1 %v5968_v3  ;;  %v6037_v2 = vld [vmem:[#allocation5 + $0x424] ss:$16 sps:$4 sm:$0xff]   ;;  %v6040_v3 = vld [vmem:[#allocation5 + $0x42c] ss:$16 sps:$4 sm:$0xff]  }
 0x1b4   :  { %2364 = vmatpush1.bf16.msra.mxu0 %v5963_v4  ;;  %2523 = vmatpush1.bf16.msra.mxu1 %v5966_v5  ;;  %v6035_v4 = vld [vmem:[#allocation5 + $0x420] ss:$16 sps:$4 sm:$0xff]   ;;  %v6038_v5 = vld [vmem:[#allocation5 + $0x428] ss:$16 sps:$4 sm:$0xff]  }
 0x1b5   :  { %2365 = vmatprep.subr.bf16.mxu0 %v5971_v6  ;;  %2524 = vmatprep.subr.bf16.mxu1 %v5974_v59  ;;  %v6043_v6 = vld [vmem:[#allocation5 + $0x444] ss:$16 sps:$4 sm:$0xff]   ;;  %v6046_v59 = vld [vmem:[#allocation5 + $0x44c] ss:$16 sps:$4 sm:$0xff]  }
 0x1b8   :  { %2366 = vmatpush1.bf16.msra.mxu0 %v5969_v9  ;;  %2525 = vmatpush1.bf16.msra.mxu1 %v5972_v10  ;;  %v6041_v9 = vld [vmem:[#allocation5 + $0x440] ss:$16 sps:$4 sm:$0xff]   ;;  %v6044_v10 = vld [vmem:[#allocation5 + $0x448] ss:$16 sps:$4 sm:$0xff]  }
 0x1b9   :  { %2367 = vmatprep.subr.bf16.mxu0 %v5977_v11  ;;  %2526 = vmatprep.subr.bf16.mxu1 %v5980_v1  ;;  %v6052_v11 = vld [vmem:[#allocation5 + $0x46c] ss:$16 sps:$4 sm:$0xff]   ;;  %v6047_v1 = vld [vmem:[#allocation5 + $0x460] ss:$16 sps:$4 sm:$0xff]  }
 0x1bc   :  { %2368 = vmatpush1.bf16.msra.mxu0 %v5975_v12  ;;  %2527 = vmatpush1.bf16.msra.mxu1 %v5978_v13  ;;  %v6050_v12 = vld [vmem:[#allocation5 + $0x468] ss:$16 sps:$4 sm:$0xff]   ;;  %v6055_v13 = vld [vmem:[#allocation5 + $0x484] ss:$16 sps:$4 sm:$0xff]  }
 0x1bd   :  { %2369 = vmatprep.subr.bf16.mxu0 %v5983_v63  ;;  %2528 = vmatprep.subr.bf16.mxu1 %v5986_v14  ;;  %v6058_v63 = vld [vmem:[#allocation5 + $0x48c] ss:$16 sps:$4 sm:$0xff]   ;;  %v6053_v14 = vld [vmem:[#allocation5 + $0x480] ss:$16 sps:$4 sm:$0xff]  }
 0x1c0   :  { %2370 = vmatpush1.bf16.msra.mxu0 %v5981_v17  ;;  %2529 = vmatpush1.bf16.msra.mxu1 %v5984_v25  ;;  %v6061_v17 = vld [vmem:[#allocation5 + $0x4a4] ss:$16 sps:$4 sm:$0xff]   ;;  %v6064_v25 = vld [vmem:[#allocation5 + $0x4ac] ss:$16 sps:$4 sm:$0xff]  }
 0x1c1   :  { %2371 = vmatprep.subr.bf16.mxu0 %v5989_v26  ;;  %2530 = vmatprep.subr.bf16.mxu1 %v5992_v28  ;;  %v6059_v26 = vld [vmem:[#allocation5 + $0x4a0] ss:$16 sps:$4 sm:$0xff]   ;;  %v6062_v28 = vld [vmem:[#allocation5 + $0x4a8] ss:$16 sps:$4 sm:$0xff]  }
 0x1c4   :  { %2372 = vmatpush1.bf16.msra.mxu0 %v5987_v29  ;;  %2531 = vmatpush1.bf16.msra.mxu1 %v5990_v30  ;;  %v6067_v29 = vld [vmem:[#allocation5 + $0x4c4] ss:$16 sps:$4 sm:$0xff]   ;;  %v6065_v30 = vld [vmem:[#allocation5 + $0x4c0] ss:$16 sps:$4 sm:$0xff]  }
 0x1c5   :  { %2373 = vmatprep.subr.bf16.mxu0 %v5995_v31  ;;  %2532 = vmatprep.subr.bf16.mxu1 %v5998_v32  ;;  %v6068_v31 = vld [vmem:[#allocation5 + $0x4c8] ss:$16 sps:$4 sm:$0xff]   ;;  %v6073_v32 = vld [vmem:[#allocation5 + $0x4e4] ss:$16 sps:$4 sm:$0xff]  }
 0x1c8   :  { %2374 = vmatpush1.bf16.msra.mxu0 %v5993_v33  ;;  %2533 = vmatpush1.bf16.msra.mxu1 %v5996_v34  ;;  %v6076_v33 = vld [vmem:[#allocation5 + $0x4ec] ss:$16 sps:$4 sm:$0xff]   ;;  %v6071_v34 = vld [vmem:[#allocation5 + $0x4e0] ss:$16 sps:$4 sm:$0xff]  }
 0x1c9   :  { %2375 = vmatprep.subr.bf16.mxu0 %v6001_v35  ;;  %2534 = vmatprep.subr.bf16.mxu1 %v6004_v36  ;;  %v6074_v35 = vld [vmem:[#allocation5 + $0x4e8] ss:$16 sps:$4 sm:$0xff]   ;;  %v6079_v36 = vld [vmem:[#allocation5 + $0x504] ss:$16 sps:$4 sm:$0xff]  }
 0x1cc   :  { %2376 = vmatpush1.bf16.msra.mxu0 %v5999_v37  ;;  %2535 = vmatpush1.bf16.msra.mxu1 %v6002_v38  ;;  %v6082_v37 = vld [vmem:[#allocation5 + $0x50c] ss:$16 sps:$4 sm:$0xff]   ;;  %v6077_v38 = vld [vmem:[#allocation5 + $0x500] ss:$16 sps:$4 sm:$0xff]  }
 0x1cd   :  { %2377 = vmatprep.subr.bf16.mxu0 %v6007_v40  ;;  %2536 = vmatprep.subr.bf16.mxu1 %v6010_v23  ;;  %v6080_v40 = vld [vmem:[#allocation5 + $0x508] ss:$16 sps:$4 sm:$0xff]   ;;  %v6085_v23 = vld [vmem:[#allocation5 + $0x524] ss:$16 sps:$4 sm:$0xff]  }
 0x1d0   :  { %2378 = vmatpush1.bf16.msra.mxu0 %v6005_v24  ;;  %2537 = vmatpush1.bf16.msra.mxu1 %v6008_v41  ;;  %v6088_v24 = vld [vmem:[#allocation5 + $0x52c] ss:$16 sps:$4 sm:$0xff]   ;;  %v6083_v41 = vld [vmem:[#allocation5 + $0x520] ss:$16 sps:$4 sm:$0xff]  }
 0x1d1   :  { %2379 = vmatprep.subr.bf16.mxu0 %v6013_v42  ;;  %2538 = vmatprep.subr.bf16.mxu1 %v6016_v43  ;;  %v6086_v42 = vld [vmem:[#allocation5 + $0x528] ss:$16 sps:$4 sm:$0xff]   ;;  %v6091_v43 = vld [vmem:[#allocation5 + $0x544] ss:$16 sps:$4 sm:$0xff]  }
 0x1d4   :  { %2380 = vmatpush1.bf16.msra.mxu0 %v6011_v21  ;;  %2539 = vmatpush1.bf16.msra.mxu1 %v6014_v50  ;;  %v6094_v21 = vld [vmem:[#allocation5 + $0x54c] ss:$16 sps:$4 sm:$0xff]   ;;  %v6089_v50 = vld [vmem:[#allocation5 + $0x540] ss:$16 sps:$4 sm:$0xff]  }
 0x1d5   :  { %2381 = vmatprep.subr.bf16.mxu0 %v6019_v51  ;;  %2540 = vmatprep.subr.bf16.mxu1 %v6022_v52  ;;  %v6092_v51 = vld [vmem:[#allocation5 + $0x548] ss:$16 sps:$4 sm:$0xff]   ;;  %v6097_v52 = vld [vmem:[#allocation5 + $0x564] ss:$16 sps:$4 sm:$0xff]  }
 0x1d8   :  { %2382 = vmatpush1.bf16.msra.mxu0 %v6017_v53  ;;  %2541 = vmatpush1.bf16.msra.mxu1 %v6020_v54  ;;  %v6100_v53 = vld [vmem:[#allocation5 + $0x56c] ss:$16 sps:$4 sm:$0xff]   ;;  %v6095_v54 = vld [vmem:[#allocation5 + $0x560] ss:$16 sps:$4 sm:$0xff]  }
 0x1d9   :  { %2383 = vmatprep.subr.bf16.mxu0 %v6025_v55  ;;  %2542 = vmatprep.subr.bf16.mxu1 %v6028_v56  ;;  %v6098_v55 = vld [vmem:[#allocation5 + $0x568] ss:$16 sps:$4 sm:$0xff]   ;;  %v6103_v56 = vld [vmem:[#allocation5 + $0x584] ss:$16 sps:$4 sm:$0xff]  }
 0x1dc   :  { %2384 = vmatpush1.bf16.msra.mxu0 %v6023_v57  ;;  %2543 = vmatpush1.bf16.msra.mxu1 %v6026_v61  ;;  %v6106_v57 = vld [vmem:[#allocation5 + $0x58c] ss:$16 sps:$4 sm:$0xff]   ;;  %v6101_v61 = vld [vmem:[#allocation5 + $0x580] ss:$16 sps:$4 sm:$0xff]  }
 0x1dd   :  { %2406 = vmatprep.subr.bf16.mxu0 %v6031_v0  ;;  %2565 = vmatprep.subr.bf16.mxu1 %v6034_v58  ;;  %v6104_v0 = vld [vmem:[#allocation5 + $0x588] ss:$16 sps:$4 sm:$0xff]   ;;  %v6109_v58 = vld [vmem:[#allocation5 + $0x5a4] ss:$16 sps:$4 sm:$0xff]  }
 0x1df   :  { %2386 = vmatmul.mubr.bf16.vlgmr.msra.gmra.mrb[8].mxu0 %v6853_v49  ;;  %2545 = vmatmul.mubr.bf16.vlgmr.msra.gmra.mrb[8].mxu1 %v6853_v49  ;;  %v6145_v49 = vld [vmem:[#allocation7 + $0x64] ss:$16 sps:$4 sm:$0xff]  }
 0x1e0   :  { %2395 = vmatprep.mubr.bf16.mxu0 %v6886_v27  ;;  %2407 = vmatpush1.bf16.msra.mxu0 %v6029_v46  ;;  %v6112_v46 = vld [vmem:[#allocation5 + $0x5ac] ss:$16 sps:$4 sm:$0xff]  }
 0x1e1   :  { %2554 = vmatprep.mubr.bf16.mxu1 %v6886_v27  ;;  %2566 = vmatpush1.bf16.msra.mxu1 %v6032_v47  ;;  %v6049_v27 = vld [vmem:[#allocation5 + $0x464] ss:$16 sps:$4 sm:$0xff]   ;;  %v6107_v47 = vld [vmem:[#allocation5 + $0x5a0] ss:$16 sps:$4 sm:$0xff]  }
 0x1e2   :  { %2408 = vmatprep.subr.bf16.mxu0 %v6037_v2  ;;  %2567 = vmatprep.subr.bf16.mxu1 %v6040_v3  ;;  %v6110_v2 = vld [vmem:[#allocation5 + $0x5a8] ss:$16 sps:$4 sm:$0xff]   ;;  %v6115_v3 = vld [vmem:[#allocation5 + $0x5c4] ss:$16 sps:$4 sm:$0xff]  }
 0x1e4   :  { %2409 = vmatpush1.bf16.msra.mxu0 %v6035_v4  ;;  %v6118_v4 = vld [vmem:[#allocation5 + $0x5cc] ss:$16 sps:$4 sm:$0xff]  }
 0x1e5   :  { %2568 = vmatpush1.bf16.msra.mxu1 %v6038_v5  ;;  %2410 = vmatprep.subr.bf16.mxu0 %v6043_v6  ;;  %v6113_v5 = vld [vmem:[#allocation5 + $0x5c0] ss:$16 sps:$4 sm:$0xff]   ;;  %v6116_v6 = vld [vmem:[#allocation5 + $0x5c8] ss:$16 sps:$4 sm:$0xff]  }
 0x1e6   :  { %2569 = vmatprep.subr.bf16.mxu1 %v6046_v59  ;;  %v6121_v59 = vld [vmem:[#allocation5 + $0x5e4] ss:$16 sps:$4 sm:$0xff]  }
 0x1e7   :  { %2396 = vmatmul.mubr.bf16.gmra.mrb[12].mxu0 %v6872_v8  ;;  %2555 = vmatmul.mubr.bf16.gmra.mrb[12].mxu1 %v6872_v8  ;;  %v6056_v8 = vld [vmem:[#allocation5 + $0x488] ss:$16 sps:$4 sm:$0xff]  }
 0x1e8   :  { %2411 = vmatpush1.bf16.msra.mxu0 %v6041_v9  ;;  %5046 = vmatprep.mubr.msk.bf16.mxu0 %vm6950_vm3, %v6901_v20  ;;  %v6124_v9 = vld [vmem:[#allocation5 + $0x5ec] ss:$16 sps:$4 sm:$0xff]  }
 0x1e9   :  { %2570 = vmatpush1.bf16.msra.mxu1 %v6044_v10  ;;  %5070 = vmatprep.mubr.msk.bf16.mxu1 %vm6950_vm3, %v6901_v20  ;;  %v6070_v20 = vld [vmem:[#allocation5 + $0x4cc] ss:$16 sps:$4 sm:$0xff]   ;;  %v6119_v10 = vld [vmem:[#allocation5 + $0x5e0] ss:$16 sps:$4 sm:$0xff]  }
 0x1ea   :  { %2412 = vmatprep.subr.bf16.mxu0 %v6049_v27  ;;  %2571 = vmatprep.subr.bf16.mxu1 %v6052_v11  ;;  %v6122_v27 = vld [vmem:[#allocation5 + $0x5e8] ss:$16 sps:$4 sm:$0xff]   ;;  %v6127_v11 = vld [vmem:[#allocation7 + $0x4] ss:$16 sps:$4 sm:$0xff]  }
 0x1ec   :  { %2413 = vmatpush1.bf16.msra.mxu0 %v6047_v1  ;;  %v6130_v1 = vld [vmem:[#allocation7 + $0xc] ss:$16 sps:$4 sm:$0xff]  }
 0x1ed   :  { %2572 = vmatpush1.bf16.msra.mxu1 %v6050_v12  ;;  %2414 = vmatprep.subr.bf16.mxu0 %v6055_v13  ;;  %v6125_v13 = vld [vmem:[#allocation7] ss:$16 sps:$4 sm:$0xff]   ;;  %v6211_v12 = vld [vmem:[#allocation7 + $0x1c4] ss:$16 sps:$4 sm:$0xff]  }
 0x1ee   :  { %2573 = vmatprep.subr.bf16.mxu1 %v6058_v63  ;;  %v6128_v63 = vld [vmem:[#allocation7 + $0x8] ss:$16 sps:$4 sm:$0xff]  }
 0x1f0   :  { %2415 = vmatpush1.bf16.msra.mxu0 %v6053_v14  ;;  %v6133_v14 = vld [vmem:[#allocation7 + $0x24] ss:$16 sps:$4 sm:$0xff]  }
 0x1f1   :  { %2574 = vmatpush1.bf16.msra.mxu1 %v6056_v8  ;;  %2416 = vmatprep.subr.bf16.mxu0 %v6061_v17  ;;  %v6136_v8 = vld [vmem:[#allocation7 + $0x2c] ss:$16 sps:$4 sm:$0xff]   ;;  %v6131_v17 = vld [vmem:[#allocation7 + $0x20] ss:$16 sps:$4 sm:$0xff]  }
 0x1f2   :  { %2575 = vmatprep.subr.bf16.mxu1 %v6064_v25  ;;  %v6134_v25 = vld [vmem:[#allocation7 + $0x28] ss:$16 sps:$4 sm:$0xff]  }
 0x1f4   :  { %2417 = vmatpush1.bf16.msra.mxu0 %v6059_v26  ;;  %v6139_v26 = vld [vmem:[#allocation7 + $0x44] ss:$16 sps:$4 sm:$0xff]  }
 0x1f5   :  { %2576 = vmatpush1.bf16.msra.mxu1 %v6062_v28  ;;  %2418 = vmatprep.subr.bf16.mxu0 %v6067_v29  ;;  %v6142_v28 = vld [vmem:[#allocation7 + $0x4c] ss:$16 sps:$4 sm:$0xff]   ;;  %v6137_v29 = vld [vmem:[#allocation7 + $0x40] ss:$16 sps:$4 sm:$0xff]  }
 0x1f6   :  { %2577 = vmatprep.subr.bf16.mxu1 %v6070_v20  ;;  %v6143_v20 = vld [vmem:[#allocation7 + $0x60] ss:$16 sps:$4 sm:$0xff]  }
 0x1f8   :  { %2419 = vmatpush1.bf16.msra.mxu0 %v6065_v30  ;;  %v6146_v30 = vld [vmem:[#allocation7 + $0x68] ss:$16 sps:$4 sm:$0xff]  }
 0x1f9   :  { %2578 = vmatpush1.bf16.msra.mxu1 %v6068_v31  ;;  %2420 = vmatprep.subr.bf16.mxu0 %v6073_v32  ;;  %v6151_v31 = vld [vmem:[#allocation7 + $0x84] ss:$16 sps:$4 sm:$0xff]   ;;  %v6154_v32 = vld [vmem:[#allocation7 + $0x8c] ss:$16 sps:$4 sm:$0xff]  }
 0x1fa   :  { %2579 = vmatprep.subr.bf16.mxu1 %v6076_v33  ;;  %v6149_v33 = vld [vmem:[#allocation7 + $0x80] ss:$16 sps:$4 sm:$0xff]  }
 0x1fc   :  { %2421 = vmatpush1.bf16.msra.mxu0 %v6071_v34  ;;  %v6152_v34 = vld [vmem:[#allocation7 + $0x88] ss:$16 sps:$4 sm:$0xff]  }
 0x1fd   :  { %2580 = vmatpush1.bf16.msra.mxu1 %v6074_v35  ;;  %2422 = vmatprep.subr.bf16.mxu0 %v6079_v36  ;;  %v6157_v35 = vld [vmem:[#allocation7 + $0xa4] ss:$16 sps:$4 sm:$0xff]   ;;  %v6160_v36 = vld [vmem:[#allocation7 + $0xac] ss:$16 sps:$4 sm:$0xff]  }
 0x1fe   :  { %2581 = vmatprep.subr.bf16.mxu1 %v6082_v37  ;;  %v6155_v37 = vld [vmem:[#allocation7 + $0xa0] ss:$16 sps:$4 sm:$0xff]  }
 0x200   :  { %2423 = vmatpush1.bf16.msra.mxu0 %v6077_v38  ;;  %v6163_v38 = vld [vmem:[#allocation7 + $0xc4] ss:$16 sps:$4 sm:$0xff]  }
 0x201   :  { %2582 = vmatpush1.bf16.msra.mxu1 %v6080_v40  ;;  %2424 = vmatprep.subr.bf16.mxu0 %v6085_v23  ;;  %v6166_v40 = vld [vmem:[#allocation7 + $0xcc] ss:$16 sps:$4 sm:$0xff]   ;;  %v6161_v23 = vld [vmem:[#allocation7 + $0xc0] ss:$16 sps:$4 sm:$0xff]  }
 0x202   :  { %2583 = vmatprep.subr.bf16.mxu1 %v6088_v24  ;;  %v6164_v24 = vld [vmem:[#allocation7 + $0xc8] ss:$16 sps:$4 sm:$0xff]  }
 0x204   :  { %2425 = vmatpush1.bf16.msra.mxu0 %v6083_v41  ;;  %v6169_v41 = vld [vmem:[#allocation7 + $0xe4] ss:$16 sps:$4 sm:$0xff]  }
 0x205   :  { %2584 = vmatpush1.bf16.msra.mxu1 %v6086_v42  ;;  %2426 = vmatprep.subr.bf16.mxu0 %v6091_v43  ;;  %v6172_v42 = vld [vmem:[#allocation7 + $0xec] ss:$16 sps:$4 sm:$0xff]   ;;  %v6167_v43 = vld [vmem:[#allocation7 + $0xe0] ss:$16 sps:$4 sm:$0xff]  }
 0x206   :  { %2585 = vmatprep.subr.bf16.mxu1 %v6094_v21  ;;  %v6170_v21 = vld [vmem:[#allocation7 + $0xe8] ss:$16 sps:$4 sm:$0xff]  }
 0x208   :  { %2427 = vmatpush1.bf16.msra.mxu0 %v6089_v50  ;;  %v6175_v50 = vld [vmem:[#allocation7 + $0x104] ss:$16 sps:$4 sm:$0xff]  }
 0x209   :  { %2586 = vmatpush1.bf16.msra.mxu1 %v6092_v51  ;;  %2428 = vmatprep.subr.bf16.mxu0 %v6097_v52  ;;  %v6178_v51 = vld [vmem:[#allocation7 + $0x10c] ss:$16 sps:$4 sm:$0xff]   ;;  %v6173_v52 = vld [vmem:[#allocation7 + $0x100] ss:$16 sps:$4 sm:$0xff]  }
 0x20a   :  { %2587 = vmatprep.subr.bf16.mxu1 %v6100_v53  ;;  %v6176_v53 = vld [vmem:[#allocation7 + $0x108] ss:$16 sps:$4 sm:$0xff]  }
 0x20c   :  { %2429 = vmatpush1.bf16.msra.mxu0 %v6095_v54  ;;  %v6181_v54 = vld [vmem:[#allocation7 + $0x124] ss:$16 sps:$4 sm:$0xff]  }
 0x20d   :  { %2588 = vmatpush1.bf16.msra.mxu1 %v6098_v55  ;;  %2430 = vmatprep.subr.bf16.mxu0 %v6103_v56  ;;  %v6184_v55 = vld [vmem:[#allocation7 + $0x12c] ss:$16 sps:$4 sm:$0xff]   ;;  %v6179_v56 = vld [vmem:[#allocation7 + $0x120] ss:$16 sps:$4 sm:$0xff]  }
 0x20e   :  { %2589 = vmatprep.subr.bf16.mxu1 %v6106_v57  ;;  %v6182_v57 = vld [vmem:[#allocation7 + $0x128] ss:$16 sps:$4 sm:$0xff]  }
 0x210   :  { %2431 = vmatpush1.bf16.msra.mxu0 %v6101_v61  ;;  %v6187_v61 = vld [vmem:[#allocation7 + $0x144] ss:$16 sps:$4 sm:$0xff]  }
 0x211   :  { %2590 = vmatpush1.bf16.msra.mxu1 %v6104_v0  ;;  %2432 = vmatprep.subr.bf16.mxu0 %v6109_v58  ;;  %v6190_v0 = vld [vmem:[#allocation7 + $0x14c] ss:$16 sps:$4 sm:$0xff]   ;;  %v6185_v58 = vld [vmem:[#allocation7 + $0x140] ss:$16 sps:$4 sm:$0xff]  }
 0x212   :  { %2591 = vmatprep.subr.bf16.mxu1 %v6112_v46  ;;  %v6188_v46 = vld [vmem:[#allocation7 + $0x148] ss:$16 sps:$4 sm:$0xff]  }
 0x214   :  { %2433 = vmatpush1.bf16.msra.mxu0 %v6107_v47  ;;  %v6193_v47 = vld [vmem:[#allocation7 + $0x164] ss:$16 sps:$4 sm:$0xff]  }
 0x215   :  { %2592 = vmatpush1.bf16.msra.mxu1 %v6110_v2  ;;  %2434 = vmatprep.subr.bf16.mxu0 %v6115_v3  ;;  %v6196_v2 = vld [vmem:[#allocation7 + $0x16c] ss:$16 sps:$4 sm:$0xff]   ;;  %v6191_v3 = vld [vmem:[#allocation7 + $0x160] ss:$16 sps:$4 sm:$0xff]  }
 0x216   :  { %2593 = vmatprep.subr.bf16.mxu1 %v6118_v4  ;;  %v6194_v4 = vld [vmem:[#allocation7 + $0x168] ss:$16 sps:$4 sm:$0xff]  }
 0x218   :  { %2435 = vmatpush1.bf16.msra.mxu0 %v6113_v5  ;;  %v6199_v5 = vld [vmem:[#allocation7 + $0x184] ss:$16 sps:$4 sm:$0xff]  }
 0x219   :  { %2594 = vmatpush1.bf16.msra.mxu1 %v6116_v6  ;;  %2436 = vmatprep.subr.bf16.mxu0 %v6121_v59  ;;  %v6202_v6 = vld [vmem:[#allocation7 + $0x18c] ss:$16 sps:$4 sm:$0xff]   ;;  %v6197_v59 = vld [vmem:[#allocation7 + $0x180] ss:$16 sps:$4 sm:$0xff]  }
 0x21a   :  { %2595 = vmatprep.subr.bf16.mxu1 %v6124_v9  ;;  %v6200_v9 = vld [vmem:[#allocation7 + $0x188] ss:$16 sps:$4 sm:$0xff]  }
 0x21c   :  { %2437 = vmatpush1.bf16.msra.mxu0 %v6119_v10  ;;  %v6205_v10 = vld [vmem:[#allocation7 + $0x1a4] ss:$16 sps:$4 sm:$0xff]  }
 0x21d   :  { %2596 = vmatpush1.bf16.msra.mxu1 %v6122_v27  ;;  %3893 = vmatprep.subr.bf16.mxu0 %v6127_v11  ;;  %v6208_v27 = vld [vmem:[#allocation7 + $0x1ac] ss:$16 sps:$4 sm:$0xff]   ;;  %v6203_v11 = vld [vmem:[#allocation7 + $0x1a0] ss:$16 sps:$4 sm:$0xff]  }
 0x21e   :  { %4052 = vmatprep.subr.bf16.mxu1 %v6130_v1  ;;  %v6206_v1 = vld [vmem:[#allocation7 + $0x1a8] ss:$16 sps:$4 sm:$0xff]  }
 0x21f   :  { %5049 = vmatmul.mubr.msk.bf16.vlgmr.msra.gmra.mrb[8].mxu0 %vm6950_vm3, %v6907_v39 }
 0x220   :  { %5073 = vmatmul.mubr.msk.bf16.vlgmr.msra.gmra.mrb[8].mxu1 %vm6950_vm3, %v6907_v39  ;;  %5052 = vmatprep.mubr.msk.bf16.mxu0 %vm6964_vm5, %v6926_v44  ;;  %v6140_v39 = vld [vmem:[#allocation7 + $0x48] ss:$16 sps:$4 sm:$0xff]  }
 0x221   :  { %5076 = vmatprep.mubr.msk.bf16.mxu1 %vm6964_vm5, %v6926_v44  ;;  %3894 = vmatpush1.bf16.msra.mxu0 %v6125_v13  ;;  %v6148_v44 = vld [vmem:[#allocation7 + $0x6c] ss:$16 sps:$4 sm:$0xff]  }
 0x222   :  { %4053 = vmatpush1.bf16.msra.mxu1 %v6128_v63  ;;  %3895 = vmatprep.subr.bf16.mxu0 %v6133_v14  ;;  %v6214_v13 = vld [vmem:[#allocation7 + $0x1cc] ss:$16 sps:$4 sm:$0xff]   ;;  %v6209_v63 = vld [vmem:[#allocation7 + $0x1c0] ss:$16 sps:$4 sm:$0xff]   ;;  %v6212_v14 = vld [vmem:[#allocation7 + $0x1c8] ss:$16 sps:$4 sm:$0xff]  }
 0x223   :  { %4054 = vmatprep.subr.bf16.mxu1 %v6136_v8  ;;  %v6217_v8 = vld [vmem:[#allocation7 + $0x1e4] ss:$16 sps:$4 sm:$0xff]  }
 0x225   :  { %3896 = vmatpush1.bf16.msra.mxu0 %v6131_v17  ;;  %v6220_v17 = vld [vmem:[#allocation7 + $0x1ec] ss:$16 sps:$4 sm:$0xff]  }
 0x226   :  { %4055 = vmatpush1.bf16.msra.mxu1 %v6134_v25  ;;  %3897 = vmatprep.subr.bf16.mxu0 %v6139_v26  ;;  %v6215_v25 = vld [vmem:[#allocation7 + $0x1e0] ss:$16 sps:$4 sm:$0xff]   ;;  %v6218_v26 = vld [vmem:[#allocation7 + $0x1e8] ss:$16 sps:$4 sm:$0xff]  }
 0x227   :  { %5055 = vmatmul.mubr.msk.bf16.gmra.mrb[12].mxu0 %vm6964_vm5, %v6928_v48  ;;  %4056 = vmatprep.subr.bf16.mxu1 %v6142_v28  ;;  %v6223_v28 = vld [vmem:[#allocation7 + $0x204] ss:$16 sps:$4 sm:$0xff]  }
 0x228   :  { %5079 = vmatmul.mubr.msk.bf16.gmra.mrb[12].mxu1 %vm6964_vm5, %v6928_v48  ;;  %v6158_v48 = vld [vmem:[#allocation7 + $0xa8] ss:$16 sps:$4 sm:$0xff]  }
 0x229   :  { %3898 = vmatpush1.bf16.msra.mxu0 %v6137_v29  ;;  %v6226_v29 = vld [vmem:[#allocation7 + $0x20c] ss:$16 sps:$4 sm:$0xff]  }
 0x22a   :  { %4057 = vmatpush1.bf16.msra.mxu1 %v6140_v39  ;;  %3899 = vmatprep.subr.bf16.mxu0 %v6145_v49  ;;  %v1318_v39 = vld [vmem:[%s7194_s5] sm:$0xf] }
 0x22b   :  { %4058 = vmatprep.subr.bf16.mxu1 %v6148_v44  ;;  %v1323_v49 = vrot.slane %v1318_v39, %v6808_v15  ;;  %v1331_v44 = vrot.slane %v1318_v39, %v6811_v16 }
 0x22d   :  { %3900 = vmatpush1.bf16.msra.mxu0 %v6143_v20  ;;  %v1327_v20 = vrot.slane %v1318_v39, %v6817_v18 }
 0x22e   :  { %4059 = vmatpush1.bf16.msra.mxu1 %v6146_v30  ;;  %3901 = vmatprep.subr.bf16.mxu0 %v6151_v31  ;;  %v1335_v30 = vrot.slane %v1318_v39, %v6820_v19 }
 0x22f   :  { %4060 = vmatprep.subr.bf16.mxu1 %v6154_v32 }
 0x231   :  { %3902 = vmatpush1.bf16.msra.mxu0 %v6149_v33 }
 0x232   :  { %4061 = vmatpush1.bf16.msra.mxu1 %v6152_v34  ;;  %3903 = vmatprep.subr.bf16.mxu0 %v6157_v35 }
 0x233   :  { %4062 = vmatprep.subr.bf16.mxu1 %v6160_v36 }
 0x235   :  { %3904 = vmatpush1.bf16.msra.mxu0 %v6155_v37 }
 0x236   :  { %4063 = vmatpush1.bf16.msra.mxu1 %v6158_v48  ;;  %3905 = vmatprep.subr.bf16.mxu0 %v6163_v38 }
 0x237   :  { %4064 = vmatprep.subr.bf16.mxu1 %v6166_v40 }
 0x239   :  { %3906 = vmatpush1.bf16.msra.mxu0 %v6161_v23 }
 0x23a   :  { %4065 = vmatpush1.bf16.msra.mxu1 %v6164_v24  ;;  %3907 = vmatprep.subr.bf16.mxu0 %v6169_v41 }
 0x23b   :  { %4066 = vmatprep.subr.bf16.mxu1 %v6172_v42 }
 0x23d   :  { %3908 = vmatpush1.bf16.msra.mxu0 %v6167_v43 }
 0x23e   :  { %4067 = vmatpush1.bf16.msra.mxu1 %v6170_v21  ;;  %3909 = vmatprep.subr.bf16.mxu0 %v6175_v50 }
 0x23f   :  { %4068 = vmatprep.subr.bf16.mxu1 %v6178_v51 }
 0x241   :  { %3910 = vmatpush1.bf16.msra.mxu0 %v6173_v52 }
 0x242   :  { %4069 = vmatpush1.bf16.msra.mxu1 %v6176_v53  ;;  %3911 = vmatprep.subr.bf16.mxu0 %v6181_v54 }
 0x243   :  { %4070 = vmatprep.subr.bf16.mxu1 %v6184_v55 }
 0x245   :  { %3912 = vmatpush1.bf16.msra.mxu0 %v6179_v56 }
 0x246   :  { %4071 = vmatpush1.bf16.msra.mxu1 %v6182_v57  ;;  %3913 = vmatprep.subr.bf16.mxu0 %v6187_v61 }
 0x247   :  { %4072 = vmatprep.subr.bf16.mxu1 %v6190_v0 }
 0x249   :  { %3914 = vmatpush1.bf16.msra.mxu0 %v6185_v58 }
 0x24a   :  { %4073 = vmatpush1.bf16.msra.mxu1 %v6188_v46  ;;  %3915 = vmatprep.subr.bf16.mxu0 %v6193_v47 }
 0x24b   :  { %4074 = vmatprep.subr.bf16.mxu1 %v6196_v2 }
 0x24d   :  { %3916 = vmatpush1.bf16.msra.mxu0 %v6191_v3 }
 0x24e   :  { %4075 = vmatpush1.bf16.msra.mxu1 %v6194_v4  ;;  %3917 = vmatprep.subr.bf16.mxu0 %v6199_v5 }
 0x24f   :  { %4076 = vmatprep.subr.bf16.mxu1 %v6202_v6 }
 0x251   :  { %3918 = vmatpush1.bf16.msra.mxu0 %v6197_v59 }
 0x252   :  { %4077 = vmatpush1.bf16.msra.mxu1 %v6200_v9  ;;  %3919 = vmatprep.subr.bf16.mxu0 %v6205_v10 }
 0x253   :  { %4078 = vmatprep.subr.bf16.mxu1 %v6208_v27 }
 0x255   :  { %3920 = vmatpush1.bf16.msra.mxu0 %v6203_v11 }
 0x256   :  { %4079 = vmatpush1.bf16.msra.mxu1 %v6206_v1  ;;  %3921 = vmatprep.subr.bf16.mxu0 %v6211_v12 }
 0x257   :  { %4080 = vmatprep.subr.bf16.mxu1 %v6214_v13 }
 0x259   :  { %3922 = vmatpush1.bf16.msra.mxu0 %v6209_v63 }
 0x25a   :  { %4081 = vmatpush1.bf16.msra.mxu1 %v6212_v14  ;;  %3923 = vmatprep.subr.bf16.mxu0 %v6217_v8 }
 0x25b   :  { %4082 = vmatprep.subr.bf16.mxu1 %v6220_v17 }
 0x25d   :  { %3924 = vmatpush1.bf16.msra.mxu0 %v6215_v25 }
 0x25e   :  { %4083 = vmatpush1.bf16.msra.mxu1 %v6218_v26  ;;  %3946 = vmatprep.subr.bf16.mxu0 %v6223_v28 }
 0x25f   :  { %4105 = vmatprep.subr.bf16.mxu1 %v6226_v29 }
 0x2f2   :  { %v2440_v31 = vpop.f32.mrb[8].mxu0 }
 0x2f3   :  { %v5566_v32 = vadd.f32 %v2440_v31, %v1323_v49  ;;  %v2599_v33 = vpop.f32.mrb[8].mxu1  ;;  %v2442_v34 = vpop.f32.mrb[9].mxu0 }
 0x2f4   :  { %v5574_v35 = vadd.f32 %v2599_v33, %v1331_v44  ;;  %v5567_v36 = vadd.f32 %v2442_v34, %v1327_v20  ;;  %v2601_v37 = vpop.f32.mrb[9].mxu1  ;;  %v2444_v48 = vpop.f32.mrb[10].mxu0 }
 0x2f5   :  { %v2618_v38 = vmax.f32 %v5566_v32, 0.0  ;;  %v5575_v40 = vadd.f32 %v2601_v37, %v1335_v30  ;;  %v5568_v23 = vadd.f32 %v2444_v48, %v1323_v49  ;;  %v2603_v24 = vpop.f32.mrb[10].mxu1  ;;  %v2446_v41 = vpop.f32.mrb[11].mxu0 }
 0x2f6   :  { %v2620_v42 = vmax.f32 %v5574_v35, 0.0  ;;  %v2619_v43 = vmax.f32 %v5567_v36, 0.0  ;;  %v5576_v21 = vadd.f32 %v2603_v24, %v1331_v44  ;;  %v5569_v50 = vadd.f32 %v2446_v41, %v1327_v20  ;;  %v2605_v51 = vpop.f32.mrb[11].mxu1 }
 0x2f7   :  { %v2621_v52 = vmax.f32 %v5575_v40, 0.0  ;;  %v2622_v53 = vmax.f32 %v5568_v23, 0.0  ;;  %v5577_v54 = vadd.f32 %v2605_v51, %v1335_v30 }
 0x2f8   :  { %v2634_v55 = vmax.f32 %v2618_v38, %v2620_v42  ;;  %v2624_v56 = vmax.f32 %v5576_v21, 0.0  ;;  %v2623_v57 = vmax.f32 %v5569_v50, 0.0 }
 0x2f9   :  { %v6993_v61 = vmax.f32 %v2619_v43, %v2621_v52  ;;  %v2625_v0 = vmax.f32 %v5577_v54, 0.0 }
 0x2fa   :  { %v2636_v58 = vmax.f32 %v2622_v53, %v2624_v56  ;;  %v2450_v46 = vpop.f32.mrb[12].mxu0  ;;  %v2642_v47 = vrot.slane %v2634_v55, 2 }
 0x2fb   :  { %v2637_v2 = vmax.f32 %v2623_v57, %v2625_v0  ;;  %v5570_v3 = vadd.f32 %v2450_v46, %v1323_v49  ;;  %v2609_v4 = vpop.f32.mrb[12].mxu1  ;;  %v2452_v5 = vpop.f32.mrb[13].mxu0  ;;  %v2643_v6 = vrot.slane %v6993_v61, 2 }
 0x2fc   :  { %v2644_v59 = vrot.slane %v2636_v58, 2  ;;  %v5578_v9 = vadd.f32 %v2609_v4, %v1331_v44  ;;  %v5571_v10 = vadd.f32 %v2452_v5, %v1327_v20  ;;  %v2611_v27 = vpop.f32.mrb[13].mxu1  ;;  %v2454_v11 = vpop.f32.mrb[14].mxu0 }
 0x2fd   :  { %v2645_v1 = vrot.slane %v2637_v2, 2  ;;  %v2626_v12 = vmax.f32 %v5570_v3, 0.0  ;;  %v5579_v13 = vadd.f32 %v2611_v27, %v1335_v30  ;;  %v5572_v63 = vadd.f32 %v2454_v11, %v1323_v49  ;;  %v2613_v14 = vpop.f32.mrb[14].mxu1  ;;  %v2456_v8 = vpop.f32.mrb[15].mxu0 }
 0x2fe   :  { %v2654_v17 = vsel %vm1097_vm12, %v2642_v47, %v2644_v59  ;;  %v2628_v25 = vmax.f32 %v5578_v9, 0.0  ;;  %v2627_v26 = vmax.f32 %v5571_v10, 0.0  ;;  %v5580_v28 = vadd.f32 %v2613_v14, %v1331_v44  ;;  %v2615_v29 = vpop.f32.mrb[15].mxu1 }
 0x2ff   :  { %v2658_v39 = vmax.f32 %v2634_v55, %v2654_v17  ;;  %v2655_v31 = vsel %vm1097_vm12, %v2643_v6, %v2645_v1  ;;  %v2629_v32 = vmax.f32 %v5579_v13, 0.0  ;;  %v2630_v33 = vmax.f32 %v5572_v63, 0.0 }
 0x300   :  { %v2659_v34 = vmax.f32 %v6993_v61, %v2655_v31  ;;  %v2638_v35 = vmax.f32 %v2626_v12, %v2628_v25  ;;  %v2632_v36 = vmax.f32 %v5580_v28, 0.0  ;;  %v5573_v49 = vadd.f32 %v2456_v8, %v1327_v20  ;;  %v6221_v31 = vld [vmem:[#allocation7 + $0x200] ss:$16 sps:$4 sm:$0xff]  }
 0x301   :  { %v2639_v37 = vmax.f32 %v2627_v26, %v2629_v32  ;;  %v5581_v48 = vadd.f32 %v2615_v29, %v1335_v30  ;;  %v2670_v20 = vrot.slane %v2658_v39, 4  ;;  %v6224_v32 = vld [vmem:[#allocation7 + $0x208] ss:$16 sps:$4 sm:$0xff]  }
 0x302   :  { %v2646_v38 = vrot.slane %v2638_v35, 2  ;;  %v2640_v40 = vmax.f32 %v2630_v33, %v2632_v36  ;;  %v2631_v23 = vmax.f32 %v5573_v49, 0.0  ;;  %v2671_v57 = vrot.slane %v2659_v34, 4  ;;  %v6230_v36 = vld [vmem:[#allocation7 + $0x228] ss:$16 sps:$4 sm:$0xff]  }
 0x303   :  { %v2647_v24 = vrot.slane %v2639_v37, 2  ;;  %v2633_v41 = vmax.f32 %v5581_v48, 0.0  ;;  %v6235_v49 = vld [vmem:[#allocation7 + $0x244] ss:$16 sps:$4 sm:$0xff]   ;;  %v6233_v48 = vld [vmem:[#allocation7 + $0x240] ss:$16 sps:$4 sm:$0xff]  }
 0x304   :  { %v2652_v44 = vsel %vm1097_vm12, %v2644_v59, %v2646_v38  ;;  %v2648_v42 = vrot.slane %v2640_v40, 2 }
 0x305   :  { %v2660_v43 = vmax.f32 %v2636_v58, %v2652_v44  ;;  %v2653_v21 = vsel %vm1097_vm12, %v2645_v1, %v2647_v24  ;;  %v2641_v50 = vmax.f32 %v2631_v23, %v2633_v41  ;;  %v6244_v23 = vld [vmem:[#allocation7 + $0x26c] ss:$16 sps:$4 sm:$0xff]   ;;  %v6242_v41 = vld [vmem:[#allocation7 + $0x268] ss:$16 sps:$4 sm:$0xff]   ;;  %v6247_v44 = vld [vmem:[#allocation7 + $0x284] ss:$16 sps:$4 sm:$0xff]  }
 0x306   :  { %v2661_v30 = vmax.f32 %v2637_v2, %v2653_v21  ;;  %v2650_v51 = vsel %vm1097_vm12, %v2646_v38, %v2648_v42  ;;  %v2656_v52 = vsel %vm1097_vm12, %v2648_v42, %v2642_v47  ;;  %v6236_v38 = vld [vmem:[#allocation7 + $0x248] ss:$16 sps:$4 sm:$0xff]   ;;  %v6250_v42 = vld [vmem:[#allocation7 + $0x28c] ss:$16 sps:$4 sm:$0xff]  }
 0x307   :  { %v2672_v53 = vrot.slane %v2660_v43, 4  ;;  %v2662_v54 = vmax.f32 %v2638_v35, %v2650_v51  ;;  %v2664_v55 = vmax.f32 %v2640_v40, %v2656_v52  ;;  %v2649_v56 = vrot.slane %v2641_v50, 2  ;;  %v6229_v35 = vld [vmem:[#allocation7 + $0x224] ss:$16 sps:$4 sm:$0xff]   ;;  %v6248_v21 = vld [vmem:[#allocation7 + $0x288] ss:$16 sps:$4 sm:$0xff]  }
 0x308   :  { %v2673_v61 = vrot.slane %v2661_v30, 4  ;;  %v7011_v0 = vpack.c.bf16 %v2661_v30, %v2659_v34  ;;  %v7013_v58 = vpack.c.bf16 %v2660_v43, %v2658_v39  ;;  %v6241_v40 = vld [vmem:[#allocation7 + $0x264] ss:$16 sps:$4 sm:$0xff]   ;;  %v6245_v43 = vld [vmem:[#allocation7 + $0x280] ss:$16 sps:$4 sm:$0xff]  }
 0x309   :  { %v2674_v46 = vrot.slane %v2662_v54, 4  ;;  %v2676_v3 = vrot.slane %v2664_v55, 4  ;;  %v2683_v2 = vsel %vm2678_vm6, %v2670_v20, %v2672_v53  ;;  %v2651_v4 = vsel %vm1097_vm12, %v2647_v24, %v2649_v56  ;;  %v6239_v24 = vld [vmem:[#allocation7 + $0x260] ss:$16 sps:$4 sm:$0xff]   ;;  %v6254_v51 = vld [vmem:[#allocation7 + $0x2a8] ss:$16 sps:$4 sm:$0xff]  }
 0x30a   :  { %v2657_v47 = vsel %vm1097_vm12, %v2649_v56, %v2643_v6  ;;  %v2663_v5 = vmax.f32 %v2639_v37, %v2651_v4  ;;  %v2684_v59 = vsel %vm2678_vm6, %v2671_v57, %v2673_v61  ;;  %v7023_v9 = vpack.c.bf16 %v2664_v55, %v2662_v54  ;;  %v6238_v37 = vld [vmem:[#allocation7 + $0x24c] ss:$16 sps:$4 sm:$0xff]   ;;  %v6251_v30 = vld [vmem:[#allocation7 + $0x2a0] ss:$16 sps:$4 sm:$0xff]   ;;  %v6259_v52 = vld [vmem:[#allocation7 + $0x2c4] ss:$16 sps:$4 sm:$0xff]  }
 0x30b   :  { %v2685_v10 = vsel %vm2678_vm6, %v2676_v3, %v2670_v20  ;;  %v2665_v27 = vmax.f32 %v2641_v50, %v2657_v47  ;;  %v2679_v11 = vsel %vm2678_vm6, %v2674_v46, %v2676_v3  ;;  %v2681_v1 = vsel %vm2678_vm6, %v2672_v53, %v2674_v46  ;;  %v6253_v50 = vld [vmem:[#allocation7 + $0x2a4] ss:$16 sps:$4 sm:$0xff]   ;;  %v6256_v20 = vld [vmem:[#allocation7 + $0x2ac] ss:$16 sps:$4 sm:$0xff]   ;;  %v6257_v54 = vld [vmem:[#allocation7 + $0x2c0] ss:$16 sps:$4 sm:$0xff]  }
 0x30c   :  { %v5276_v12 = vpack.c.bf16 %v2683_v2, %v2685_v10  ;;  %v2675_v13 = vrot.slane %v2663_v5, 4  ;;  %v5282_v63 = vpack.c.bf16 %v2679_v11, %v2681_v1  ;;  %v7031_v6 = vpack.c.bf16 %v2681_v1, %v2683_v2  ;;  %v6262_v53 = vld [vmem:[#allocation7 + $0x2cc] ss:$16 sps:$4 sm:$0xff]   ;;  %v6260_v55 = vld [vmem:[#allocation7 + $0x2c8] ss:$16 sps:$4 sm:$0xff]   ;;  %vm7072_vm12 = vmpackc.low %vm2696_vm11, %vm6565_vm2 }
 0x30d   :  { %v2677_v14 = vrot.slane %v2665_v27, 4  ;;  %v7033_v8 = vpack.c.bf16 %v2665_v27, %v2663_v5  ;;  %v7035_v17 = vpack.c.bf16 %v2685_v10, %v2679_v11  ;;  %v6265_v56 = vld [vmem:[#allocation7 + $0x2e4] ss:$16 sps:$4 sm:$0xff]   ;;  %v6274_v3 = vld [vmem:[#allocation7 + $0x30c] ss:$16 sps:$4 sm:$0xff]   ;;  %vm4228_vm2 = vcmask 261120  }
 0x30e   :  { %v2682_v25 = vsel %vm2678_vm6, %v2673_v61, %v2675_v13  ;;  %v6263_v61 = vld [vmem:[#allocation7 + $0x2e0] ss:$16 sps:$4 sm:$0xff]   ;;  %v6271_v46 = vld [vmem:[#allocation7 + $0x304] ss:$16 sps:$4 sm:$0xff]   ;;  %v6272_v4 = vld [vmem:[#allocation7 + $0x308] ss:$16 sps:$4 sm:$0xff]  }
 0x30f   :  { %v2686_v26 = vsel %vm2678_vm6, %v2677_v14, %v2671_v57  ;;  %v2680_v28 = vsel %vm2678_vm6, %v2675_v13, %v2677_v14  ;;  %v7047_v29 = vpack.c.bf16 %v2682_v25, %v2684_v59  ;;  %v6268_v57 = vld [vmem:[#allocation7 + $0x2ec] ss:$16 sps:$4 sm:$0xff]   ;;  %v6269_v2 = vld [vmem:[#allocation7 + $0x300] ss:$16 sps:$4 sm:$0xff]   ;;  %v6277_v47 = vld [vmem:[#allocation7 + $0x324] ss:$16 sps:$4 sm:$0xff]  }
 0x310   :  { %v5273_v39 = vpack.c.bf16 %v2684_v59, %v2686_v26  ;;  %v5279_v33 = vpack.c.bf16 %v2680_v28, %v2682_v25  ;;  %v7049_v34 = vpack.c.bf16 %v2686_v26, %v2680_v28  ;;  %v6280_v5 = vld [vmem:[#allocation7 + $0x32c] ss:$16 sps:$4 sm:$0xff]   ;;  %v6275_v59 = vld [vmem:[#allocation7 + $0x320] ss:$16 sps:$4 sm:$0xff]   ;;  %v6278_v10 = vld [vmem:[#allocation7 + $0x328] ss:$16 sps:$4 sm:$0xff]  }
 0x311   :  { %v6283_v27 = vld [vmem:[#allocation7 + $0x344] ss:$16 sps:$4 sm:$0xff]   ;;  %v6286_v11 = vld [vmem:[#allocation7 + $0x34c] ss:$16 sps:$4 sm:$0xff]   ;;  %v6281_v1 = vld [vmem:[#allocation7 + $0x340] ss:$16 sps:$4 sm:$0xff]  }
 0x312   :  { %5274 = vmatprep.mubr.msk.bf16.mxu0 %vm5272_vm8, %v5273_v39  ;;  %5298 = vmatprep.mubr.msk.bf16.mxu1 %vm5272_vm8, %v5273_v39  ;;  %v6289_v13 = vld [vmem:[#allocation7 + $0x364] ss:$16 sps:$4 sm:$0xff]   ;;  %v6287_v14 = vld [vmem:[#allocation7 + $0x360] ss:$16 sps:$4 sm:$0xff]   ;;  %v6290_v25 = vld [vmem:[#allocation7 + $0x368] ss:$16 sps:$4 sm:$0xff]  }
 0x313   :  { %5277 = vmatmul.mubr.msk.bf16.vlgmr.msra.gmra.mrb[16].mxu0 %vm5272_vm8, %v5276_v12  ;;  %5301 = vmatmul.mubr.msk.bf16.vlgmr.msra.gmra.mrb[16].mxu1 %vm5272_vm8, %v5276_v12  ;;  %v6284_v12 = vld [vmem:[#allocation7 + $0x348] ss:$16 sps:$4 sm:$0xff]   ;;  %v6295_v26 = vld [vmem:[#allocation7 + $0x384] ss:$16 sps:$4 sm:$0xff]   ;;  %v6298_v28 = vld [vmem:[#allocation7 + $0x38c] ss:$16 sps:$4 sm:$0xff]  }
 0x314   :  { %3947 = vmatpush1.bf16.msra.mxu0 %v6221_v31  ;;  %4106 = vmatpush1.bf16.msra.mxu1 %v6224_v32  ;;  %v6293_v39 = vld [vmem:[#allocation7 + $0x380] ss:$16 sps:$4 sm:$0xff]   ;;  %v6296_v31 = vld [vmem:[#allocation7 + $0x388] ss:$16 sps:$4 sm:$0xff]   ;;  %v6301_v32 = vld [vmem:[#allocation7 + $0x3a4] ss:$16 sps:$4 sm:$0xff]  }
 0x315   :  { %5280 = vmatprep.mubr.msk.bf16.mxu0 %vm7052_vm10, %v5279_v33  ;;  %5304 = vmatprep.mubr.msk.bf16.mxu1 %vm7052_vm10, %v5279_v33  ;;  %v6304_v33 = vld [vmem:[#allocation7 + $0x3ac] ss:$16 sps:$4 sm:$0xff]  }
 0x316   :  { %3948 = vmatprep.subr.bf16.mxu0 %v6229_v35  ;;  %4107 = vmatprep.subr.bf16.mxu1 %v6232_v22  ;;  %v6302_v35 = vld [vmem:[#allocation7 + $0x3a8] ss:$16 sps:$4 sm:$0xff]   ;;  %v6307_v22 = vld [vmem:[#allocation7 + $0x3c4] ss:$16 sps:$4 sm:$0xff]  }
 0x318   :  { %3949 = vmatpush1.bf16.msra.mxu0 %v6227_v62  ;;  %4108 = vmatpush1.bf16.msra.mxu1 %v6230_v36  ;;  %v6310_v62 = vld [vmem:[#allocation7 + $0x3cc] ss:$16 sps:$4 sm:$0xff]   ;;  %v6305_v36 = vld [vmem:[#allocation7 + $0x3c0] ss:$16 sps:$4 sm:$0xff]  }
 0x319   :  { %3950 = vmatprep.subr.bf16.mxu0 %v6235_v49  ;;  %4109 = vmatprep.subr.bf16.mxu1 %v6238_v37  ;;  %v6308_v49 = vld [vmem:[#allocation7 + $0x3c8] ss:$16 sps:$4 sm:$0xff]   ;;  %v6313_v37 = vld [vmem:[#allocation7 + $0x3e4] ss:$16 sps:$4 sm:$0xff]  }
 0x31b   :  { %5283 = vmatmul.mubr.msk.bf16.gmra.mrb[20].mxu0 %vm7052_vm10, %v5282_v63  ;;  %5307 = vmatmul.mubr.msk.bf16.gmra.mrb[20].mxu1 %vm7052_vm10, %v5282_v63  ;;  %v6292_v63 = vld [vmem:[#allocation7 + $0x36c] ss:$16 sps:$4 sm:$0xff]  }
 0x31c   :  { %3951 = vmatpush1.bf16.msra.mxu0 %v6233_v48  ;;  %4110 = vmatpush1.bf16.msra.mxu1 %v6236_v38  ;;  %v6316_v48 = vld [vmem:[#allocation7 + $0x3ec] ss:$16 sps:$4 sm:$0xff]   ;;  %v6311_v38 = vld [vmem:[#allocation7 + $0x3e0] ss:$16 sps:$4 sm:$0xff]  }
 0x31d   :  { %3978 = vmatprep.mubr.bf16.mxu0 %v7011_v0  ;;  %4137 = vmatprep.mubr.bf16.mxu1 %v7011_v0  ;;  %v6266_v0 = vld [vmem:[#allocation7 + $0x2e8] ss:$16 sps:$4 sm:$0xff]  }
 0x31e   :  { %3952 = vmatprep.subr.bf16.mxu0 %v6241_v40  ;;  %4111 = vmatprep.subr.bf16.mxu1 %v6244_v23  ;;  %v6314_v40 = vld [vmem:[#allocation7 + $0x3e8] ss:$16 sps:$4 sm:$0xff]   ;;  %v6319_v23 = vld [vmem:[#allocation7 + $0x404] ss:$16 sps:$4 sm:$0xff]  }
 0x320   :  { %3953 = vmatpush1.bf16.msra.mxu0 %v6239_v24  ;;  %4112 = vmatpush1.bf16.msra.mxu1 %v6242_v41  ;;  %v6322_v24 = vld [vmem:[#allocation7 + $0x40c] ss:$16 sps:$4 sm:$0xff]   ;;  %v6317_v41 = vld [vmem:[#allocation7 + $0x400] ss:$16 sps:$4 sm:$0xff]  }
 0x321   :  { %3954 = vmatprep.subr.bf16.mxu0 %v6247_v44  ;;  %4113 = vmatprep.subr.bf16.mxu1 %v6250_v42  ;;  %v6320_v44 = vld [vmem:[#allocation7 + $0x408] ss:$16 sps:$4 sm:$0xff]   ;;  %v6325_v42 = vld [vmem:[#allocation7 + $0x424] ss:$16 sps:$4 sm:$0xff]  }
 0x324   :  { %3955 = vmatpush1.bf16.msra.mxu0 %v6245_v43  ;;  %4114 = vmatpush1.bf16.msra.mxu1 %v6248_v21  ;;  %v6328_v43 = vld [vmem:[#allocation7 + $0x42c] ss:$16 sps:$4 sm:$0xff]   ;;  %v6323_v21 = vld [vmem:[#allocation7 + $0x420] ss:$16 sps:$4 sm:$0xff]  }
 0x325   :  { %3956 = vmatprep.subr.bf16.mxu0 %v6253_v50  ;;  %4115 = vmatprep.subr.bf16.mxu1 %v6256_v20  ;;  %v6326_v50 = vld [vmem:[#allocation7 + $0x428] ss:$16 sps:$4 sm:$0xff]   ;;  %v6331_v20 = vld [vmem:[#allocation7 + $0x444] ss:$16 sps:$4 sm:$0xff]  }
 0x328   :  { %3957 = vmatpush1.bf16.msra.mxu0 %v6251_v30  ;;  %4116 = vmatpush1.bf16.msra.mxu1 %v6254_v51  ;;  %v6334_v30 = vld [vmem:[#allocation7 + $0x44c] ss:$16 sps:$4 sm:$0xff]   ;;  %v6329_v51 = vld [vmem:[#allocation7 + $0x440] ss:$16 sps:$4 sm:$0xff]  }
 0x329   :  { %3958 = vmatprep.subr.bf16.mxu0 %v6259_v52  ;;  %4117 = vmatprep.subr.bf16.mxu1 %v6262_v53  ;;  %v6332_v52 = vld [vmem:[#allocation7 + $0x448] ss:$16 sps:$4 sm:$0xff]   ;;  %v6340_v53 = vld [vmem:[#allocation7 + $0x46c] ss:$16 sps:$4 sm:$0xff]  }
 0x32c   :  { %3959 = vmatpush1.bf16.msra.mxu0 %v6257_v54  ;;  %4118 = vmatpush1.bf16.msra.mxu1 %v6260_v55  ;;  %v6338_v54 = vld [vmem:[#allocation7 + $0x468] ss:$16 sps:$4 sm:$0xff]   ;;  %v6343_v55 = vld [vmem:[#allocation7 + $0x484] ss:$16 sps:$4 sm:$0xff]  }
 0x32d   :  { %3960 = vmatprep.subr.bf16.mxu0 %v6265_v56  ;;  %4119 = vmatprep.subr.bf16.mxu1 %v6268_v57  ;;  %v6346_v56 = vld [vmem:[#allocation7 + $0x48c] ss:$16 sps:$4 sm:$0xff]   ;;  %v6341_v57 = vld [vmem:[#allocation7 + $0x480] ss:$16 sps:$4 sm:$0xff]  }
 0x330   :  { %3961 = vmatpush1.bf16.msra.mxu0 %v6263_v61  ;;  %4120 = vmatpush1.bf16.msra.mxu1 %v6266_v0  ;;  %v6349_v61 = vld [vmem:[#allocation7 + $0x4a4] ss:$16 sps:$4 sm:$0xff]   ;;  %v6352_v0 = vld [vmem:[#allocation7 + $0x4ac] ss:$16 sps:$4 sm:$0xff]  }
 0x331   :  { %3962 = vmatprep.subr.bf16.mxu0 %v6271_v46  ;;  %4121 = vmatprep.subr.bf16.mxu1 %v6274_v3  ;;  %v6347_v46 = vld [vmem:[#allocation7 + $0x4a0] ss:$16 sps:$4 sm:$0xff]   ;;  %v6350_v3 = vld [vmem:[#allocation7 + $0x4a8] ss:$16 sps:$4 sm:$0xff]  }
 0x334   :  { %3963 = vmatpush1.bf16.msra.mxu0 %v6269_v2  ;;  %4122 = vmatpush1.bf16.msra.mxu1 %v6272_v4  ;;  %v6355_v2 = vld [vmem:[#allocation7 + $0x4c4] ss:$16 sps:$4 sm:$0xff]   ;;  %v6353_v4 = vld [vmem:[#allocation7 + $0x4c0] ss:$16 sps:$4 sm:$0xff]  }
 0x335   :  { %3964 = vmatprep.subr.bf16.mxu0 %v6277_v47  ;;  %4123 = vmatprep.subr.bf16.mxu1 %v6280_v5  ;;  %v6356_v47 = vld [vmem:[#allocation7 + $0x4c8] ss:$16 sps:$4 sm:$0xff]   ;;  %v6361_v5 = vld [vmem:[#allocation7 + $0x4e4] ss:$16 sps:$4 sm:$0xff]  }
 0x338   :  { %3965 = vmatpush1.bf16.msra.mxu0 %v6275_v59  ;;  %4124 = vmatpush1.bf16.msra.mxu1 %v6278_v10  ;;  %v6364_v59 = vld [vmem:[#allocation7 + $0x4ec] ss:$16 sps:$4 sm:$0xff]   ;;  %v6359_v10 = vld [vmem:[#allocation7 + $0x4e0] ss:$16 sps:$4 sm:$0xff]  }
 0x339   :  { %3966 = vmatprep.subr.bf16.mxu0 %v6283_v27  ;;  %4125 = vmatprep.subr.bf16.mxu1 %v6286_v11  ;;  %v6362_v27 = vld [vmem:[#allocation7 + $0x4e8] ss:$16 sps:$4 sm:$0xff]   ;;  %v6367_v11 = vld [vmem:[#allocation7 + $0x504] ss:$16 sps:$4 sm:$0xff]  }
 0x33c   :  { %3967 = vmatpush1.bf16.msra.mxu0 %v6281_v1  ;;  %4126 = vmatpush1.bf16.msra.mxu1 %v6284_v12  ;;  %v6370_v1 = vld [vmem:[#allocation7 + $0x50c] ss:$16 sps:$4 sm:$0xff]   ;;  %v6365_v12 = vld [vmem:[#allocation7 + $0x500] ss:$16 sps:$4 sm:$0xff]  }
 0x33d   :  { %3968 = vmatprep.subr.bf16.mxu0 %v6289_v13  ;;  %4127 = vmatprep.subr.bf16.mxu1 %v6292_v63  ;;  %v6368_v13 = vld [vmem:[#allocation7 + $0x508] ss:$16 sps:$4 sm:$0xff]   ;;  %v6373_v63 = vld [vmem:[#allocation7 + $0x524] ss:$16 sps:$4 sm:$0xff]  }
 0x340   :  { %3969 = vmatpush1.bf16.msra.mxu0 %v6287_v14  ;;  %4128 = vmatpush1.bf16.msra.mxu1 %v6290_v25  ;;  %v6376_v14 = vld [vmem:[#allocation7 + $0x52c] ss:$16 sps:$4 sm:$0xff]   ;;  %v6371_v25 = vld [vmem:[#allocation7 + $0x520] ss:$16 sps:$4 sm:$0xff]  }
 0x341   :  { %3970 = vmatprep.subr.bf16.mxu0 %v6295_v26  ;;  %4129 = vmatprep.subr.bf16.mxu1 %v6298_v28  ;;  %v6374_v26 = vld [vmem:[#allocation7 + $0x528] ss:$16 sps:$4 sm:$0xff]   ;;  %v6379_v28 = vld [vmem:[#allocation7 + $0x544] ss:$16 sps:$4 sm:$0xff]  }
 0x344   :  { %3971 = vmatpush1.bf16.msra.mxu0 %v6293_v39  ;;  %4130 = vmatpush1.bf16.msra.mxu1 %v6296_v31  ;;  %v6382_v39 = vld [vmem:[#allocation7 + $0x54c] ss:$16 sps:$4 sm:$0xff]   ;;  %v6377_v31 = vld [vmem:[#allocation7 + $0x540] ss:$16 sps:$4 sm:$0xff]  }
 0x345   :  { %3972 = vmatprep.subr.bf16.mxu0 %v6301_v32  ;;  %4131 = vmatprep.subr.bf16.mxu1 %v6304_v33  ;;  %v6380_v32 = vld [vmem:[#allocation7 + $0x548] ss:$16 sps:$4 sm:$0xff]   ;;  %v6385_v33 = vld [vmem:[#allocation7 + $0x564] ss:$16 sps:$4 sm:$0xff]  }
 0x348   :  { %3973 = vmatpush1.bf16.msra.mxu0 %v6299_v7  ;;  %4132 = vmatpush1.bf16.msra.mxu1 %v6302_v35  ;;  %v6388_v7 = vld [vmem:[#allocation7 + $0x56c] ss:$16 sps:$4 sm:$0xff]   ;;  %v6383_v35 = vld [vmem:[#allocation7 + $0x560] ss:$16 sps:$4 sm:$0xff]  }
 0x349   :  { %3974 = vmatprep.subr.bf16.mxu0 %v6307_v22  ;;  %4133 = vmatprep.subr.bf16.mxu1 %v6310_v62  ;;  %v6386_v22 = vld [vmem:[#allocation7 + $0x568] ss:$16 sps:$4 sm:$0xff]   ;;  %v6391_v62 = vld [vmem:[#allocation7 + $0x584] ss:$16 sps:$4 sm:$0xff]  }
 0x34c   :  { %3975 = vmatpush1.bf16.msra.mxu0 %v6305_v36  ;;  %4134 = vmatpush1.bf16.msra.mxu1 %v6308_v49  ;;  %v6394_v36 = vld [vmem:[#allocation7 + $0x58c] ss:$16 sps:$4 sm:$0xff]   ;;  %v6389_v49 = vld [vmem:[#allocation7 + $0x580] ss:$16 sps:$4 sm:$0xff]  }
 0x34d   :  { %3976 = vmatprep.subr.bf16.mxu0 %v6313_v37  ;;  %4135 = vmatprep.subr.bf16.mxu1 %v6316_v48  ;;  %v6392_v37 = vld [vmem:[#allocation7 + $0x588] ss:$16 sps:$4 sm:$0xff]   ;;  %v6397_v48 = vld [vmem:[#allocation7 + $0x5a4] ss:$16 sps:$4 sm:$0xff]  }
 0x350   :  { %3977 = vmatpush1.bf16.msra.mxu0 %v6311_v38  ;;  %4136 = vmatpush1.bf16.msra.mxu1 %v6314_v40  ;;  %v6400_v38 = vld [vmem:[#allocation7 + $0x5ac] ss:$16 sps:$4 sm:$0xff]   ;;  %v6395_v40 = vld [vmem:[#allocation7 + $0x5a0] ss:$16 sps:$4 sm:$0xff]  }
 0x351   :  { %3999 = vmatprep.subr.bf16.mxu0 %v6319_v23  ;;  %4158 = vmatprep.subr.bf16.mxu1 %v6322_v24  ;;  %v6398_v23 = vld [vmem:[#allocation7 + $0x5a8] ss:$16 sps:$4 sm:$0xff]   ;;  %v6403_v24 = vld [vmem:[#allocation7 + $0x5c4] ss:$16 sps:$4 sm:$0xff]  }
 0x353   :  { %3979 = vmatmul.mubr.bf16.vlgmr.msra.gmra.mrb[16].mxu0 %v7013_v58  ;;  %4138 = vmatmul.mubr.bf16.vlgmr.msra.gmra.mrb[16].mxu1 %v7013_v58 }
 0x354   :  { %3988 = vmatprep.mubr.bf16.mxu0 %v7033_v8  ;;  %4000 = vmatpush1.bf16.msra.mxu0 %v6317_v41  ;;  %v6406_v41 = vld [vmem:[#allocation7 + $0x5cc] ss:$16 sps:$4 sm:$0xff]  }
 0x355   :  { %4147 = vmatprep.mubr.bf16.mxu1 %v7033_v8  ;;  %4159 = vmatpush1.bf16.msra.mxu1 %v6320_v44  ;;  %v6337_v8 = vld [vmem:[#allocation7 + $0x464] ss:$16 sps:$4 sm:$0xff]   ;;  %v6401_v44 = vld [vmem:[#allocation7 + $0x5c0] ss:$16 sps:$4 sm:$0xff]  }
 0x356   :  { %4001 = vmatprep.subr.bf16.mxu0 %v6325_v42  ;;  %4160 = vmatprep.subr.bf16.mxu1 %v6328_v43  ;;  %v6404_v42 = vld [vmem:[#allocation7 + $0x5c8] ss:$16 sps:$4 sm:$0xff]   ;;  %v6409_v43 = vld [vmem:[#allocation7 + $0x5e4] ss:$16 sps:$4 sm:$0xff]  }
 0x358   :  { %4002 = vmatpush1.bf16.msra.mxu0 %v6323_v21  ;;  %v6412_v21 = vld [vmem:[#allocation7 + $0x5ec] ss:$16 sps:$4 sm:$0xff]  }
 0x359   :  { %4161 = vmatpush1.bf16.msra.mxu1 %v6326_v50  ;;  %4003 = vmatprep.subr.bf16.mxu0 %v6331_v20  ;;  %v6407_v50 = vld [vmem:[#allocation7 + $0x5e0] ss:$16 sps:$4 sm:$0xff]   ;;  %v6410_v20 = vld [vmem:[#allocation7 + $0x5e8] ss:$16 sps:$4 sm:$0xff]  }
 0x35a   :  { %4162 = vmatprep.subr.bf16.mxu1 %v6334_v30  ;;  %v4390_v30 = vld [vmem:[#allocation8 + $0x80] sm:$0xff] }
 0x35b   :  { %3989 = vmatmul.mubr.bf16.gmra.mrb[20].mxu0 %v7023_v9  ;;  %4148 = vmatmul.mubr.bf16.gmra.mrb[20].mxu1 %v7023_v9  ;;  %v6344_v9 = vld [vmem:[#allocation7 + $0x488] ss:$16 sps:$4 sm:$0xff]  }
 0x35c   :  { %4004 = vmatpush1.bf16.msra.mxu0 %v6329_v51  ;;  %5286 = vmatprep.mubr.msk.bf16.mxu0 %vm7072_vm12, %v7047_v29  ;;  %v4391_v51 = vld [vmem:[#allocation8 + $0x88] sm:$0xff] }
 0x35d   :  { %4163 = vmatpush1.bf16.msra.mxu1 %v6332_v52  ;;  %5310 = vmatprep.mubr.msk.bf16.mxu1 %vm7072_vm12, %v7047_v29  ;;  %v6358_v29 = vld [vmem:[#allocation7 + $0x4cc] ss:$16 sps:$4 sm:$0xff]   ;;  %v4374_v52 = vld [vmem:[#allocation8] sm:$0xff] }
 0x35e   :  { %4005 = vmatprep.subr.bf16.mxu0 %v6337_v8  ;;  %4164 = vmatprep.subr.bf16.mxu1 %v6340_v53  ;;  %v5462_v8 = vpack.c.bf16 %v4391_v51, %v4390_v30  ;;  %v4375_v53 = vld [vmem:[#allocation8 + $0x8] sm:$0xff] }
 0x35f   :  { %v5464_v58 = vpack.c.bf16 %v4375_v53, %v4374_v52 }
 0x360   :  { %4006 = vmatpush1.bf16.msra.mxu0 %v6335_v45  ;;  %v4392_v45 = vld [vmem:[#allocation8 + $0x90] sm:$0xff] }
 0x361   :  { %4165 = vmatpush1.bf16.msra.mxu1 %v6338_v54  ;;  %4007 = vmatprep.subr.bf16.mxu0 %v6343_v55  ;;  %v4393_v54 = vld [vmem:[#allocation8 + $0x98] sm:$0xff]  ;;  %v4376_v55 = vld [vmem:[#allocation8 + $0x10] sm:$0xff] }
 0x362   :  { %4166 = vmatprep.subr.bf16.mxu1 %v6346_v56  ;;  %v4377_v56 = vld [vmem:[#allocation8 + $0x18] sm:$0xff] }
 0x364   :  { %4008 = vmatpush1.bf16.msra.mxu0 %v6341_v57  ;;  %v4394_v57 = vld [vmem:[#allocation8 + $0xa0] sm:$0xff] }
 0x365   :  { %4167 = vmatpush1.bf16.msra.mxu1 %v6344_v9  ;;  %4009 = vmatprep.subr.bf16.mxu0 %v6349_v61  ;;  %v4395_v9 = vld [vmem:[#allocation8 + $0xa8] sm:$0xff]  ;;  %v4378_v61 = vld [vmem:[#allocation8 + $0x20] sm:$0xff] }
 0x366   :  { %4168 = vmatprep.subr.bf16.mxu1 %v6352_v0  ;;  %v4379_v0 = vld [vmem:[#allocation8 + $0x28] sm:$0xff] }
 0x368   :  { %4010 = vmatpush1.bf16.msra.mxu0 %v6347_v46  ;;  %v4396_v46 = vld [vmem:[#allocation8 + $0xb0] sm:$0xff] }
 0x369   :  { %4169 = vmatpush1.bf16.msra.mxu1 %v6350_v3  ;;  %4011 = vmatprep.subr.bf16.mxu0 %v6355_v2  ;;  %v4397_v3 = vld [vmem:[#allocation8 + $0xb8] sm:$0xff]  ;;  %v5472_v2 = vpack.c.bf16 %v4379_v0, %v4378_v61 }
 0x36a   :  { %4170 = vmatprep.subr.bf16.mxu1 %v6358_v29  ;;  %v5474_v29 = vpack.c.bf16 %v4397_v3, %v4396_v46 }
 0x36c   :  { %4012 = vmatpush1.bf16.msra.mxu0 %v6353_v4  ;;  %v4380_v4 = vld [vmem:[#allocation8 + $0x30] sm:$0xff] }
 0x36d   :  { %4171 = vmatpush1.bf16.msra.mxu1 %v6356_v47  ;;  %4013 = vmatprep.subr.bf16.mxu0 %v6361_v5  ;;  %v4381_v47 = vld [vmem:[#allocation8 + $0x38] sm:$0xff]  ;;  %v4398_v5 = vld [vmem:[#allocation8 + $0xc0] sm:$0xff] }
 0x36e   :  { %4172 = vmatprep.subr.bf16.mxu1 %v6364_v59  ;;  %v4399_v59 = vld [vmem:[#allocation8 + $0xc8] sm:$0xff] }
 0x370   :  { %4014 = vmatpush1.bf16.msra.mxu0 %v6359_v10  ;;  %v5476_v10 = vpack.c.bf16 %v4381_v47, %v4380_v4 }
 0x371   :  { %4173 = vmatpush1.bf16.msra.mxu1 %v6362_v27  ;;  %4015 = vmatprep.subr.bf16.mxu0 %v6367_v11  ;;  %v5478_v27 = vpack.c.bf16 %v4399_v59, %v4398_v5  ;;  %v4382_v11 = vld [vmem:[#allocation8 + $0x40] sm:$0xff] }
 0x372   :  { %4174 = vmatprep.subr.bf16.mxu1 %v6370_v1  ;;  %v4383_v1 = vld [vmem:[#allocation8 + $0x48] sm:$0xff] }
 0x374   :  { %4016 = vmatpush1.bf16.msra.mxu0 %v6365_v12  ;;  %v4400_v12 = vld [vmem:[#allocation8 + $0xd0] sm:$0xff] }
 0x375   :  { %4175 = vmatpush1.bf16.msra.mxu1 %v6368_v13  ;;  %4017 = vmatprep.subr.bf16.mxu0 %v6373_v63  ;;  %v4401_v13 = vld [vmem:[#allocation8 + $0xd8] sm:$0xff]  ;;  %v5480_v63 = vpack.c.bf16 %v4383_v1, %v4382_v11 }
 0x376   :  { %4176 = vmatprep.subr.bf16.mxu1 %v6376_v14  ;;  %v5482_v14 = vpack.c.bf16 %v4401_v13, %v4400_v12 }
 0x378   :  { %4018 = vmatpush1.bf16.msra.mxu0 %v6371_v25  ;;  %v4384_v25 = vld [vmem:[#allocation8 + $0x50] sm:$0xff] }
 0x379   :  { %4177 = vmatpush1.bf16.msra.mxu1 %v6374_v26  ;;  %4019 = vmatprep.subr.bf16.mxu0 %v6379_v28  ;;  %v4385_v26 = vld [vmem:[#allocation8 + $0x58] sm:$0xff]  ;;  %v4402_v28 = vld [vmem:[#allocation8 + $0xe0] sm:$0xff] }
 0x37a   :  { %4178 = vmatprep.subr.bf16.mxu1 %v6382_v39  ;;  %v4403_v39 = vld [vmem:[#allocation8 + $0xe8] sm:$0xff] }
 0x37c   :  { %4020 = vmatpush1.bf16.msra.mxu0 %v6377_v31  ;;  %v5484_v31 = vpack.c.bf16 %v4385_v26, %v4384_v25 }
 0x37d   :  { %4179 = vmatpush1.bf16.msra.mxu1 %v6380_v32  ;;  %4021 = vmatprep.subr.bf16.mxu0 %v6385_v33  ;;  %v5486_v32 = vpack.c.bf16 %v4403_v39, %v4402_v28  ;;  %v4386_v33 = vld [vmem:[#allocation8 + $0x60] sm:$0xff] }
 0x37e   :  { %4180 = vmatprep.subr.bf16.mxu1 %v6388_v7  ;;  %v4387_v7 = vld [vmem:[#allocation8 + $0x68] sm:$0xff] }
 0x380   :  { %4022 = vmatpush1.bf16.msra.mxu0 %v6383_v35  ;;  %v4404_v35 = vld [vmem:[#allocation8 + $0xf0] sm:$0xff] }
 0x381   :  { %4181 = vmatpush1.bf16.msra.mxu1 %v6386_v22  ;;  %4023 = vmatprep.subr.bf16.mxu0 %v6391_v62  ;;  %v4405_v22 = vld [vmem:[#allocation8 + $0xf8] sm:$0xff]  ;;  %v5488_v62 = vpack.c.bf16 %v4387_v7, %v4386_v33 }
 0x382   :  { %4182 = vmatprep.subr.bf16.mxu1 %v6394_v36  ;;  %v5490_v36 = vpack.c.bf16 %v4405_v22, %v4404_v35 }
 0x384   :  { %4024 = vmatpush1.bf16.msra.mxu0 %v6389_v49  ;;  %v2911_v49 = vld [vmem:[%s7195_s6] sm:$0xf] }
 0x385   :  { %4183 = vmatpush1.bf16.msra.mxu1 %v6392_v37  ;;  %4025 = vmatprep.subr.bf16.mxu0 %v6397_v48  ;;  %v2916_v37 = vrot.slane %v2911_v49, %v6808_v15  ;;  %v2924_v48 = vrot.slane %v2911_v49, %v6811_v16 }
 0x386   :  { %4184 = vmatprep.subr.bf16.mxu1 %v6400_v38  ;;  %v2920_v38 = vrot.slane %v2911_v49, %v6817_v18 }
 0x388   :  { %4026 = vmatpush1.bf16.msra.mxu0 %v6395_v40  ;;  %v2928_v40 = vrot.slane %v2911_v49, %v6820_v19  ;;  %v4423_v49 = vld [vmem:[#allocation8 + $0x188] sm:$0xff] }
 0x389   :  { %4185 = vmatpush1.bf16.msra.mxu1 %v6398_v23  ;;  %4027 = vmatprep.subr.bf16.mxu0 %v6403_v24 }
 0x38a   :  { %4186 = vmatprep.subr.bf16.mxu1 %v6406_v41 }
 0x38c   :  { %4028 = vmatpush1.bf16.msra.mxu0 %v6401_v44 }
 0x38d   :  { %4187 = vmatpush1.bf16.msra.mxu1 %v6404_v42  ;;  %4029 = vmatprep.subr.bf16.mxu0 %v6409_v43 }
 0x38e   :  { %4188 = vmatprep.subr.bf16.mxu1 %v6412_v21 }
 0x390   :  { %4030 = vmatpush1.bf16.msra.mxu0 %v6407_v50 }
 0x391   :  { %4189 = vmatpush1.bf16.msra.mxu1 %v6410_v20  ;;  %5463 = vmatprep.subr.bf16.mxu0 %v5462_v8 }
 0x393   :  { %5289 = vmatmul.mubr.msk.bf16.vlgmr.msra.gmra.mrb[16].mxu0 %vm7072_vm12, %v7031_v6 }
 0x394   :  { %5313 = vmatmul.mubr.msk.bf16.vlgmr.msra.gmra.mrb[16].mxu1 %vm7072_vm12, %v7031_v6  ;;  %5292 = vmatprep.mubr.msk.bf16.mxu0 %vm5290_vm14, %v7049_v34  ;;  %v5466_v6 = vpack.c.bf16 %v4393_v54, %v4392_v45 }
 0x395   :  { %5316 = vmatprep.mubr.msk.bf16.mxu1 %vm5290_vm14, %v7049_v34  ;;  %5465 = vmatpush3.bf16.msra.mxu0 %v5464_v58  ;;  %v5468_v34 = vpack.c.bf16 %v4377_v56, %v4376_v55 }
 0x396   :  { %5467 = vmatprep.subr.bf16.mxu0 %v5466_v6 }
 0x399   :  { %5469 = vmatpush3.bf16.msra.mxu0 %v5468_v34 }
 0x39b   :  { %5295 = vmatmul.mubr.msk.bf16.gmra.mrb[20].mxu0 %vm5290_vm14, %v7035_v17 }
 0x39c   :  { %5319 = vmatmul.mubr.msk.bf16.gmra.mrb[20].mxu1 %vm5290_vm14, %v7035_v17  ;;  %v5470_v17 = vpack.c.bf16 %v4395_v9, %v4394_v57 }
 0x39d   :  { %4296 = vmatprep.mubr.f32.mxu1 %v6567_v60 }
 0x39e   :  { %5471 = vmatprep.subr.bf16.mxu0 %v5470_v17 }
 0x39f   :  { %5473 = vmatpush3.bf16.msra.mxu0 %v5472_v2 }
 0x3a0   :  { %5475 = vmatprep.subr.bf16.mxu0 %v5474_v29 }
 0x3a3   :  { %5477 = vmatpush3.bf16.msra.mxu0 %v5476_v10 }
 0x3a4   :  { %5479 = vmatprep.subr.bf16.mxu0 %v5478_v27 }
 0x3a7   :  { %5481 = vmatpush3.bf16.msra.mxu0 %v5480_v63 }
 0x3a8   :  { %5483 = vmatprep.subr.bf16.mxu0 %v5482_v14 }
 0x3ab   :  { %5485 = vmatpush3.bf16.msra.mxu0 %v5484_v31 }
 0x3ac   :  { %5487 = vmatprep.subr.bf16.mxu0 %v5486_v32 }
 0x3af   :  { %5489 = vmatpush3.bf16.msra.mxu0 %v5488_v62  ;;  %v4227_v62 = vld [vmem:[%s7196_s7] sm:$0x3] }
 0x3b0   :  { %5491 = vmatprep.subr.bf16.mxu0 %v5490_v36  ;;  %v4422_v36 = vld [vmem:[#allocation8 + $0x180] sm:$0xff] }
 0x466   :  { %v4033_v23 = vpop.f32.mrb[16].mxu0 }
 0x467   :  { %v5582_v24 = vadd.f32 %v4033_v23, %v2916_v37  ;;  %v4192_v41 = vpop.f32.mrb[16].mxu1  ;;  %v4035_v44 = vpop.f32.mrb[17].mxu0  ;;  %v4425_v23 = vld [vmem:[#allocation8 + $0x198] sm:$0xff] }
 0x468   :  { %v5590_v42 = vadd.f32 %v4192_v41, %v2924_v48  ;;  %v5583_v43 = vadd.f32 %v4035_v44, %v2920_v38  ;;  %v4194_v21 = vpop.f32.mrb[17].mxu1  ;;  %v4037_v50 = vpop.f32.mrb[18].mxu0  ;;  %v4408_v44 = vld [vmem:[#allocation8 + $0x110] sm:$0xff] }
 0x469   :  { %v5591_v20 = vadd.f32 %v4194_v21, %v2928_v40  ;;  %v5584_v30 = vadd.f32 %v4037_v50, %v2916_v37  ;;  %v4196_v51 = vpop.f32.mrb[18].mxu1  ;;  %v4039_v52 = vpop.f32.mrb[19].mxu0  ;;  %v4211_v16 = vmax.f32 %v5582_v24, 0.0  ;;  %v4427_v21 = vld [vmem:[#allocation8 + $0x1a8] sm:$0xff] }
 0x46a   :  { %v5592_v8 = vadd.f32 %v4196_v51, %v2924_v48  ;;  %v5585_v15 = vadd.f32 %v4039_v52, %v2920_v38  ;;  %v4198_v53 = vpop.f32.mrb[19].mxu1  ;;  %v4213_v54 = vmax.f32 %v5590_v42, 0.0  ;;  %v4212_v19 = vmax.f32 %v5583_v43, 0.0  ;;  %v4409_v42 = vld [vmem:[#allocation8 + $0x118] sm:$0xff]  ;;  %v4426_v43 = vld [vmem:[#allocation8 + $0x1a0] sm:$0xff]  ;;  %v4411_v51 = vld [vmem:[#allocation8 + $0x128] sm:$0xff] }
 0x46b   :  { %v4215_v45 = vmax.f32 %v5584_v30, 0.0  ;;  %v5593_v18 = vadd.f32 %v4198_v53, %v2928_v40  ;;  %v4214_v55 = vmax.f32 %v5591_v20, 0.0  ;;  %v5500_v50 = vpack.c.bf16 %v4409_v42, %v4408_v44  ;;  %v4410_v30 = vld [vmem:[#allocation8 + $0x120] sm:$0xff]  ;;  %v4428_v52 = vld [vmem:[#allocation8 + $0x1b0] sm:$0xff]  ;;  %v4597_v44 = vld [vmem:[%s7199_s10 + $0x58] sm:$0xff] }
 0x46c   :  { %v4217_v58 = vmax.f32 %v5592_v8, 0.0  ;;  %v4216_v6 = vmax.f32 %v5585_v15, 0.0  ;;  %v5502_v20 = vpack.c.bf16 %v4427_v21, %v4426_v43  ;;  %v4429_v8 = vld [vmem:[#allocation8 + $0x1b8] sm:$0xff]  ;;  %v5504_v15 = vpack.c.bf16 %v4411_v51, %v4410_v30  ;;  %v4598_v43 = vld [vmem:[%s7199_s10 + $0x60] sm:$0xff]  ;;  %v4599_v21 = vld [vmem:[%s7199_s10 + $0x68] sm:$0xff] }
 0x46d   :  { %v5448_v56 = vpack.c.bf16 %v4215_v45, %v4211_v16  ;;  %v4218_v34 = vmax.f32 %v5593_v18, 0.0  ;;  %v5506_v53 = vpack.c.bf16 %v4429_v8, %v4428_v52  ;;  %v4412_v16 = vld [vmem:[#allocation8 + $0x130] sm:$0xff]  ;;  %v4413_v45 = vld [vmem:[#allocation8 + $0x138] sm:$0xff]  ;;  %v4430_v18 = vld [vmem:[#allocation8 + $0x1c0] sm:$0xff] }
 0x46e   :  { %v5456_v57 = vpack.c.bf16 %v4217_v58, %v4213_v54  ;;  %v5446_v9 = vpack.c.bf16 %v4216_v6, %v4212_v19  ;;  %v4043_v17 = vpop.f32.mrb[20].mxu0  ;;  %v4431_v54 = vld [vmem:[#allocation8 + $0x1c8] sm:$0xff]  ;;  %v5508_v19 = vpack.c.bf16 %v4413_v45, %v4412_v16  ;;  %v4414_v6 = vld [vmem:[#allocation8 + $0x140] sm:$0xff]  ;;  %v4601_v30 = vld [vmem:[%s7199_s10 + $0x78] sm:$0xff] }
 0x46f   :  { %v5454_v61 = vpack.c.bf16 %v4218_v34, %v4214_v55  ;;  %v5586_v0 = vadd.f32 %v4043_v17, %v2916_v37  ;;  %v4202_v46 = vpop.f32.mrb[20].mxu1  ;;  %v4045_v3 = vpop.f32.mrb[21].mxu0  ;;  %v5510_v58 = vpack.c.bf16 %v4431_v54, %v4430_v18  ;;  %v4415_v55 = vld [vmem:[#allocation8 + $0x148] sm:$0xff]  ;;  %v4433_v34 = vld [vmem:[#allocation8 + $0x1d8] sm:$0xff]  ;;  %v4416_v17 = vld [vmem:[#allocation8 + $0x150] sm:$0xff] }
 0x470   :  { %v5594_v2 = vadd.f32 %v4202_v46, %v2924_v48  ;;  %v5587_v29 = vadd.f32 %v4045_v3, %v2920_v38  ;;  %v4204_v4 = vpop.f32.mrb[21].mxu1  ;;  %v4047_v47 = vpop.f32.mrb[22].mxu0  ;;  %5447 = vmatprep.subr.bf16.mxu1 %v5446_v9  ;;  %v4388_v46 = vld [vmem:[#allocation8 + $0x70] sm:$0xff]  ;;  %v4389_v3 = vld [vmem:[#allocation8 + $0x78] sm:$0xff] }
 0x471   :  { %v5595_v5 = vadd.f32 %v4204_v4, %v2928_v40  ;;  %v5588_v59 = vadd.f32 %v4047_v47, %v2916_v37  ;;  %v4206_v10 = vpop.f32.mrb[22].mxu1  ;;  %v4049_v27 = vpop.f32.mrb[23].mxu0  ;;  %5449 = vmatpush1.bf16.msra.mxu1 %v5448_v56  ;;  %v4219_v13 = vmax.f32 %v5586_v0, 0.0  ;;  %v5494_v37 = vpack.c.bf16 %v4423_v49, %v4422_v36  ;;  %v4432_v56 = vld [vmem:[#allocation8 + $0x1d0] sm:$0xff]  ;;  %v4435_v4 = vld [vmem:[#allocation8 + $0x1e8] sm:$0xff] }
 0x472   :  { %v5596_v11 = vadd.f32 %v4206_v10, %v2924_v48  ;;  %v5589_v1 = vadd.f32 %v4049_v27, %v2920_v38  ;;  %v4208_v12 = vpop.f32.mrb[23].mxu1  ;;  %v4221_v25 = vmax.f32 %v5594_v2, 0.0  ;;  %v4220_v26 = vmax.f32 %v5587_v29, 0.0  ;;  %v4406_v48 = vld [vmem:[#allocation8 + $0x100] sm:$0xff]  ;;  %v4407_v38 = vld [vmem:[#allocation8 + $0x108] sm:$0xff]  ;;  %v4436_v27 = vld [vmem:[#allocation8 + $0x1f0] sm:$0xff] }
 0x473   :  { %v4223_v63 = vmax.f32 %v5588_v59, 0.0  ;;  %v5597_v14 = vadd.f32 %v4208_v12, %v2928_v40  ;;  %v4222_v31 = vmax.f32 %v5595_v5, 0.0  ;;  %v4424_v40 = vld [vmem:[#allocation8 + $0x190] sm:$0xff]  ;;  %v5496_v24 = vpack.c.bf16 %v4407_v38, %v4406_v48  ;;  %v4434_v29 = vld [vmem:[#allocation8 + $0x1e0] sm:$0xff]  ;;  %v4419_v59 = vld [vmem:[#allocation8 + $0x168] sm:$0xff] }
 0x474   :  { %v4225_v28 = vmax.f32 %v5596_v11, 0.0  ;;  %v4224_v39 = vmax.f32 %v5589_v1, 0.0  ;;  %v5498_v41 = vpack.c.bf16 %v4425_v23, %v4424_v40  ;;  %v5514_v9 = vpack.c.bf16 %v4433_v34, %v4432_v56  ;;  %v4418_v5 = vld [vmem:[#allocation8 + $0x160] sm:$0xff]  ;;  %v4437_v11 = vld [vmem:[#allocation8 + $0x1f8] sm:$0xff]  ;;  %v4420_v12 = vld [vmem:[#allocation8 + $0x170] sm:$0xff] }
 0x475   :  { %v5452_v32 = vpack.c.bf16 %v4223_v63, %v4219_v13  ;;  %v4226_v33 = vmax.f32 %v5597_v14, 0.0  ;;  %v5492_v2 = vpack.c.bf16 %v4389_v3, %v4388_v46  ;;  %v5518_v47 = vpack.c.bf16 %v4435_v4, %v4434_v29  ;;  %v4421_v13 = vld [vmem:[#allocation8 + $0x178] sm:$0xff]  ;;  %v4594_v40 = vld [vmem:[%s7199_s10 + $0x40] sm:$0xff]  ;;  %v4595_v23 = vld [vmem:[%s7199_s10 + $0x48] sm:$0xff] }
 0x476   :  { %v5460_v7 = vpack.c.bf16 %v4225_v28, %v4221_v25  ;;  %v5450_v35 = vpack.c.bf16 %v4224_v39, %v4220_v26  ;;  %v5520_v10 = vpack.c.bf16 %v4419_v59, %v4418_v5  ;;  %v5522_v1 = vpack.c.bf16 %v4437_v11, %v4436_v27  ;;  %v4586_v25 = vld [vmem:[%s7199_s10] sm:$0xff]  ;;  %v4587_v26 = vld [vmem:[%s7199_s10 + $0x8] sm:$0xff]  ;;  %v4593_v48 = vld [vmem:[%s7199_s10 + $0x38] sm:$0xff] }
 0x477   :  { %v5458_v22 = vpack.c.bf16 %v4226_v33, %v4222_v31  ;;  %5493 = vmatpush3.bf16.msra.mxu0 %v5492_v2  ;;  %v5524_v63 = vpack.c.bf16 %v4421_v13, %v4420_v12  ;;  %v6568_v14 = vmov 0.0|0.0   ;;  %v5527_v39 = vpack.c.bf16 %v4587_v26, %v4586_v25  ;;  %v4589_v33 = vld [vmem:[%s7199_s10 + $0x18] sm:$0xff] }
 0x478   :  { %5451 = vmatprep.subr.bf16.mxu1 %v5450_v35  ;;  %5526 = vmatprep.subr.bf16.mxu0 %v6568_v14  ;;  %v4590_v35 = vld [vmem:[%s7199_s10 + $0x20] sm:$0xff] }
 0x479   :  { %5453 = vmatpush1.bf16.msra.mxu1 %v5452_v32  ;;  %v4588_v32 = vld [vmem:[%s7199_s10 + $0x10] sm:$0xff] }
 0x47a   :  { %5455 = vmatprep.subr.bf16.mxu1 %v5454_v61  ;;  %v4417_v61 = vld [vmem:[#allocation8 + $0x158] sm:$0xff] }
 0x47b   :  { %v5516_v0 = vpack.c.bf16 %v4417_v61, %v4416_v17 }
 0x47c   :  { %5320 = vmatmul.mubr.msk.f32.vlgmr.msra.gmra.mrb[24].mxu1 %vm4228_vm2, %v4227_v62 }
 0x47d   :  { %5457 = vmatpush1.bf16.msra.mxu1 %v5456_v57  ;;  %4367 = vmatprep.mubr.f32.mxu1 %v6567_v60  ;;  %v5512_v57 = vpack.c.bf16 %v4415_v55, %v4414_v6 }
 0x47e   :  { %5459 = vmatprep.subr.bf16.mxu1 %v5458_v22  ;;  %v4591_v22 = vld [vmem:[%s7199_s10 + $0x28] sm:$0xff] }
 0x47f   :  { %v5533_v36 = vpack.c.bf16 %v4591_v22, %v4590_v35 }
 0x481   :  { %5461 = vmatpush1.bf16.msra.mxu1 %v5460_v7  ;;  %v5530_v7 = vpack.c.bf16 %v4589_v33, %v4588_v32 }
 0x482   :  { %5495 = vmatprep.subr.bf16.mxu1 %v5494_v37  ;;  %v4592_v37 = vld [vmem:[%s7199_s10 + $0x30] sm:$0xff] }
 0x483   :  { %v5536_v38 = vpack.c.bf16 %v4593_v48, %v4592_v37 }
 0x484   :  { %5321 = vmatmul.mubr.msk.f32.vlgmr.msra.gmra.mrb[26].mxu1 %vm4228_vm2, %v4227_v62 }
 0x485   :  { %5497 = vmatpush3.bf16.msra.mxu1 %v5496_v24  ;;  %v5539_v24 = vpack.c.bf16 %v4595_v23, %v4594_v40 }
 0x486   :  { %5499 = vmatprep.subr.bf16.mxu1 %v5498_v41  ;;  %v4596_v41 = vld [vmem:[%s7199_s10 + $0x50] sm:$0xff] }
 0x487   :  { %v5542_v42 = vpack.c.bf16 %v4597_v44, %v4596_v41 }
 0x489   :  { %5501 = vmatpush3.bf16.msra.mxu1 %v5500_v50  ;;  %v5545_v50 = vpack.c.bf16 %v4599_v21, %v4598_v43 }
 0x48a   :  { %5503 = vmatprep.subr.bf16.mxu1 %v5502_v20  ;;  %v4600_v20 = vld [vmem:[%s7199_s10 + $0x70] sm:$0xff]  ;;  %s6570_s10 = smov [#allocation11]  }
 0x48b   :  { %v5548_v51 = vpack.c.bf16 %v4601_v30, %v4600_v20  ;;  %s4705_s21 = sshll.u32 %s6570_s10, 4  ;;  %s4706_s21 = int_to_ptr.vmem [resolvable:$true] %s4705_s21 }
 0x48c   :  { %p6508_p5 = scmp.lt.s32.totalorder %s4706_s21, %s4706_s21 }
 0x48d   :  { %5505 = vmatpush3.bf16.msra.mxu1 %v5504_v15 }
 0x48e   :  { %5507 = vmatprep.subr.bf16.mxu1 %v5506_v53  ;;  %v5322_v53 = vld [vmem:[%s7198_s9] ss:$0 sm:$0xff]  ;;  %s6503_s9 = scalar_lea.vmem %s4706_s21, 32 }
 0x48f   :  { %p6504_p4 = scmp.ne.s32.totalorder %s4706_s21, %s6503_s9  ;;  %p6509_p6 = scmp.lt.s32.totalorder %s6503_s9, %s6503_s9 }
 0x491   :  { %5509 = vmatpush3.bf16.msra.mxu1 %v5508_v19  ;;  %p6510_p7 = por %p6509_p6, %p6508_p5 }
 0x492   :  { %5511 = vmatprep.subr.bf16.mxu1 %v5510_v58 }
 0x493   :  { %p6511_p8 = pnand %p6510_p7, %p6504_p4 }
 0x495   :  { %5513 = vmatpush3.bf16.msra.mxu1 %v5512_v57 }
 0x496   :  { %5515 = vmatprep.subr.bf16.mxu1 %v5514_v9 }
 0x499   :  { %5517 = vmatpush3.bf16.msra.mxu1 %v5516_v0 }
 0x49a   :  { %5519 = vmatprep.subr.bf16.mxu1 %v5518_v47 }
 0x49d   :  { %5521 = vmatpush3.bf16.msra.mxu1 %v5520_v10 }
 0x49e   :  { %5523 = vmatprep.subr.bf16.mxu1 %v5522_v1 }
 0x4a1   :  { %5525 = vmatpush3.bf16.msra.mxu1 %v5524_v63 }
 0x54f   :  { %v4298_v28 = vpop.f32.mrb[24].mxu1 }
 0x550   :  { %v4300_v31 = vpop.f32.mrb[25].mxu1 }
 0x551   :  { %4509 = vmatprep.mubr.f32.mxu0 %v4300_v31 }
 0x552   :  { %4510 = vmatmul.mubr.f32.vlgmr.msra.gmra.mrb[24].mxu0 %v4298_v28 }
 0x553   :  { %5528 = vmatpush3.bf16.msra.mxu0 %v5527_v39  ;;  %5443 = vmatprep.mubr.msk.f32.mxu0 %vm6569_vm15, %v6567_v60 }
 0x554   :  { %5529 = vmatprep.subr.bf16.mxu0 %v6568_v14 }
 0x557   :  { %v4369_v62 = vpop.f32.mrb[26].mxu1  ;;  %5531 = vmatpush3.bf16.msra.mxu0 %v5530_v7 }
 0x558   :  { %v4371_v49 = vpop.f32.mrb[27].mxu1  ;;  %5532 = vmatprep.subr.bf16.mxu0 %v6568_v14 }
 0x559   :  { %4579 = vmatprep.mubr.f32.mxu1 %v4371_v49 }
 0x55a   :  { %4580 = vmatmul.mubr.f32.vlgmr.msra.gmra.mrb[28].mxu1 %v4369_v62 }
 0x55b   :  { %5534 = vmatpush3.bf16.msra.mxu0 %v5533_v36 }
 0x55c   :  { %5535 = vmatprep.subr.bf16.mxu0 %v6568_v14 }
 0x55f   :  { %5537 = vmatpush3.bf16.msra.mxu0 %v5536_v38 }
 0x560   :  { %5538 = vmatprep.subr.bf16.mxu0 %v6568_v14 }
 0x563   :  { %5540 = vmatpush3.bf16.msra.mxu0 %v5539_v24 }
 0x564   :  { %5541 = vmatprep.subr.bf16.mxu0 %v6568_v14 }
 0x567   :  { %5543 = vmatpush3.bf16.msra.mxu0 %v5542_v42 }
 0x568   :  { %5544 = vmatprep.subr.bf16.mxu0 %v6568_v14 }
 0x56b   :  { %5546 = vmatpush3.bf16.msra.mxu0 %v5545_v50 }
 0x56c   :  { %5547 = vmatprep.subr.bf16.mxu0 %v6568_v14 }
 0x56f   :  { %5549 = vmatpush3.bf16.msra.mxu0 %v5548_v51 }
 0x625   :  { %v5356_v52 = vpop.f32.mrb[24].mxu0 }
 0x626   :  { %v5357_v8 = vpop.f32.mrb[25].mxu0 }
 0x627   :  { %v5358_v15 = vadd.f32 %v5357_v8, %v5356_v52 }
 0x629   :  { %v4512_v18 = vadd.f32 %v5358_v15, %v5322_v53 }
 0x62d   :  { %v5391_v16 = vpop.f32.mrb[28].mxu1 }
 0x62e   :  { %v5392_v45 = vpop.f32.mrb[29].mxu1 }
 0x62f   :  { %v5393_v54 = vadd.f32 %v5392_v45, %v5391_v16 }
 0x631   :  { %v4582_v19 = vadd.f32 %v5393_v54, %v4512_v18 }
 0x633   :  { %v4585_v58 = vmax.f32 %v4582_v19, 0.0 }
 0x635   :  { %5444 = vmatmul.mubr.f32.vlgmr.msra.gmra.mrb[26].mxu0 %v4585_v58  ;;  %v4680_v6 = vmul.f32 %v4585_v58, %v4585_v58 }
 0x637   :  { %v4682_v55 = vsel %vm4681_vm0, %v4680_v6, 0.0 }
 0x638   :  { %4683 = vadd.xlane.f32.xlu0 %v4682_v55 }
 0x6c5   :  { %v4684_v56 = vpop.xlane.xlu0 %4683 }
 0x6c6   :  { %v4685_v60 = vmax.f32 %v4684_v56, 1e-24 }
 0x6c8   :  { %6413 = vrsqrt.f32 %v4685_v60 }
 0x6d2   :  { %v6414_v34 = vpop.eup %6413 }
 0x6d3   :  { %v4687_v57 = vmul.f32 %v6414_v34, %v4585_v58 }
 0x6d5   :  { %4688 = vst [vmem:[#allocation11] sm:$0x3] %v4687_v57 }
 0x6d6   :  { %6514 = shalt.err (!%p6511_p8)
}
 0x6d7   :  { %s6515_s22 = scalar_lea.hbm %s7202_s13, 32 }
 0x6d8   :  { %p6516_p9 = scmp.ne.s32.totalorder %s7202_s13, %s6515_s22  ;;  %p6519_p10 = scmp.lt.u32.totalorder %s6515_s22, %s7202_s13 }
 0x6da   :  { %p6521_p11 = pnand %p6519_p10, %p6516_p9 }
 0x6dc   :  { %6524 = shalt.err (!%p6521_p11)
}
 0x6dd   :  { %4708 = dma.vmem_to_hbm [thread:$0]  %s4706_s21, 32, %s7202_s13, [#allocation12]   ;;  %v5323_v9 = vld [vmem:[%s7200_s11] ss:$0 sm:$0xff] }
 0x6de   :  { %s6571_s4 = smov [#allocation10]  }
 0x6df   :  { %s4695_s16 = sshll.u32 %s6571_s4, 4  ;;  %s4696_s16 = int_to_ptr.vmem [resolvable:$true] %s4695_s16 }
 0x6e0   :  { %s6525_s5 = scalar_lea.vmem %s4696_s16, 32  ;;  %p6530_p13 = scmp.lt.s32.totalorder %s4696_s16, %s4696_s16 }
 0x6e1   :  { %p6526_p12 = scmp.ne.s32.totalorder %s4696_s16, %s6525_s5  ;;  %p6531_p0 = scmp.lt.s32.totalorder %s6525_s5, %s6525_s5 }
 0x6e3   :  { %p6532_p1 = por %p6531_p0, %p6530_p13 }
 0x6e5   :  { %p6533_p2 = pnand %p6532_p1, %p6526_p12 }
 0x708   :  { %v4675_v17 = vpop.f32.mrb[26].mxu0 }
 0x709   :  { %v4676_v61 = vadd.f32 %v5323_v9, %v4675_v17  ;;  %v5445_v0 = vpop.f32.mrb[27].mxu0 }
 0x70b   :  { %4679 = vst [vmem:[#allocation10] sm:$0x3] %v4676_v61 }
 0x70c   :  { %6536 = shalt.err (!%p6533_p2)
}
 0x70d   :  { %s6537_s6 = scalar_lea.hbm %s7201_s12, 32 }
 0x70e   :  { %p6538_p3 = scmp.ne.s32.totalorder %s7201_s12, %s6537_s6  ;;  %p6541_p4 = scmp.lt.u32.totalorder %s6537_s6, %s7201_s12 }
 0x710   :  { %p6543_p5 = pnand %p6541_p4, %p6538_p3 }
 0x712   :  { %6546 = shalt.err (!%p6543_p5)
}
 0x713   :  { %4698 = dma.vmem_to_hbm [thread:$0]  %s4696_s16, 32, %s7201_s12, [#allocation4]  }
 0x714   :  { %6553 = dma.done.wait [#allocation4], 32  }
 0x715   :  { %6554 = vsyncadd [#allocation4], 4294967264 }
 0x716   :  { %6555 = dma.done.wait [#allocation12], 32  }
 0x717   :  { %6556 = vsyncadd [#allocation12], 4294967264 }
 0x718   :  { %4715 = vsyncpa [#allocation3], 1 }
 0x719   :  { %4716 = vsyncpa [#allocation6], 1 }
 0x71a   :  { %4717 = vsyncpa [#allocation9], 1 }
 0x71b   :  { %4718 = vsyncpa [#allocation4], 1 }
 0x71c   :  { %4719 = vsyncpa [#allocation12], 1 }

</bundles_post_ra>
